<compile_context>
chip_gen: v6e
topology: v6e:2x2x1
jax: 0.10.0
libtpu: 0.0.40
codegen_flags: <defaults>
</compile_context>

<pallas_src>
import numpy as np
import jax
import jax.numpy as jnp
from jax import lax
from jax.experimental import pallas as pl
from jax.experimental.pallas import tpu as pltpu


# ----------------------------------------------------------------------------
# Pallas kernel: one MLA head, one batch element per grid step.
# ----------------------------------------------------------------------------
def _head_kernel(x_ref, w1_ref, sb1_ref, w2_ref, sb2_ref, ah_ref, aw_ref,
                 out_ref, xpad_ref, ypad_ref):
    # x_ref  : (1, H, W, Cin)        f32   current batch element (unpadded)
    # w1_ref : (9, Cin,  Cmid)       bf16  conv1 taps, k = dy*3 + dx
    # sb1_ref: (2, Cmid)             f32   folded BN1: row0 = scale, row1 = bias
    # w2_ref : (9, Cmid, Cmid)       bf16  conv2 taps
    # sb2_ref: (2, Cmid)             f32   folded BN2
    # ah_ref : (Hout, H)             bf16  height interp matrix (align_corners)
    # aw_ref : (Wout, W)             bf16  width  interp matrix
    # out_ref: (1, Hout, Wout*Cmid)  f32   lane-dense output
    # xpad_ref: VMEM (H+2, W+2, Cin)  f32  padded conv1 input scratch
    # ypad_ref: VMEM (H+2, W+2, Cmid) f32  padded conv2 input scratch
    H, W, cin = x_ref.shape[1], x_ref.shape[2], x_ref.shape[3]
    cmid = w1_ref.shape[2]
    Hout, Wout = ah_ref.shape[0], aw_ref.shape[0]

    def zero_halo(ref, c):
        # Zero only the 1-px halo strips; the interior is overwritten below.
        z_row = jnp.zeros((1, W + 2, c), ref.dtype)
        z_col = jnp.zeros((H + 2, 1, c), ref.dtype)
        ref[0:1, :, :] = z_row
        ref[H + 1:H + 2, :, :] = z_row
        ref[:, 0:1, :] = z_col
        ref[:, W + 1:W + 2, :] = z_col

    # ---- conv1 (3x3, pad=1, no bias) as 9 shifted matmuls -------------------
    zero_halo(xpad_ref, cin)
    xpad_ref[1:1 + H, 1:1 + W, :] = x_ref[0]
    xp = xpad_ref[...]

    acc = jnp.zeros((H * W, cmid), jnp.float32)
    for k in range(9):
        dy, dx = k // 3, k % 3
        patch = xp[dy:dy + H, dx:dx + W, :].reshape(H * W, cin)
        acc = acc + jnp.dot(patch.astype(jnp.bfloat16), w1_ref[k],
                            preferred_element_type=jnp.float32)
    # folded BN + ReLU
    y1 = jnp.maximum(acc * sb1_ref[0:1, :] + sb1_ref[1:2, :], 0.0)

    # ---- conv2 (3x3, pad=1, no bias) ----------------------------------------
    zero_halo(ypad_ref, cmid)
    ypad_ref[1:1 + H, 1:1 + W, :] = y1.reshape(H, W, cmid)
    yp = ypad_ref[...]

    acc2 = jnp.zeros((H * W, cmid), jnp.float32)
    for k in range(9):
        dy, dx = k // 3, k % 3
        patch = yp[dy:dy + H, dx:dx + W, :].reshape(H * W, cmid)
        acc2 = acc2 + jnp.dot(patch.astype(jnp.bfloat16), w2_ref[k],
                              preferred_element_type=jnp.float32)
    y2 = jnp.maximum(acc2 * sb2_ref[0:1, :] + sb2_ref[1:2, :], 0.0)  # (H*W, Cmid)

    # ---- separable bilinear x4 (align_corners=True) -------------------------
    # width interpolation, batched over the H rows (flash-style batched einsum)
    y2b = y2.reshape(H, W, cmid).astype(jnp.bfloat16)          # (H, W, Cmid)
    awb = jnp.broadcast_to(aw_ref[...], (H, Wout, W))          # (H, Wout, W) bf16
    zc = jnp.einsum('hpw,hwc->hpc', awb, y2b,
                    preferred_element_type=jnp.float32)        # (H, Wout, Cmid)
    # height interpolation as a single matmul, lane-dense result
    z2 = zc.reshape(H, Wout * cmid).astype(jnp.bfloat16)       # (H, Wout*Cmid)
    out_ref[0] = jnp.dot(ah_ref[...], z2,
                         preferred_element_type=jnp.float32)   # (Hout, Wout*Cmid)


def _run_head(x_nhwc, w1, sb1, w2, sb2, ah, aw):
    N, H, W, cin = x_nhwc.shape
    cmid = w1.shape[2]
    Hout, Wout = ah.shape[0], aw.shape[0]

    return pl.pallas_call(
        _head_kernel,
        out_shape=jax.ShapeDtypeStruct((N, Hout, Wout * cmid), jnp.float32),
        grid_spec=pltpu.PrefetchScalarGridSpec(
            num_scalar_prefetch=0,
            grid=(N,),
            in_specs=[
                pl.BlockSpec((1, H, W, cin), lambda n: (n, 0, 0, 0)),
                pl.BlockSpec((9, cin, cmid), lambda n: (0, 0, 0)),
                pl.BlockSpec((2, cmid), lambda n: (0, 0)),
                pl.BlockSpec((9, cmid, cmid), lambda n: (0, 0, 0)),
                pl.BlockSpec((2, cmid), lambda n: (0, 0)),
                pl.BlockSpec((Hout, H), lambda n: (0, 0)),
                pl.BlockSpec((Wout, W), lambda n: (0, 0)),
            ],
            out_specs=pl.BlockSpec((1, Hout, Wout * cmid), lambda n: (n, 0, 0)),
            scratch_shapes=[
                pltpu.VMEM((H + 2, W + 2, cin), jnp.float32),
                pltpu.VMEM((H + 2, W + 2, cmid), jnp.float32),
            ],
        ),
        compiler_params=pltpu.CompilerParams(
            dimension_semantics=("parallel",),
        ),
    )(x_nhwc, w1, sb1, w2, sb2, ah, aw)


# ----------------------------------------------------------------------------
# Glue: bilinear (align_corners=True) interpolation matrix, parameters, wrapper
# ----------------------------------------------------------------------------
def _interp_matrix(out_size, in_size):
    """1-D bilinear interpolation matrix matching F.interpolate(align_corners=True)."""
    A = np.zeros((out_size, in_size), np.float32)
    if in_size == 1 or out_size == 1:
        A[:, 0] = 1.0
        return jnp.asarray(A)
    p = np.arange(out_size, dtype=np.float64)
    src = p * (in_size - 1) / (out_size - 1)
    h0 = np.clip(np.floor(src).astype(np.int64), 0, in_size - 2)
    frac = (src - h0).astype(np.float32)
    A[np.arange(out_size), h0] = 1.0 - frac
    A[np.arange(out_size), h0 + 1] = frac
    return jnp.asarray(A)


def init_params(key, mla_channels, cmid, eps=1e-5):
    params = []
    for i, cin in enumerate(mla_channels):
        kk = jax.random.split(jax.random.fold_in(key, i), 10)
        w1 = jax.random.normal(kk[0], (3, 3, cin, cmid), jnp.float32) / np.sqrt(9 * cin)
        g1 = 1.0 + 0.1 * jax.random.normal(kk[1], (cmid,), jnp.float32)
        b1 = 0.1 * jax.random.normal(kk[2], (cmid,), jnp.float32)
        m1 = 0.1 * jax.random.normal(kk[3], (cmid,), jnp.float32)
        v1 = 0.5 + jax.random.uniform(kk[4], (cmid,), jnp.float32)
        s1 = g1 / jnp.sqrt(v1 + eps)
        w2 = jax.random.normal(kk[5], (3, 3, cmid, cmid), jnp.float32) / np.sqrt(9 * cmid)
        g2 = 1.0 + 0.1 * jax.random.normal(kk[6], (cmid,), jnp.float32)
        b2 = 0.1 * jax.random.normal(kk[7], (cmid,), jnp.float32)
        m2 = 0.1 * jax.random.normal(kk[8], (cmid,), jnp.float32)
        v2 = 0.5 + jax.random.uniform(kk[9], (cmid,), jnp.float32)
        s2 = g2 / jnp.sqrt(v2 + eps)
        params.append(dict(
            w1=w1.reshape(9, cin, cmid),
            sb1=jnp.stack([s1, b1 - m1 * s1]),
            w2=w2.reshape(9, cmid, cmid),
            sb2=jnp.stack([s2, b2 - m2 * s2]),
        ))
    return params


def mla_head_forward(mla_p2, mla_p3, mla_p4, mla_p5, params):
    """Pallas implementation of MLAHead.forward; inputs/outputs NCHW like PyTorch."""
    inputs = [mla_p2, mla_p3, mla_p4, mla_p5]
    upsizes = [mla_p3.shape[-1] * 4, mla_p3.shape[-1] * 4,
               mla_p4.shape[-1] * 4, mla_p5.shape[-1] * 4]
    heads = []
    for x, prm, up in zip(inputs, params, upsizes):
        N, _, Hin, Win = x.shape
        cmid = prm["w1"].shape[2]
        x_nhwc = jnp.transpose(x, (0, 2, 3, 1))
        ah = _interp_matrix(up, Hin).astype(jnp.bfloat16)
        aw = _interp_matrix(up, Win).astype(jnp.bfloat16)
        y = _run_head(x_nhwc,
                      prm["w1"].astype(jnp.bfloat16), prm["sb1"],
                      prm["w2"].astype(jnp.bfloat16), prm["sb2"],
                      ah, aw)                                   # (N, up, up*cmid)
        y = y.reshape(N, up, up, cmid)
        heads.append(jnp.transpose(y, (0, 3, 1, 2)))
    return jnp.concatenate(heads, axis=1)


# ----------------------------------------------------------------------------
# Pure-JAX f32 reference (for correctness check only)
# ----------------------------------------------------------------------------
def _ref_head(x_nhwc, w1, sb1, w2, sb2, ah, aw):
    cin = x_nhwc.shape[-1]
    cmid = w1.shape[2]
    w1c = w1.reshape(3, 3, cin, cmid)
    w2c = w2.reshape(3, 3, cmid, cmid)
    dn = lax.conv_dimension_numbers(x_nhwc.shape, w1c.shape, ("NHWC", "HWIO", "NHWC"))
    y = lax.conv_general_dilated(x_nhwc, w1c, (1, 1), ((1, 1), (1, 1)),
                                 dimension_numbers=dn,
                                 precision=lax.Precision.HIGHEST)
    y = jnp.maximum(y * sb1[0] + sb1[1], 0.0)
    dn2 = lax.conv_dimension_numbers(y.shape, w2c.shape, ("NHWC", "HWIO", "NHWC"))
    y = lax.conv_general_dilated(y, w2c, (1, 1), ((1, 1), (1, 1)),
                                 dimension_numbers=dn2,
                                 precision=lax.Precision.HIGHEST)
    y = jnp.maximum(y * sb2[0] + sb2[1], 0.0)
    y = jnp.einsum('oh,nhwc->nowc', ah, y, precision=lax.Precision.HIGHEST)
    y = jnp.einsum('pw,nowc->nopc', aw, y, precision=lax.Precision.HIGHEST)
    return y


def mla_head_reference(mla_p2, mla_p3, mla_p4, mla_p5, params):
    inputs = [mla_p2, mla_p3, mla_p4, mla_p5]
    upsizes = [mla_p3.shape[-1] * 4, mla_p3.shape[-1] * 4,
               mla_p4.shape[-1] * 4, mla_p5.shape[-1] * 4]
    outs = []
    for x, prm, up in zip(inputs, params, upsizes):
        xn = jnp.transpose(x, (0, 2, 3, 1))
        ah = _interp_matrix(up, x.shape[2])
        aw = _interp_matrix(up, x.shape[3])
        y = _ref_head(xn, prm["w1"], prm["sb1"], prm["w2"], prm["sb2"], ah, aw)
        outs.append(jnp.transpose(y, (0, 3, 1, 2)))
    return jnp.concatenate(outs, axis=1)


if __name__ == "__main__":
    key = jax.random.PRNGKey(0)
    N, H, W = 2, 8, 8
    mla_channels = (16, 16, 16, 16)
    mlahead_channels = 128   # module default; keeps the channel/lane dim dense

    k_in, k_par = jax.random.split(key)
    ks = jax.random.split(k_in, 4)
    inputs = [jax.random.normal(ks[i], (N, mla_channels[i], H, W), jnp.float32)
              for i in range(4)]
    params = init_params(k_par, mla_channels, mlahead_channels)

    out = jax.block_until_ready(mla_head_forward(*inputs, params))
    assert out.shape == (N, 4 * mlahead_channels, 4 * W, 4 * W), out.shape

    ref = jax.block_until_ready(mla_head_reference(*inputs, params))
    # bf16 matmul operands (f32 accumulation) vs. full-f32 reference.
    np.testing.assert_allclose(np.asarray(out), np.asarray(ref),
                               rtol=5e-2, atol=5e-2)
    print("KERNEL_OK")
</pallas_src>

<mosaic_0001>
module attributes {stable_mosaic.version = 11 : i64} {
  func.func @_head_kernel(%arg0: i32, %arg1: memref<1x8x8x16xf32, #tpu.memory_space<vmem>>, %arg2: memref<9x16x128xbf16, #tpu.memory_space<vmem>>, %arg3: memref<2x128xf32, #tpu.memory_space<vmem>>, %arg4: memref<9x128x128xbf16, #tpu.memory_space<vmem>>, %arg5: memref<2x128xf32, #tpu.memory_space<vmem>>, %arg6: memref<32x8xbf16, #tpu.memory_space<vmem>>, %arg7: memref<32x8xbf16, #tpu.memory_space<vmem>>, %arg8: memref<1x32x4096xf32, #tpu.memory_space<vmem>>, %arg9: memref<10x10x16xf32, #tpu.memory_space<vmem>>, %arg10: memref<10x10x128xf32, #tpu.memory_space<vmem>>) attributes {dimension_semantics = [#tpu.dimension_semantics<parallel>], iteration_bounds = array<i64: 2>, scalar_prefetch = 0 : i64, scratch_operands = 2 : i64, tpu.core_type = #tpu.core_type<tc>, window_params = [{transform_indices = @transform_0, window_bounds = array<i64: 1, 8, 8, 16>}, {pipeline_mode = #tpu.pipeline_mode<synchronous>, transform_indices = @transform_1, window_bounds = array<i64: 9, 16, 128>}, {pipeline_mode = #tpu.pipeline_mode<synchronous>, transform_indices = @transform_2, window_bounds = array<i64: 2, 128>}, {pipeline_mode = #tpu.pipeline_mode<synchronous>, transform_indices = @transform_3, window_bounds = array<i64: 9, 128, 128>}, {pipeline_mode = #tpu.pipeline_mode<synchronous>, transform_indices = @transform_4, window_bounds = array<i64: 2, 128>}, {pipeline_mode = #tpu.pipeline_mode<synchronous>, transform_indices = @transform_5, window_bounds = array<i64: 32, 8>}, {pipeline_mode = #tpu.pipeline_mode<synchronous>, transform_indices = @transform_6, window_bounds = array<i64: 32, 8>}, {transform_indices = @transform_7, window_bounds = array<i64: 1, 32, 4096>}]} {
    %cst = arith.constant 0.000000e+00 : f32
    %0 = vector.broadcast %cst : f32 to vector<1x10x16xf32>
    %cst_0 = arith.constant 0.000000e+00 : f32
    %1 = vector.broadcast %cst_0 : f32 to vector<10x1x16xf32>
    %c0 = arith.constant 0 : index
    %c0_1 = arith.constant 0 : index
    %c0_2 = arith.constant 0 : index
    %2 = vector.load %arg9[%c0, %c0_1, %c0_2] : memref<10x10x16xf32, #tpu.memory_space<vmem>>, vector<1x10x16xf32>
    tpu.vector_store %arg9[%c0, %c0_1, %c0_2], %0 {strides = array<i32>} : memref<10x10x16xf32, #tpu.memory_space<vmem>>, vector<1x10x16xf32>,
    %c9 = arith.constant 9 : index
    %c0_3 = arith.constant 0 : index
    %c0_4 = arith.constant 0 : index
    %3 = vector.load %arg9[%c9, %c0_3, %c0_4] : memref<10x10x16xf32, #tpu.memory_space<vmem>>, vector<1x10x16xf32>
    tpu.vector_store %arg9[%c9, %c0_3, %c0_4], %0 {strides = array<i32>} : memref<10x10x16xf32, #tpu.memory_space<vmem>>, vector<1x10x16xf32>,
    %c0_5 = arith.constant 0 : index
    %c0_6 = arith.constant 0 : index
    %c0_7 = arith.constant 0 : index
    %4 = vector.load %arg9[%c0_5, %c0_6, %c0_7] : memref<10x10x16xf32, #tpu.memory_space<vmem>>, vector<10x1x16xf32>
    tpu.vector_store %arg9[%c0_5, %c0_6, %c0_7], %1 {strides = array<i32>} : memref<10x10x16xf32, #tpu.memory_space<vmem>>, vector<10x1x16xf32>,
    %c0_8 = arith.constant 0 : index
    %c9_9 = arith.constant 9 : index
    %c0_10 = arith.constant 0 : index
    %5 = vector.load %arg9[%c0_8, %c9_9, %c0_10] : memref<10x10x16xf32, #tpu.memory_space<vmem>>, vector<10x1x16xf32>
    tpu.vector_store %arg9[%c0_8, %c9_9, %c0_10], %1 {strides = array<i32>} : memref<10x10x16xf32, #tpu.memory_space<vmem>>, vector<10x1x16xf32>,
    %c0_11 = arith.constant 0 : index
    %c0_12 = arith.constant 0 : index
    %c0_13 = arith.constant 0 : index
    %c0_14 = arith.constant 0 : index
    %6 = vector.load %arg1[%c0_11, %c0_12, %c0_13, %c0_14] : memref<1x8x8x16xf32, #tpu.memory_space<vmem>>, vector<1x8x8x16xf32>
    %7 = vector.shape_cast %6 : vector<1x8x8x16xf32> to vector<8x8x16xf32>
    %c1 = arith.constant 1 : index
    %c1_15 = arith.constant 1 : index
    %c0_16 = arith.constant 0 : index
    %8 = vector.load %arg9[%c1, %c1_15, %c0_16] : memref<10x10x16xf32, #tpu.memory_space<vmem>>, vector<8x8x16xf32>
    tpu.vector_store %arg9[%c1, %c1_15, %c0_16], %7 {strides = array<i32>} : memref<10x10x16xf32, #tpu.memory_space<vmem>>, vector<8x8x16xf32>,
    %c0_17 = arith.constant 0 : index
    %c0_18 = arith.constant 0 : index
    %c0_19 = arith.constant 0 : index
    %9 = vector.load %arg9[%c0_17, %c0_18, %c0_19] : memref<10x10x16xf32, #tpu.memory_space<vmem>>, vector<10x10x16xf32>
    %cst_20 = arith.constant 0.000000e+00 : f32
    %10 = vector.broadcast %cst_20 : f32 to vector<64x128xf32>
    %11 = vector.extract_strided_slice %9 {offsets = [0, 0, 0], sizes = [8, 8, 16], strides = [1, 1, 1]} : vector<10x10x16xf32> to vector<8x8x16xf32>
    %12 = vector.shape_cast %11 : vector<8x8x16xf32> to vector<64x16xf32>
    %13 = arith.truncf %12 : vector<64x16xf32> to vector<64x16xbf16>
    %c0_21 = arith.constant 0 : index
    %c0_22 = arith.constant 0 : index
    %c0_23 = arith.constant 0 : index
    %14 = vector.load %arg2[%c0_21, %c0_22, %c0_23] : memref<9x16x128xbf16, #tpu.memory_space<vmem>>, vector<1x16x128xbf16>
    %15 = vector.shape_cast %14 : vector<1x16x128xbf16> to vector<16x128xbf16>
    %cst_24 = arith.constant dense<0.000000e+00> : vector<64x128xf32>
    %16 = tpu.matmul %13, %15, %cst_24 {dimension_numbers = #tpu.dot_dimension_numbers<[1], [0], [0], [1], [0, 0, 1, 1], [], []>} : vector<64x16xbf16>, vector<16x128xbf16>, vector<64x128xf32> -> vector<64x128xf32>
    %17 = arith.addf %10, %16 : vector<64x128xf32>
    %18 = vector.extract_strided_slice %9 {offsets = [0, 1, 0], sizes = [8, 8, 16], strides = [1, 1, 1]} : vector<10x10x16xf32> to vector<8x8x16xf32>
    %19 = vector.shape_cast %18 : vector<8x8x16xf32> to vector<64x16xf32>
    %20 = arith.truncf %19 : vector<64x16xf32> to vector<64x16xbf16>
    %c1_25 = arith.constant 1 : index
    %c0_26 = arith.constant 0 : index
    %c0_27 = arith.constant 0 : index
    %21 = vector.load %arg2[%c1_25, %c0_26, %c0_27] : memref<9x16x128xbf16, #tpu.memory_space<vmem>>, vector<1x16x128xbf16>
    %22 = vector.shape_cast %21 : vector<1x16x128xbf16> to vector<16x128xbf16>
    %cst_28 = arith.constant dense<0.000000e+00> : vector<64x128xf32>
    %23 = tpu.matmul %20, %22, %cst_28 {dimension_numbers = #tpu.dot_dimension_numbers<[1], [0], [0], [1], [0, 0, 1, 1], [], []>} : vector<64x16xbf16>, vector<16x128xbf16>, vector<64x128xf32> -> vector<64x128xf32>
    %24 = arith.addf %17, %23 : vector<64x128xf32>
    %25 = vector.extract_strided_slice %9 {offsets = [0, 2, 0], sizes = [8, 8, 16], strides = [1, 1, 1]} : vector<10x10x16xf32> to vector<8x8x16xf32>
    %26 = vector.shape_cast %25 : vector<8x8x16xf32> to vector<64x16xf32>
    %27 = arith.truncf %26 : vector<64x16xf32> to vector<64x16xbf16>
    %c2 = arith.constant 2 : index
    %c0_29 = arith.constant 0 : index
    %c0_30 = arith.constant 0 : index
    %28 = vector.load %arg2[%c2, %c0_29, %c0_30] : memref<9x16x128xbf16, #tpu.memory_space<vmem>>, vector<1x16x128xbf16>
    %29 = vector.shape_cast %28 : vector<1x16x128xbf16> to vector<16x128xbf16>
    %cst_31 = arith.constant dense<0.000000e+00> : vector<64x128xf32>
    %30 = tpu.matmul %27, %29, %cst_31 {dimension_numbers = #tpu.dot_dimension_numbers<[1], [0], [0], [1], [0, 0, 1, 1], [], []>} : vector<64x16xbf16>, vector<16x128xbf16>, vector<64x128xf32> -> vector<64x128xf32>
    %31 = arith.addf %24, %30 : vector<64x128xf32>
    %32 = vector.extract_strided_slice %9 {offsets = [1, 0, 0], sizes = [8, 8, 16], strides = [1, 1, 1]} : vector<10x10x16xf32> to vector<8x8x16xf32>
    %33 = vector.shape_cast %32 : vector<8x8x16xf32> to vector<64x16xf32>
    %34 = arith.truncf %33 : vector<64x16xf32> to vector<64x16xbf16>
    %c3 = arith.constant 3 : index
    %c0_32 = arith.constant 0 : index
    %c0_33 = arith.constant 0 : index
    %35 = vector.load %arg2[%c3, %c0_32, %c0_33] : memref<9x16x128xbf16, #tpu.memory_space<vmem>>, vector<1x16x128xbf16>
    %36 = vector.shape_cast %35 : vector<1x16x128xbf16> to vector<16x128xbf16>
    %cst_34 = arith.constant dense<0.000000e+00> : vector<64x128xf32>
    %37 = tpu.matmul %34, %36, %cst_34 {dimension_numbers = #tpu.dot_dimension_numbers<[1], [0], [0], [1], [0, 0, 1, 1], [], []>} : vector<64x16xbf16>, vector<16x128xbf16>, vector<64x128xf32> -> vector<64x128xf32>
    %38 = arith.addf %31, %37 : vector<64x128xf32>
    %39 = vector.extract_strided_slice %9 {offsets = [1, 1, 0], sizes = [8, 8, 16], strides = [1, 1, 1]} : vector<10x10x16xf32> to vector<8x8x16xf32>
    %40 = vector.shape_cast %39 : vector<8x8x16xf32> to vector<64x16xf32>
    %41 = arith.truncf %40 : vector<64x16xf32> to vector<64x16xbf16>
    %c4 = arith.constant 4 : index
    %c0_35 = arith.constant 0 : index
    %c0_36 = arith.constant 0 : index
    %42 = vector.load %arg2[%c4, %c0_35, %c0_36] : memref<9x16x128xbf16, #tpu.memory_space<vmem>>, vector<1x16x128xbf16>
    %43 = vector.shape_cast %42 : vector<1x16x128xbf16> to vector<16x128xbf16>
    %cst_37 = arith.constant dense<0.000000e+00> : vector<64x128xf32>
    %44 = tpu.matmul %41, %43, %cst_37 {dimension_numbers = #tpu.dot_dimension_numbers<[1], [0], [0], [1], [0, 0, 1, 1], [], []>} : vector<64x16xbf16>, vector<16x128xbf16>, vector<64x128xf32> -> vector<64x128xf32>
    %45 = arith.addf %38, %44 : vector<64x128xf32>
    %46 = vector.extract_strided_slice %9 {offsets = [1, 2, 0], sizes = [8, 8, 16], strides = [1, 1, 1]} : vector<10x10x16xf32> to vector<8x8x16xf32>
    %47 = vector.shape_cast %46 : vector<8x8x16xf32> to vector<64x16xf32>
    %48 = arith.truncf %47 : vector<64x16xf32> to vector<64x16xbf16>
    %c5 = arith.constant 5 : index
    %c0_38 = arith.constant 0 : index
    %c0_39 = arith.constant 0 : index
    %49 = vector.load %arg2[%c5, %c0_38, %c0_39] : memref<9x16x128xbf16, #tpu.memory_space<vmem>>, vector<1x16x128xbf16>
    %50 = vector.shape_cast %49 : vector<1x16x128xbf16> to vector<16x128xbf16>
    %cst_40 = arith.constant dense<0.000000e+00> : vector<64x128xf32>
    %51 = tpu.matmul %48, %50, %cst_40 {dimension_numbers = #tpu.dot_dimension_numbers<[1], [0], [0], [1], [0, 0, 1, 1], [], []>} : vector<64x16xbf16>, vector<16x128xbf16>, vector<64x128xf32> -> vector<64x128xf32>
    %52 = arith.addf %45, %51 : vector<64x128xf32>
    %53 = vector.extract_strided_slice %9 {offsets = [2, 0, 0], sizes = [8, 8, 16], strides = [1, 1, 1]} : vector<10x10x16xf32> to vector<8x8x16xf32>
    %54 = vector.shape_cast %53 : vector<8x8x16xf32> to vector<64x16xf32>
    %55 = arith.truncf %54 : vector<64x16xf32> to vector<64x16xbf16>
    %c6 = arith.constant 6 : index
    %c0_41 = arith.constant 0 : index
    %c0_42 = arith.constant 0 : index
    %56 = vector.load %arg2[%c6, %c0_41, %c0_42] : memref<9x16x128xbf16, #tpu.memory_space<vmem>>, vector<1x16x128xbf16>
    %57 = vector.shape_cast %56 : vector<1x16x128xbf16> to vector<16x128xbf16>
    %cst_43 = arith.constant dense<0.000000e+00> : vector<64x128xf32>
    %58 = tpu.matmul %55, %57, %cst_43 {dimension_numbers = #tpu.dot_dimension_numbers<[1], [0], [0], [1], [0, 0, 1, 1], [], []>} : vector<64x16xbf16>, vector<16x128xbf16>, vector<64x128xf32> -> vector<64x128xf32>
    %59 = arith.addf %52, %58 : vector<64x128xf32>
    %60 = vector.extract_strided_slice %9 {offsets = [2, 1, 0], sizes = [8, 8, 16], strides = [1, 1, 1]} : vector<10x10x16xf32> to vector<8x8x16xf32>
    %61 = vector.shape_cast %60 : vector<8x8x16xf32> to vector<64x16xf32>
    %62 = arith.truncf %61 : vector<64x16xf32> to vector<64x16xbf16>
    %c7 = arith.constant 7 : index
    %c0_44 = arith.constant 0 : index
    %c0_45 = arith.constant 0 : index
    %63 = vector.load %arg2[%c7, %c0_44, %c0_45] : memref<9x16x128xbf16, #tpu.memory_space<vmem>>, vector<1x16x128xbf16>
    %64 = vector.shape_cast %63 : vector<1x16x128xbf16> to vector<16x128xbf16>
    %cst_46 = arith.constant dense<0.000000e+00> : vector<64x128xf32>
    %65 = tpu.matmul %62, %64, %cst_46 {dimension_numbers = #tpu.dot_dimension_numbers<[1], [0], [0], [1], [0, 0, 1, 1], [], []>} : vector<64x16xbf16>, vector<16x128xbf16>, vector<64x128xf32> -> vector<64x128xf32>
    %66 = arith.addf %59, %65 : vector<64x128xf32>
    %67 = vector.extract_strided_slice %9 {offsets = [2, 2, 0], sizes = [8, 8, 16], strides = [1, 1, 1]} : vector<10x10x16xf32> to vector<8x8x16xf32>
    %68 = vector.shape_cast %67 : vector<8x8x16xf32> to vector<64x16xf32>
    %69 = arith.truncf %68 : vector<64x16xf32> to vector<64x16xbf16>
    %c8 = arith.constant 8 : index
    %c0_47 = arith.constant 0 : index
    %c0_48 = arith.constant 0 : index
    %70 = vector.load %arg2[%c8, %c0_47, %c0_48] : memref<9x16x128xbf16, #tpu.memory_space<vmem>>, vector<1x16x128xbf16>
    %71 = vector.shape_cast %70 : vector<1x16x128xbf16> to vector<16x128xbf16>
    %cst_49 = arith.constant dense<0.000000e+00> : vector<64x128xf32>
    %72 = tpu.matmul %69, %71, %cst_49 {dimension_numbers = #tpu.dot_dimension_numbers<[1], [0], [0], [1], [0, 0, 1, 1], [], []>} : vector<64x16xbf16>, vector<16x128xbf16>, vector<64x128xf32> -> vector<64x128xf32>
    %73 = arith.addf %66, %72 : vector<64x128xf32>
    %c0_50 = arith.constant 0 : index
    %c0_51 = arith.constant 0 : index
    %74 = vector.load %arg3[%c0_50, %c0_51] : memref<2x128xf32, #tpu.memory_space<vmem>>, vector<1x128xf32>
    %75 = vector.broadcast %74 : vector<1x128xf32> to vector<64x128xf32>
    %76 = arith.mulf %73, %75 : vector<64x128xf32>
    %c1_52 = arith.constant 1 : index
    %c0_53 = arith.constant 0 : index
    %77 = vector.load %arg3[%c1_52, %c0_53] : memref<2x128xf32, #tpu.memory_space<vmem>>, vector<1x128xf32>
    %78 = vector.broadcast %77 : vector<1x128xf32> to vector<64x128xf32>
    %79 = arith.addf %76, %78 : vector<64x128xf32>
    %cst_54 = arith.constant 0.000000e+00 : f32
    %80 = vector.broadcast %cst_54 : f32 to vector<64x128xf32>
    %81 = arith.maximumf %79, %80 : vector<64x128xf32>
    %cst_55 = arith.constant 0.000000e+00 : f32
    %82 = vector.broadcast %cst_55 : f32 to vector<1x10x128xf32>
    %cst_56 = arith.constant 0.000000e+00 : f32
    %83 = vector.broadcast %cst_56 : f32 to vector<10x1x128xf32>
    %c0_57 = arith.constant 0 : index
    %c0_58 = arith.constant 0 : index
    %c0_59 = arith.constant 0 : index
    %84 = vector.load %arg10[%c0_57, %c0_58, %c0_59] : memref<10x10x128xf32, #tpu.memory_space<vmem>>, vector<1x10x128xf32>
    tpu.vector_store %arg10[%c0_57, %c0_58, %c0_59], %82 {strides = array<i32>} : memref<10x10x128xf32, #tpu.memory_space<vmem>>, vector<1x10x128xf32>,
    %c9_60 = arith.constant 9 : index
    %c0_61 = arith.constant 0 : index
    %c0_62 = arith.constant 0 : index
    %85 = vector.load %arg10[%c9_60, %c0_61, %c0_62] : memref<10x10x128xf32, #tpu.memory_space<vmem>>, vector<1x10x128xf32>
    tpu.vector_store %arg10[%c9_60, %c0_61, %c0_62], %82 {strides = array<i32>} : memref<10x10x128xf32, #tpu.memory_space<vmem>>, vector<1x10x128xf32>,
    %c0_63 = arith.constant 0 : index
    %c0_64 = arith.constant 0 : index
    %c0_65 = arith.constant 0 : index
    %86 = vector.load %arg10[%c0_63, %c0_64, %c0_65] : memref<10x10x128xf32, #tpu.memory_space<vmem>>, vector<10x1x128xf32>
    tpu.vector_store %arg10[%c0_63, %c0_64, %c0_65], %83 {strides = array<i32>} : memref<10x10x128xf32, #tpu.memory_space<vmem>>, vector<10x1x128xf32>,
    %c0_66 = arith.constant 0 : index
    %c9_67 = arith.constant 9 : index
    %c0_68 = arith.constant 0 : index
    %87 = vector.load %arg10[%c0_66, %c9_67, %c0_68] : memref<10x10x128xf32, #tpu.memory_space<vmem>>, vector<10x1x128xf32>
    tpu.vector_store %arg10[%c0_66, %c9_67, %c0_68], %83 {strides = array<i32>} : memref<10x10x128xf32, #tpu.memory_space<vmem>>, vector<10x1x128xf32>,
    %88 = vector.shape_cast %81 : vector<64x128xf32> to vector<8x8x128xf32>
    %c1_69 = arith.constant 1 : index
    %c1_70 = arith.constant 1 : index
    %c0_71 = arith.constant 0 : index
    %89 = vector.load %arg10[%c1_69, %c1_70, %c0_71] : memref<10x10x128xf32, #tpu.memory_space<vmem>>, vector<8x8x128xf32>
    tpu.vector_store %arg10[%c1_69, %c1_70, %c0_71], %88 {strides = array<i32>} : memref<10x10x128xf32, #tpu.memory_space<vmem>>, vector<8x8x128xf32>,
    %c0_72 = arith.constant 0 : index
    %c0_73 = arith.constant 0 : index
    %c0_74 = arith.constant 0 : index
    %90 = vector.load %arg10[%c0_72, %c0_73, %c0_74] : memref<10x10x128xf32, #tpu.memory_space<vmem>>, vector<10x10x128xf32>
    %cst_75 = arith.constant 0.000000e+00 : f32
    %91 = vector.broadcast %cst_75 : f32 to vector<64x128xf32>
    %92 = vector.extract_strided_slice %90 {offsets = [0, 0, 0], sizes = [8, 8, 128], strides = [1, 1, 1]} : vector<10x10x128xf32> to vector<8x8x128xf32>
    %93 = vector.shape_cast %92 : vector<8x8x128xf32> to vector<64x128xf32>
    %94 = arith.truncf %93 : vector<64x128xf32> to vector<64x128xbf16>
    %c0_76 = arith.constant 0 : index
    %c0_77 = arith.constant 0 : index
    %c0_78 = arith.constant 0 : index
    %95 = vector.load %arg4[%c0_76, %c0_77, %c0_78] : memref<9x128x128xbf16, #tpu.memory_space<vmem>>, vector<1x128x128xbf16>
    %96 = vector.shape_cast %95 : vector<1x128x128xbf16> to vector<128x128xbf16>
    %cst_79 = arith.constant dense<0.000000e+00> : vector<64x128xf32>
    %97 = tpu.matmul %94, %96, %cst_79 {dimension_numbers = #tpu.dot_dimension_numbers<[1], [0], [0], [1], [0, 0, 1, 1], [], []>} : vector<64x128xbf16>, vector<128x128xbf16>, vector<64x128xf32> -> vector<64x128xf32>
    %98 = arith.addf %91, %97 : vector<64x128xf32>
    %99 = vector.extract_strided_slice %90 {offsets = [0, 1, 0], sizes = [8, 8, 128], strides = [1, 1, 1]} : vector<10x10x128xf32> to vector<8x8x128xf32>
    %100 = vector.shape_cast %99 : vector<8x8x128xf32> to vector<64x128xf32>
    %101 = arith.truncf %100 : vector<64x128xf32> to vector<64x128xbf16>
    %c1_80 = arith.constant 1 : index
    %c0_81 = arith.constant 0 : index
    %c0_82 = arith.constant 0 : index
    %102 = vector.load %arg4[%c1_80, %c0_81, %c0_82] : memref<9x128x128xbf16, #tpu.memory_space<vmem>>, vector<1x128x128xbf16>
    %103 = vector.shape_cast %102 : vector<1x128x128xbf16> to vector<128x128xbf16>
    %cst_83 = arith.constant dense<0.000000e+00> : vector<64x128xf32>
    %104 = tpu.matmul %101, %103, %cst_83 {dimension_numbers = #tpu.dot_dimension_numbers<[1], [0], [0], [1], [0, 0, 1, 1], [], []>} : vector<64x128xbf16>, vector<128x128xbf16>, vector<64x128xf32> -> vector<64x128xf32>
    %105 = arith.addf %98, %104 : vector<64x128xf32>
    %106 = vector.extract_strided_slice %90 {offsets = [0, 2, 0], sizes = [8, 8, 128], strides = [1, 1, 1]} : vector<10x10x128xf32> to vector<8x8x128xf32>
    %107 = vector.shape_cast %106 : vector<8x8x128xf32> to vector<64x128xf32>
    %108 = arith.truncf %107 : vector<64x128xf32> to vector<64x128xbf16>
    %c2_84 = arith.constant 2 : index
    %c0_85 = arith.constant 0 : index
    %c0_86 = arith.constant 0 : index
    %109 = vector.load %arg4[%c2_84, %c0_85, %c0_86] : memref<9x128x128xbf16, #tpu.memory_space<vmem>>, vector<1x128x128xbf16>
    %110 = vector.shape_cast %109 : vector<1x128x128xbf16> to vector<128x128xbf16>
    %cst_87 = arith.constant dense<0.000000e+00> : vector<64x128xf32>
    %111 = tpu.matmul %108, %110, %cst_87 {dimension_numbers = #tpu.dot_dimension_numbers<[1], [0], [0], [1], [0, 0, 1, 1], [], []>} : vector<64x128xbf16>, vector<128x128xbf16>, vector<64x128xf32> -> vector<64x128xf32>
    %112 = arith.addf %105, %111 : vector<64x128xf32>
    %113 = vector.extract_strided_slice %90 {offsets = [1, 0, 0], sizes = [8, 8, 128], strides = [1, 1, 1]} : vector<10x10x128xf32> to vector<8x8x128xf32>
    %114 = vector.shape_cast %113 : vector<8x8x128xf32> to vector<64x128xf32>
    %115 = arith.truncf %114 : vector<64x128xf32> to vector<64x128xbf16>
    %c3_88 = arith.constant 3 : index
    %c0_89 = arith.constant 0 : index
    %c0_90 = arith.constant 0 : index
    %116 = vector.load %arg4[%c3_88, %c0_89, %c0_90] : memref<9x128x128xbf16, #tpu.memory_space<vmem>>, vector<1x128x128xbf16>
    %117 = vector.shape_cast %116 : vector<1x128x128xbf16> to vector<128x128xbf16>
    %cst_91 = arith.constant dense<0.000000e+00> : vector<64x128xf32>
    %118 = tpu.matmul %115, %117, %cst_91 {dimension_numbers = #tpu.dot_dimension_numbers<[1], [0], [0], [1], [0, 0, 1, 1], [], []>} : vector<64x128xbf16>, vector<128x128xbf16>, vector<64x128xf32> -> vector<64x128xf32>
    %119 = arith.addf %112, %118 : vector<64x128xf32>
    %120 = vector.extract_strided_slice %90 {offsets = [1, 1, 0], sizes = [8, 8, 128], strides = [1, 1, 1]} : vector<10x10x128xf32> to vector<8x8x128xf32>
    %121 = vector.shape_cast %120 : vector<8x8x128xf32> to vector<64x128xf32>
    %122 = arith.truncf %121 : vector<64x128xf32> to vector<64x128xbf16>
    %c4_92 = arith.constant 4 : index
    %c0_93 = arith.constant 0 : index
    %c0_94 = arith.constant 0 : index
    %123 = vector.load %arg4[%c4_92, %c0_93, %c0_94] : memref<9x128x128xbf16, #tpu.memory_space<vmem>>, vector<1x128x128xbf16>
    %124 = vector.shape_cast %123 : vector<1x128x128xbf16> to vector<128x128xbf16>
    %cst_95 = arith.constant dense<0.000000e+00> : vector<64x128xf32>
    %125 = tpu.matmul %122, %124, %cst_95 {dimension_numbers = #tpu.dot_dimension_numbers<[1], [0], [0], [1], [0, 0, 1, 1], [], []>} : vector<64x128xbf16>, vector<128x128xbf16>, vector<64x128xf32> -> vector<64x128xf32>
    %126 = arith.addf %119, %125 : vector<64x128xf32>
    %127 = vector.extract_strided_slice %90 {offsets = [1, 2, 0], sizes = [8, 8, 128], strides = [1, 1, 1]} : vector<10x10x128xf32> to vector<8x8x128xf32>
    %128 = vector.shape_cast %127 : vector<8x8x128xf32> to vector<64x128xf32>
    %129 = arith.truncf %128 : vector<64x128xf32> to vector<64x128xbf16>
    %c5_96 = arith.constant 5 : index
    %c0_97 = arith.constant 0 : index
    %c0_98 = arith.constant 0 : index
    %130 = vector.load %arg4[%c5_96, %c0_97, %c0_98] : memref<9x128x128xbf16, #tpu.memory_space<vmem>>, vector<1x128x128xbf16>
    %131 = vector.shape_cast %130 : vector<1x128x128xbf16> to vector<128x128xbf16>
    %cst_99 = arith.constant dense<0.000000e+00> : vector<64x128xf32>
    %132 = tpu.matmul %129, %131, %cst_99 {dimension_numbers = #tpu.dot_dimension_numbers<[1], [0], [0], [1], [0, 0, 1, 1], [], []>} : vector<64x128xbf16>, vector<128x128xbf16>, vector<64x128xf32> -> vector<64x128xf32>
    %133 = arith.addf %126, %132 : vector<64x128xf32>
    %134 = vector.extract_strided_slice %90 {offsets = [2, 0, 0], sizes = [8, 8, 128], strides = [1, 1, 1]} : vector<10x10x128xf32> to vector<8x8x128xf32>
    %135 = vector.shape_cast %134 : vector<8x8x128xf32> to vector<64x128xf32>
    %136 = arith.truncf %135 : vector<64x128xf32> to vector<64x128xbf16>
    %c6_100 = arith.constant 6 : index
    %c0_101 = arith.constant 0 : index
    %c0_102 = arith.constant 0 : index
    %137 = vector.load %arg4[%c6_100, %c0_101, %c0_102] : memref<9x128x128xbf16, #tpu.memory_space<vmem>>, vector<1x128x128xbf16>
    %138 = vector.shape_cast %137 : vector<1x128x128xbf16> to vector<128x128xbf16>
    %cst_103 = arith.constant dense<0.000000e+00> : vector<64x128xf32>
    %139 = tpu.matmul %136, %138, %cst_103 {dimension_numbers = #tpu.dot_dimension_numbers<[1], [0], [0], [1], [0, 0, 1, 1], [], []>} : vector<64x128xbf16>, vector<128x128xbf16>, vector<64x128xf32> -> vector<64x128xf32>
    %140 = arith.addf %133, %139 : vector<64x128xf32>
    %141 = vector.extract_strided_slice %90 {offsets = [2, 1, 0], sizes = [8, 8, 128], strides = [1, 1, 1]} : vector<10x10x128xf32> to vector<8x8x128xf32>
    %142 = vector.shape_cast %141 : vector<8x8x128xf32> to vector<64x128xf32>
    %143 = arith.truncf %142 : vector<64x128xf32> to vector<64x128xbf16>
    %c7_104 = arith.constant 7 : index
    %c0_105 = arith.constant 0 : index
    %c0_106 = arith.constant 0 : index
    %144 = vector.load %arg4[%c7_104, %c0_105, %c0_106] : memref<9x128x128xbf16, #tpu.memory_space<vmem>>, vector<1x128x128xbf16>
    %145 = vector.shape_cast %144 : vector<1x128x128xbf16> to vector<128x128xbf16>
    %cst_107 = arith.constant dense<0.000000e+00> : vector<64x128xf32>
    %146 = tpu.matmul %143, %145, %cst_107 {dimension_numbers = #tpu.dot_dimension_numbers<[1], [0], [0], [1], [0, 0, 1, 1], [], []>} : vector<64x128xbf16>, vector<128x128xbf16>, vector<64x128xf32> -> vector<64x128xf32>
    %147 = arith.addf %140, %146 : vector<64x128xf32>
    %148 = vector.extract_strided_slice %90 {offsets = [2, 2, 0], sizes = [8, 8, 128], strides = [1, 1, 1]} : vector<10x10x128xf32> to vector<8x8x128xf32>
    %149 = vector.shape_cast %148 : vector<8x8x128xf32> to vector<64x128xf32>
    %150 = arith.truncf %149 : vector<64x128xf32> to vector<64x128xbf16>
    %c8_108 = arith.constant 8 : index
    %c0_109 = arith.constant 0 : index
    %c0_110 = arith.constant 0 : index
    %151 = vector.load %arg4[%c8_108, %c0_109, %c0_110] : memref<9x128x128xbf16, #tpu.memory_space<vmem>>, vector<1x128x128xbf16>
    %152 = vector.shape_cast %151 : vector<1x128x128xbf16> to vector<128x128xbf16>
    %cst_111 = arith.constant dense<0.000000e+00> : vector<64x128xf32>
    %153 = tpu.matmul %150, %152, %cst_111 {dimension_numbers = #tpu.dot_dimension_numbers<[1], [0], [0], [1], [0, 0, 1, 1], [], []>} : vector<64x128xbf16>, vector<128x128xbf16>, vector<64x128xf32> -> vector<64x128xf32>
    %154 = arith.addf %147, %153 : vector<64x128xf32>
    %c0_112 = arith.constant 0 : index
    %c0_113 = arith.constant 0 : index
    %155 = vector.load %arg5[%c0_112, %c0_113] : memref<2x128xf32, #tpu.memory_space<vmem>>, vector<1x128xf32>
    %156 = vector.broadcast %155 : vector<1x128xf32> to vector<64x128xf32>
    %157 = arith.mulf %154, %156 : vector<64x128xf32>
    %c1_114 = arith.constant 1 : index
    %c0_115 = arith.constant 0 : index
    %158 = vector.load %arg5[%c1_114, %c0_115] : memref<2x128xf32, #tpu.memory_space<vmem>>, vector<1x128xf32>
    %159 = vector.broadcast %158 : vector<1x128xf32> to vector<64x128xf32>
    %160 = arith.addf %157, %159 : vector<64x128xf32>
    %cst_116 = arith.constant 0.000000e+00 : f32
    %161 = vector.broadcast %cst_116 : f32 to vector<64x128xf32>
    %162 = arith.maximumf %160, %161 : vector<64x128xf32>
    %163 = vector.shape_cast %162 : vector<64x128xf32> to vector<8x8x128xf32>
    %164 = arith.truncf %163 : vector<8x8x128xf32> to vector<8x8x128xbf16>
    %c0_117 = arith.constant 0 : index
    %c0_118 = arith.constant 0 : index
    %165 = vector.load %arg7[%c0_117, %c0_118] : memref<32x8xbf16, #tpu.memory_space<vmem>>, vector<32x8xbf16>
    %166 = vector.shape_cast %165 : vector<32x8xbf16> to vector<1x32x8xbf16>
    %167 = vector.broadcast %166 : vector<1x32x8xbf16> to vector<8x32x8xbf16>
    "tpu.trace_start"() <{level = 10 : i32, message = "hpw,hwc->hpc"}> : () -> ()
    %cst_119 = arith.constant dense<0.000000e+00> : vector<8x32x128xf32>
    %168 = tpu.matmul %167, %164, %cst_119 {dimension_numbers = #tpu.dot_dimension_numbers<[2], [1], [1], [2], [0, 0, 0, 1, 1, 2], [0], [0]>} : vector<8x32x8xbf16>, vector<8x8x128xbf16>, vector<8x32x128xf32> -> vector<8x32x128xf32>
    "tpu.trace_stop"() : () -> ()
    %169 = vector.shape_cast %168 : vector<8x32x128xf32> to vector<8x4096xf32>
    %170 = arith.truncf %169 : vector<8x4096xf32> to vector<8x4096xbf16>
    %c0_120 = arith.constant 0 : index
    %c0_121 = arith.constant 0 : index
    %171 = vector.load %arg6[%c0_120, %c0_121] : memref<32x8xbf16, #tpu.memory_space<vmem>>, vector<32x8xbf16>
    %cst_122 = arith.constant dense<0.000000e+00> : vector<32x4096xf32>
    %172 = tpu.matmul %171, %170, %cst_122 {dimension_numbers = #tpu.dot_dimension_numbers<[1], [0], [0], [1], [0, 0, 1, 1], [], []>} : vector<32x8xbf16>, vector<8x4096xbf16>, vector<32x4096xf32> -> vector<32x4096xf32>
    %c0_123 = arith.constant 0 : index
    %c0_124 = arith.constant 0 : index
    %c0_125 = arith.constant 0 : index
    %173 = vector.load %arg8[%c0_123, %c0_124, %c0_125] : memref<1x32x4096xf32, #tpu.memory_space<vmem>>, vector<1x32x4096xf32>
    %174 = vector.shape_cast %173 : vector<1x32x4096xf32> to vector<32x4096xf32>
    %175 = vector.shape_cast %172 : vector<32x4096xf32> to vector<1x32x4096xf32>
    tpu.vector_store %arg8[%c0_123, %c0_124, %c0_125], %175 {strides = array<i32>} : memref<1x32x4096xf32, #tpu.memory_space<vmem>>, vector<1x32x4096xf32>,
    return
  }
  func.func @transform_0(%arg0: i32) -> (i32, i32, i32, i32) {
    %c0_i32 = arith.constant 0 : i32
    %c0_i32_0 = arith.constant 0 : i32
    %c0_i32_1 = arith.constant 0 : i32
    %c0_i32_2 = arith.constant 0 : i32
    return %arg0, %c0_i32, %c0_i32_0, %c0_i32_1 : i32, i32, i32, i32
  }
  func.func @transform_1(%arg0: i32) -> (i32, i32, i32) {
    %c0_i32 = arith.constant 0 : i32
    %c0_i32_0 = arith.constant 0 : i32
    %c0_i32_1 = arith.constant 0 : i32
    %c0_i32_2 = arith.constant 0 : i32
    return %c0_i32, %c0_i32_0, %c0_i32_1 : i32, i32, i32
  }
  func.func @transform_2(%arg0: i32) -> (i32, i32) {
    %c0_i32 = arith.constant 0 : i32
    %c0_i32_0 = arith.constant 0 : i32
    %c0_i32_1 = arith.constant 0 : i32
    return %c0_i32, %c0_i32_0 : i32, i32
  }
  func.func @transform_3(%arg0: i32) -> (i32, i32, i32) {
    %c0_i32 = arith.constant 0 : i32
    %c0_i32_0 = arith.constant 0 : i32
    %c0_i32_1 = arith.constant 0 : i32
    %c0_i32_2 = arith.constant 0 : i32
    return %c0_i32, %c0_i32_0, %c0_i32_1 : i32, i32, i32
  }
  func.func @transform_4(%arg0: i32) -> (i32, i32) {
    %c0_i32 = arith.constant 0 : i32
    %c0_i32_0 = arith.constant 0 : i32
    %c0_i32_1 = arith.constant 0 : i32
    return %c0_i32, %c0_i32_0 : i32, i32
  }
  func.func @transform_5(%arg0: i32) -> (i32, i32) {
    %c0_i32 = arith.constant 0 : i32
    %c0_i32_0 = arith.constant 0 : i32
    %c0_i32_1 = arith.constant 0 : i32
    return %c0_i32, %c0_i32_0 : i32, i32
  }
  func.func @transform_6(%arg0: i32) -> (i32, i32) {
    %c0_i32 = arith.constant 0 : i32
    %c0_i32_0 = arith.constant 0 : i32
    %c0_i32_1 = arith.constant 0 : i32
    return %c0_i32, %c0_i32_0 : i32, i32
  }
  func.func @transform_7(%arg0: i32) -> (i32, i32, i32) {
    %c0_i32 = arith.constant 0 : i32
    %c0_i32_0 = arith.constant 0 : i32
    %c0_i32_1 = arith.constant 0 : i32
    return %arg0, %c0_i32, %c0_i32_0 : i32, i32, i32
  }
}

</mosaic_0001>

<bundles_post_ra>
// kernel: tpu_custom_call.1
= control target key start
LH: loop header
LB: loop body
LE: loop exit
PB: predicated region body
PF: predicated region fallthrough
CT: control target
= control target key end

     0   :  { %s7438_s0 = inlined_call_operand.hbm [shape: f32[2,8,8,16], index: 0, kind: input, shape index: {}]   ;;  %s7439_s1 = inlined_call_operand.hbm [shape: bf16[9,16,128], index: 1, kind: input, shape index: {}]   ;;  %s7440_s2 = inlined_call_operand.vmem [shape: f32[2,128], index: 2, kind: input, shape index: {}]   ;;  %s7441_s3 = inlined_call_operand.hbm [shape: bf16[9,128,128], index: 3, kind: input, shape index: {}]   ;;  %s7442_s4 = inlined_call_operand.vmem [shape: f32[2,128], index: 4, kind: input, shape index: {}]   ;;  %s7443_s5 = inlined_call_operand.vmem [shape: bf16[32,8], index: 5, kind: input, shape index: {}]   ;;  %s7444_s6 = inlined_call_operand.vmem [shape: bf16[32,8], index: 6, kind: input, shape index: {}]   ;;  %s7445_s7 = inlined_call_operand.hbm [shape: f32[2,32,4096], index: 7, kind: output, shape index: {}]  }
   0x1   :  { %7454 = sst [smem:[#allocation21_spill]] %s7439_s1 }
   0x2   :  { %12 = vsyncpa [#allocation5], 0 }
   0x3   :  { %14 = vsyncpa [#allocation5 + $0x1], 0 }
   0x4   :  { %15 = vsyncpa [#allocation8], 0 }
   0x5   :  { %16 = vsyncpa [#allocation6], 0 }
   0x6   :  { %18 = vsyncpa [#allocation6 + $0x1], 0  ;;  %s6131_s24 = smov 0   ;;  %s6133_s25 = smov 0  }
   0x7   :  { %s6135_s26 = smov 0   ;;  %s6137_s27 = smov 0  }
   0x8 LB: > { %s6152_s28 = sadd.s32 4294967295, %s6075_s27   ;;  %s5017_s29 = sadd.s32 4294967294, %s6075_s27   ;;  %s6075_s27 = sphi %s6137_s27, %s7499_s27   ;;  %s6071_s26 = sphi %s6135_s26, %s7498_s26   ;;  %s6067_s25 = sphi %s6133_s25, %s7497_s25   ;;  %s6063_s24 = sphi %s6131_s24, %s7496_s24  }
   0x9   : > { %p44_p0 = scmp.ne.s32.totalorder %s6067_s25, %s6063_s24  ;;  %p7446_p1 = scmp.eq.s32.totalorder %s6152_s28, 0 }
   0xa   : > { %p200_p3 = scmp.eq.s32.totalorder %s5017_s29, 1  ;;  %p5018_p5 = scmp.ge.s32.totalorder %s6075_s27, 1 }
   0xb   : > { %p6161_p4 = por %p7446_p1, %p44_p0  ;;  %p207_p7 = scmp.lt.s32.totalorder %s6075_s27, 3 }
   0xc   : > { %p6166_p6 = por %p200_p3, %p44_p0  ;;  %s6077_s10 = smov [#allocation7]  }
   0xd   : > { %s7455_s30 = scalar_select %p6161_p4, 1, 0 }
   0xe   : > { %s7456_s8 = scalar_select %p6166_p6, 1, 0 }
   0xf   : > { %p6171_p8 = pnand %p5018_p5, %p207_p7  ;;  %s219_s11 = sshll.u32 %s6077_s10, 4  ;;  %s220_s11 = int_to_ptr.vmem [resolvable:$true] %s219_s11 }
  0x10   : > { %s6078_s13 = smov [#allocation9]   ;;  %s5938_s15 = scalar_lea.vmem %s220_s11, 1152 }
  0x11   : > { %s7457_s9 = scalar_select %p6171_p8, 1, 0 }
  0x12   : > { %p5777_p9 = pneg %p6171_p8  ;;  %s235_s14 = sshll.u32 %s6078_s13, 4  ;;  %s236_s14 = int_to_ptr.vmem [resolvable:$true] %s235_s14 }
  0x13   : > { %p5939_p13 = scmp.ne.s32.totalorder %s220_s11, %s5938_s15  ;;  %p5946_p5 = scmp.lt.s32.totalorder %s220_s11, %s220_s11 }
  0x14   : > { %p6180_p11 = pnand %p5777_p9, %p7446_p1  ;;  %p5947_p7 = scmp.lt.s32.totalorder %s5938_s15, %s5938_s15 }
  0x16   : > { %p5929_p12 = pneg %p6180_p11  ;;  %p5948_p10 = por %p5947_p7, %p5946_p5 }
  0x18   : > { %p5941_p0 = pnand %p5939_p13, %p5929_p12 }
  0x1a   : > { %p5942_p3 = pneg %p5941_p0 }
  0x1c   : > { %p5949_p9 = pnand %p5948_p10, %p5942_p3 }
  0x1e   : > { %5952 = shalt.err (!%p5949_p9)
}
  0x1f   : > { %s6079_s16 = smov 64   ;;  %s6080_s17 = smov 4  }
  0x20   : > { %s7459_s1 = sld [smem:[#allocation21_spill]]  ;;  %s5964_s20 = scalar_lea.vmem %s236_s14, 9216 }
  0x21   : > { %p5965_p1 = scmp.ne.s32.totalorder %s236_s14, %s5964_s20  ;;  %p5972_p2 = scmp.lt.s32.totalorder %s236_s14, %s236_s14 }
  0x22   : > { %p5973_p6 = scmp.lt.s32.totalorder %s5964_s20, %s5964_s20 }
  0x23   : > { %p5967_p13 = pnand %p5965_p1, %p5929_p12 }
  0x24   : > { %p5974_p5 = por %p5973_p6, %p5972_p2 }
  0x25   : > { %p5968_p0 = pneg %p5967_p13 }
  0x26   : > { %5780 = dma.hbm_to_vmem [thread:$0]  (!%p6180_p11), %s7459_s1, 1152, %s220_s11, [#allocation8], %s6079_s16, %s6079_s16, %s6080_s17  }
  0x27   : > { %p5975_p10 = pnand %p5974_p5, %p5968_p0 }
  0x29   : > { %5978 = shalt.err (!%p5975_p10)
}
  0x2a   : > { %5783 = dma.hbm_to_vmem [thread:$0]  (!%p6180_p11), %s7441_s3, 9216, %s236_s14, [#allocation8], %s6079_s16, %s6079_s16, %s6080_s17  }
  0x2b   : > { %s6203_s23 = sadd.s32 1, %s6075_s27   ;;  %s31_s29 = sadd.s32 1, %s6071_s26 }
  0x2c   : > { %s28_s10 = ssub.s32 %s6075_s27, %s6203_s23  ;;  %p38_p1 = scmp.ne.s32.totalorder %s6071_s26, %s6067_s25 }
  0x2d   : > { %p29_p2 = scmp.eq.s32.totalorder %s28_s10, 0  ;;  %p39_p6 = scmp.eq.s32.totalorder %s6075_s27, 0 }
  0x2e   : > { %p7460_p12 = scmp.eq.s32.totalorder %s6152_s28, 1  ;;  %p5794_p7 = scmp.lt.s32.totalorder %s6075_s27, 2 }
  0x2f   : > { %s6219_s12 = scalar_select %p29_p2, %s6071_s26, %s31_s29  }
  0x30   : > { %p6213_p3 = por %p7460_p12, %p38_p1  ;;  %p40_p9 = por %p39_p6, %p38_p1 }
  0x31   : > { %s258_s13 = sand.u32 1, %s6071_s26   ;;  %s5224_s14 = sshll.u32 %s6075_s27, 10 }
  0x32   : > { %s7461_s11 = scalar_select %p6213_p3, 1, 0 }
  0x33   : > { %s5022_s15 = sshll.u32 %s258_s13, 6  ;;  %s6226_s18 = scalar_lea.hbm %s7438_s0, %s5224_s14 }
  0x34   : > { %s262_s19 = scalar_lea.vmem [#allocation4], %s5022_s15  ;;  %p6230_p11 = pnand %p5794_p7, %p40_p9 }
  0x35   : > { %s269_s20 = sshll.u32 %s262_s19, 4  ;;  %s6234_s22 = scalar_lea.sflag [#allocation5], %s258_s13  ;;  %s6228_s20 = int_to_ptr.vmem [resolvable:$true] %s269_s20 }
  0x36   : > { %s5979_s29 = scalar_lea.hbm %s6226_s18, 1024  ;;  %p5981_p0 = pneg %p6230_p11 }
  0x37   : > { %p5980_p13 = scmp.ne.s32.totalorder %s6226_s18, %s5979_s29  ;;  %s5984_s15 = scalar_lea.hbm %s7438_s0, 2048 }
  0x38   : > { %p5985_p1 = scmp.lt.s32.totalorder %s6226_s18, %s7438_s0  ;;  %p5986_p2 = scmp.lt.s32.totalorder %s5984_s15, %s5979_s29 }
  0x39   : > { %p5982_p5 = pnand %p5981_p0, %p5980_p13 }
  0x3a   : > { %p5987_p6 = por %p5986_p2, %p5985_p1 }
  0x3b   : > { %p5983_p10 = pneg %p5982_p5 }
  0x3d   : > { %p5988_p12 = pnand %p5987_p6, %p5983_p10 }
  0x3f   : > { %5991 = shalt.err (!%p5988_p12)
}
  0x40   : > { %s5992_s13 = scalar_lea.vmem %s6228_s20, 1024  ;;  %s6081_s19 = smov [#allocation4]  }
  0x41   : > { %p5993_p7 = scmp.ne.s32.totalorder %s6228_s20, %s5992_s13  ;;  %s5997_s1 = sshll.u32 %s6081_s19, 4  ;;  %s5998_s1 = int_to_ptr.vmem [resolvable:$false] %s5997_s1 }
  0x42   : > { %s5999_s10 = scalar_lea.vmem %s5998_s1, 2048  ;;  %p6000_p5 = scmp.lt.s32.totalorder %s6228_s20, %s5998_s1 }
  0x43   : > { %p5995_p9 = pnand %p5993_p7, %p5981_p0  ;;  %p6001_p3 = scmp.lt.s32.totalorder %s5999_s10, %s5992_s13 }
  0x45   : > { %p5996_p13 = pneg %p5995_p9  ;;  %p6002_p4 = por %p6001_p3, %p6000_p5 }
  0x47   : > { %p6003_p8 = pnand %p6002_p4, %p5996_p13 }
  0x49   : > { %6006 = shalt.err (!%p6003_p8)
}
  0x4a   : > { %s6082_s29 = smov 128   ;;  %s6083_s14 = smov 8  }
  0x4b   : > { %5787 = dma.hbm_to_vmem [thread:$0]  (!%p6230_p11), %s6226_s18, 1024, %s6228_s20, %s6234_s22, %s6082_s29, %s6082_s29, %s6083_s14  }
  0x4c   : > { %p7463_p0 = scmp.ne.s32.totalorder %s7457_s9, 0 }
  0x4e   : > { %281 = sbr.rel (%p7463_p0) target bundleno = 1330 (0x532), region = 48 }
  0x53   : > { %s6258_s15 = sand.u32 1, %s6067_s25   ;;  %p7464_p4 = scmp.ne.s32.totalorder %s7455_s30, 0 }
  0x54   : > { %s5026_s1 = sshll.u32 %s6258_s15, 6  ;;  %s284_s16 = scalar_lea.sflag [#allocation5], %s6258_s15 }
  0x55   : > { %s6262_s17 = scalar_lea.vmem [#allocation4], %s5026_s1 }
  0x56   : > { %6050 = dma.done.wait (%p7464_p4), %s284_s16, 1024  }
  0x57   : > { %6052 = vsyncadd (%p7464_p4), %s284_s16, 4294966272  ;;  %p7465_p8 = scmp.eq.s32.totalorder %s6152_s28, 0 }
  0x59   : > { %6054 = dma.done.wait (%p7465_p8), [#allocation8], 10368   ;;  %p7466_p3 = pmov %p7465_p8 }
  0x5a   : > { %vm327_vm0 = vcmask 130048   ;;  %vm329_vm1 = vcmask 123904   ;;  %vm334_vm2 = vcmask 122880   ;;  %v6084_v0 = vmov 0.0   ;;  %v5842_v1 = vld [vmem:[#allocation7 + $0x8] sm:$0xff]   ;;  %v5843_v2 = vld [vmem:[#allocation7] sm:$0xff]  }
  0x5b   : > { %6056 = vsyncadd (%p7466_p3), [#allocation8], 4294956928  ;;  %328 = vst.msk [vmem:[#allocation2] sm:$0xff] %vm327_vm0, %v6084_v0  ;;  %5403 = vmatprep.subr.bf16.mxu0 %v5842_v1  ;;  %v355_v3 = vld [vmem:[%s6262_s17] sm:$0xff]  ;;  %v356_v4 = vld [vmem:[%s6262_s17 + $0x8] sm:$0xff]  ;;  %5413 = vmatprep.subr.bf16.mxu1 %v5843_v2  ;;  %vm414_vm3 = vcmask 1046528  }
  0x5c   : > { %330 = vst.msk [vmem:[#allocation2 + $0x8] sm:$0x3] %vm329_vm1, %v6084_v0  ;;  %333 = vst.msk [vmem:[#allocation2 + $0x98] sm:$0x3] %vm329_vm1, %v6084_v0  ;;  %v357_v5 = vld [vmem:[%s6262_s17 + $0x10] sm:$0xff]  ;;  %5404 = vmatpush3.bf16.msra.mxu0 %v5842_v1  ;;  %v358_v6 = vld [vmem:[%s6262_s17 + $0x18] sm:$0xff]  ;;  %5414 = vmatpush3.bf16.msra.mxu1 %v5843_v2 }
  0x5d   : > { %336 = vst.msk [vmem:[#allocation2 + $0x10] sm:$0x1] %vm334_vm2, %v6084_v0  ;;  %337 = vst.msk [vmem:[#allocation2 + $0x20] sm:$0x1] %vm334_vm2, %v6084_v0  ;;  %v359_v9 = vld [vmem:[%s6262_s17 + $0x20] sm:$0xff]  ;;  %v360_v10 = vld [vmem:[%s6262_s17 + $0x28] sm:$0xff] }
  0x5e   : > { %338 = vst.msk [vmem:[#allocation2 + $0x30] sm:$0x1] %vm334_vm2, %v6084_v0  ;;  %339 = vst.msk [vmem:[#allocation2 + $0x40] sm:$0x1] %vm334_vm2, %v6084_v0  ;;  %v361_v11 = vld [vmem:[%s6262_s17 + $0x30] sm:$0xff]  ;;  %v5845_v15 = vld [vmem:[#allocation7 + $0x18] sm:$0xff]  }
  0x5f   : > { %346 = vst.msk [vmem:[#allocation2 + $0x19] sm:$0x1] %vm334_vm2, %v6084_v0  ;;  %347 = vst.msk [vmem:[#allocation2 + $0x29] sm:$0x1] %vm334_vm2, %v6084_v0  ;;  %v6308_v12 = vld [vmem:[#allocation7 + $0x10] sm:$0xff]   ;;  %v362_v16 = vld [vmem:[%s6262_s17 + $0x38] sm:$0xff]  ;;  %5433 = vmatprep.subr.bf16.mxu1 %v5845_v15 }
  0x60   : > { %348 = vst.msk [vmem:[#allocation2 + $0x39] sm:$0x1] %vm334_vm2, %v6084_v0  ;;  %349 = vst.msk [vmem:[#allocation2 + $0x49] sm:$0x1] %vm334_vm2, %v6084_v0  ;;  %5423 = vmatprep.subr.bf16.mxu0 %v6308_v12  ;;  %vm620_vm4 = vcmask 1045504   ;;  %v6319_v22 = vld [vmem:[#allocation7 + $0x28] sm:$0xff]  }
  0x61   : > { %332 = vst.msk [vmem:[#allocation2 + $0x90] sm:$0xff] %vm327_vm0, %v6084_v0  ;;  %1357 = vst [vmem:[#allocation3] sm:$0xff] %v6084_v0  ;;  %v6364_v47 = vld [vmem:[#allocation7 + $0x20] sm:$0xff]   ;;  %vm2819_vm5 = vcmask 64512   ;;  %vm2826_vm6 = vcmask 1043456   ;;  %s5029_s18 = sshll.u32 %s6258_s15, 10 }
  0x62   : > { %340 = vst.msk [vmem:[#allocation2 + $0x50] sm:$0x1] %vm334_vm2, %v6084_v0  ;;  %341 = vst.msk [vmem:[#allocation2 + $0x60] sm:$0x1] %vm334_vm2, %v6084_v0  ;;  %s7258_s20 = scalar_lea.vmem [#allocation10], %s5029_s18  ;;  %s5225_s21 = sshll.u32 %s6152_s28, 14 }
  0x63   : > { %342 = vst.msk [vmem:[#allocation2 + $0x70] sm:$0x1] %vm334_vm2, %v6084_v0  ;;  %343 = vst.msk [vmem:[#allocation2 + $0x80] sm:$0x1] %vm334_vm2, %v6084_v0  ;;  %s4925_s22 = sshll.u32 %s7258_s20, 4  ;;  %s7389_s10 = scalar_lea.hbm %s7445_s7, %s5225_s21  ;;  %s7391_s22 = int_to_ptr.vmem [resolvable:$true] %s4925_s22 }
  0x64   : > { %350 = vst.msk [vmem:[#allocation2 + $0x59] sm:$0x1] %vm334_vm2, %v6084_v0  ;;  %351 = vst.msk [vmem:[#allocation2 + $0x69] sm:$0x1] %vm334_vm2, %v6084_v0  ;;  %s4912_s28 = scalar_lea.sflag [#allocation6], %s6258_s15  ;;  %s6007_s29 = scalar_lea.vmem %s7391_s22, 16384 }
  0x65   : > { %352 = vst.msk [vmem:[#allocation2 + $0x79] sm:$0x1] %vm334_vm2, %v6084_v0  ;;  %353 = vst.msk [vmem:[#allocation2 + $0x89] sm:$0x1] %vm334_vm2, %v6084_v0  ;;  %p6008_p11 = scmp.ne.s32.totalorder %s7391_s22, %s6007_s29  ;;  %p7493_p10 = scmp.ne.s32.totalorder %s7461_s11, 0 }
  0x66   : > { %1358 = vst [vmem:[#allocation3 + $0x8] sm:$0x3] %v6084_v0  ;;  %1360 = vst [vmem:[#allocation3 + $0x90] sm:$0xff] %v6084_v0  ;;  %s6088_s14 = smov [#allocation10]  }
  0x67   : > { %1361 = vst [vmem:[#allocation3 + $0x98] sm:$0x3] %v6084_v0  ;;  %1363 = vst [vmem:[#allocation3 + $0x10] sm:$0x1] %v6084_v0  ;;  %p6009_p1 = pnand %p6008_p11, %p7493_p10  ;;  %s6011_s1 = sshll.u32 %s6088_s14, 4  ;;  %s6012_s1 = int_to_ptr.vmem [resolvable:$false] %s6011_s1 }
  0x68   : > { %1364 = vst [vmem:[#allocation3 + $0x20] sm:$0x1] %v6084_v0  ;;  %1365 = vst [vmem:[#allocation3 + $0x30] sm:$0x1] %v6084_v0  ;;  %s6013_s16 = scalar_lea.vmem %s6012_s1, 32768  ;;  %p6014_p6 = scmp.lt.s32.totalorder %s7391_s22, %s6012_s1 }
  0x69   : > { %1366 = vst [vmem:[#allocation3 + $0x40] sm:$0x1] %v6084_v0  ;;  %1367 = vst [vmem:[#allocation3 + $0x50] sm:$0x1] %v6084_v0  ;;  %p6010_p2 = pneg %p6009_p1  ;;  %p6015_p12 = scmp.lt.s32.totalorder %s6013_s16, %s6007_s29 }
  0x6a   : > { %1368 = vst [vmem:[#allocation3 + $0x60] sm:$0x1] %v6084_v0  ;;  %1369 = vst [vmem:[#allocation3 + $0x70] sm:$0x1] %v6084_v0 }
  0x6b   : > { %1370 = vst [vmem:[#allocation3 + $0x80] sm:$0x1] %v6084_v0  ;;  %1373 = vst [vmem:[#allocation3 + $0x19] sm:$0x1] %v6084_v0  ;;  %p6016_p7 = por %p6015_p12, %p6014_p6 }
  0x6c   : > { %1374 = vst [vmem:[#allocation3 + $0x29] sm:$0x1] %v6084_v0  ;;  %1375 = vst [vmem:[#allocation3 + $0x39] sm:$0x1] %v6084_v0 }
  0x6d   : > { %1376 = vst [vmem:[#allocation3 + $0x49] sm:$0x1] %v6084_v0  ;;  %1377 = vst [vmem:[#allocation3 + $0x59] sm:$0x1] %v6084_v0  ;;  %p6017_p9 = pnand %p6016_p7, %p6010_p2 }
  0x6e   : > { %1378 = vst [vmem:[#allocation3 + $0x69] sm:$0x1] %v6084_v0  ;;  %1379 = vst [vmem:[#allocation3 + $0x79] sm:$0x1] %v6084_v0 }
  0x6f   : > { %1380 = vst [vmem:[#allocation3 + $0x89] sm:$0x1] %v6084_v0  ;;  %335 = vst.msk [vmem:[#allocation2] sm:$0x1] %vm334_vm2, %v6084_v0 }
  0x70   : > { %345 = vst.msk [vmem:[#allocation2 + $0x9] sm:$0x1] %vm334_vm2, %v6084_v0  ;;  %354 = vst.msk [vmem:[#allocation2 + $0x99] sm:$0x1] %vm334_vm2, %v6084_v0 }
  0x71   : > { %344 = vst.msk [vmem:[#allocation2 + $0x90] sm:$0x1] %vm334_vm2, %v6084_v0  ;;  %1362 = vst [vmem:[#allocation3] sm:$0x1] %v6084_v0 }
  0x72   : > { %1371 = vst [vmem:[#allocation3 + $0x90] sm:$0x1] %v6084_v0  ;;  %1372 = vst [vmem:[#allocation3 + $0x9] sm:$0x1] %v6084_v0 }
  0x73   : > { %1381 = vst [vmem:[#allocation3 + $0x99] sm:$0x1] %v6084_v0  ;;  %364 = vst.msk [vmem:[#allocation2 + $0x11] sm:$0xff] %vm327_vm0, %v355_v3 }
  0x74   : > { %365 = vst.msk [vmem:[#allocation2 + $0x21] sm:$0xff] %vm327_vm0, %v356_v4  ;;  %366 = vst.msk [vmem:[#allocation2 + $0x31] sm:$0xff] %vm327_vm0, %v357_v5 }
  0x75   : > { %367 = vst.msk [vmem:[#allocation2 + $0x41] sm:$0xff] %vm327_vm0, %v358_v6  ;;  %368 = vst.msk [vmem:[#allocation2 + $0x51] sm:$0xff] %vm327_vm0, %v359_v9 }
  0x76   : > { %v372_v7 = vld [vmem:[#allocation2] sm:$0xff]  ;;  %369 = vst.msk [vmem:[#allocation2 + $0x61] sm:$0xff] %vm327_vm0, %v360_v10  ;;  %370 = vst.msk [vmem:[#allocation2 + $0x71] sm:$0xff] %vm327_vm0, %v361_v11 }
  0x77   : > { %v373_v8 = vld [vmem:[#allocation2 + $0x8] sm:$0x3]  ;;  %v415_v13 = vrot.slane %v372_v7, 1  ;;  %371 = vst.msk [vmem:[#allocation2 + $0x81] sm:$0xff] %vm327_vm0, %v362_v16  ;;  %v621_v20 = vrot.slane %v372_v7, 2 }
  0x78   : > { %v416_v14 = vrot.slane %v373_v8, 1  ;;  %v622_v21 = vrot.slane %v373_v8, 2  ;;  %v6433_v16 = vld [vmem:[#allocation2 + $0x90] sm:$0xff] }
  0x7a   : > { %v6313_v17 = vld [vmem:[#allocation2 + $0x10] sm:$0xff]  ;;  %v6315_v18 = vld [vmem:[#allocation2 + $0x18] sm:$0x3]  ;;  %v417_v26 = vsel %vm414_vm3, %v415_v13, %v416_v14  ;;  %v623_v51 = vsel %vm620_vm4, %v621_v20, %v622_v21 }
  0x7b   : > { %v6317_v19 = vld [vmem:[#allocation2 + $0x20] sm:$0xff]  ;;  %v6321_v23 = vld [vmem:[#allocation2 + $0x28] sm:$0x3]  ;;  %v6323_v24 = vld [vmem:[#allocation2 + $0x30] sm:$0xff]  ;;  %v418_v27 = vrot.slane %v6313_v17, 1  ;;  %v392_v28 = vpack.c.bf16 %v6313_v17, %v372_v7  ;;  %v419_v31 = vrot.slane %v6315_v18, 1 }
  0x7c   : > { %v6325_v25 = vld [vmem:[#allocation2 + $0x38] sm:$0x3]  ;;  %v6330_v29 = vld [vmem:[#allocation2 + $0x40] sm:$0xff]  ;;  %v6332_v30 = vld [vmem:[#allocation2 + $0x48] sm:$0x3]  ;;  %v421_v32 = vrot.slane %v6317_v19, 1  ;;  %v6339_v34 = vpack.c.bf16 %v6323_v24, %v6317_v19  ;;  %v751_v52 = vpack.c.bf16 %v6317_v19, %v6313_v17 }
  0x7d   : > { %v422_v33 = vrot.slane %v6321_v23, 1  ;;  %v424_v35 = vrot.slane %v6323_v24, 1  ;;  %v425_v36 = vrot.slane %v6325_v25, 1  ;;  %v427_v37 = vrot.slane %v6330_v29, 1  ;;  %5415 = vmatprep.mubr.msk.bf16.mxu1 %vm327_vm0, %v392_v28  ;;  %v6354_v41 = vld [vmem:[#allocation2 + $0x50] sm:$0xff]  ;;  %v6360_v45 = vld [vmem:[#allocation2 + $0x60] sm:$0xff] }
  0x7e   : > { %v428_v38 = vrot.slane %v6332_v30, 1  ;;  %v6347_v39 = vsel %vm414_vm3, %v418_v27, %v419_v31  ;;  %5416 = vmatmul.mubr.msk.bf16.vlgmr.msra.gmra.mxu1 %vm327_vm0, %v6339_v34  ;;  %v383_v42 = vld [vmem:[#allocation2 + $0x58] sm:$0x3]  ;;  %v6362_v46 = vld [vmem:[#allocation2 + $0x68] sm:$0x3]  ;;  %v6370_v49 = vld [vmem:[#allocation2 + $0x70] sm:$0xff]  ;;  %v6389_v58 = vpack.c.bf16 %v6354_v41, %v6330_v29  ;;  %v752_v21 = vpack.c.bf16 %v6330_v29, %v6323_v24 }
  0x7f   : > { %v6350_v40 = vsel %vm414_vm3, %v421_v32, %v422_v33  ;;  %v6357_v43 = vsel %vm414_vm3, %v424_v35, %v425_v36  ;;  %v447_v44 = vpack.c.bf16 %v6347_v39, %v417_v26  ;;  %5434 = vmatpush3.bf16.msra.mxu1 %v5845_v15  ;;  %v6372_v50 = vld [vmem:[#allocation2 + $0x78] sm:$0x3]  ;;  %v625_v54 = vrot.slane %v6315_v18, 2  ;;  %v389_v15 = vld [vmem:[#allocation2 + $0x88] sm:$0x3]  ;;  %v6439_v20 = vld [vmem:[#allocation2 + $0x80] sm:$0xff] }
  0x80   : > { %v6368_v48 = vpack.c.bf16 %v6357_v43, %v6350_v40  ;;  %5453 = vmatprep.subr.bf16.mxu1 %v6319_v22  ;;  %v6379_v53 = vsel %vm414_vm3, %v427_v37, %v428_v38  ;;  %v430_v55 = vrot.slane %v6354_v41, 1  ;;  %v431_v56 = vrot.slane %v383_v42, 1  ;;  %5419 = vmatprep.mubr.msk.bf16.mxu1 %vm327_vm0, %v6389_v58  ;;  %v5849_v27 = vld [vmem:[#allocation7 + $0x38] sm:$0xff]  }
  0x81   : > { %5405 = vmatprep.mubr.msk.bf16.mxu0 %vm327_vm0, %v447_v44  ;;  %v627_v57 = vrot.slane %v6317_v19, 2  ;;  %v433_v59 = vrot.slane %v6360_v45, 1  ;;  %v434_v60 = vrot.slane %v6362_v46, 1  ;;  %v628_v61 = vrot.slane %v6321_v23, 2 }
  0x82   : > { %5406 = vmatmul.mubr.msk.bf16.vlgmr.msra.gmra.mxu0 %vm327_vm0, %v6368_v48  ;;  %v6395_v62 = vsel %vm414_vm3, %v430_v55, %v431_v56  ;;  %v436_v63 = vrot.slane %v6370_v49, 1  ;;  %v437_v0 = vrot.slane %v6372_v50, 1  ;;  %v6411_v3 = vpack.c.bf16 %v6370_v49, %v6360_v45 }
  0x83   : > { %5424 = vmatpush3.bf16.msra.mxu0 %v6308_v12  ;;  %v6402_v1 = vpack.c.bf16 %v6395_v62, %v6379_v53  ;;  %v6407_v2 = vsel %vm414_vm3, %v433_v59, %v434_v60  ;;  %v624_v4 = vrot.slane %v6313_v17, 2  ;;  %v630_v5 = vrot.slane %v6323_v24, 2  ;;  %v6435_v17 = vld [vmem:[#allocation2 + $0x98] sm:$0x3] }
  0x84   : > { %5443 = vmatprep.subr.bf16.mxu0 %v6364_v47  ;;  %v631_v6 = vrot.slane %v6325_v25, 2  ;;  %v6418_v7 = vsel %vm414_vm3, %v436_v63, %v437_v0  ;;  %v633_v10 = vrot.slane %v6330_v29, 2  ;;  %v634_v11 = vrot.slane %v6332_v30, 2  ;;  %v5853_v63 = vld [vmem:[#allocation9 + $0x30] sm:$0xff]  }
  0x85   : > { %5409 = vmatprep.mubr.msk.bf16.mxu0 %vm327_vm0, %v6402_v1  ;;  %v6424_v8 = vpack.c.bf16 %v6418_v7, %v6407_v2  ;;  %v626_v9 = vsel %vm620_vm4, %v624_v4, %v625_v54  ;;  %v636_v13 = vrot.slane %v6354_v41, 2  ;;  %v637_v14 = vrot.slane %v383_v42, 2  ;;  %v5848_v42 = vld [vmem:[#allocation7 + $0x30] sm:$0xff]   ;;  %v5854_v0 = vld [vmem:[#allocation9 + $0x70] sm:$0xff]   ;;  %v5858_v4 = vld [vmem:[#allocation9 + $0x60] sm:$0xff]  }
  0x86   : > { %5420 = vmatmul.mubr.msk.bf16.gmra.mxu1 %vm327_vm0, %v6411_v3  ;;  %v653_v12 = vpack.c.bf16 %v626_v9, %v623_v51  ;;  %v629_v18 = vsel %vm620_vm4, %v627_v57, %v628_v61  ;;  %v632_v19 = vsel %vm620_vm4, %v630_v5, %v631_v6  ;;  %v635_v23 = vsel %vm620_vm4, %v633_v10, %v634_v11  ;;  %v5851_v61 = vld [vmem:[#allocation9 + $0x38] sm:$0xff]   ;;  %v5864_v10 = vld [vmem:[#allocation9 + $0x48] sm:$0xff]   ;;  %v5865_v11 = vld [vmem:[#allocation9] sm:$0xff]  }
  0x87   : > { %5435 = vmatprep.mubr.msk.bf16.mxu1 %vm327_vm0, %v751_v52  ;;  %v639_v25 = vrot.slane %v6360_v45, 2  ;;  %v640_v26 = vrot.slane %v6362_v46, 2  ;;  %v638_v28 = vsel %vm620_vm4, %v636_v13, %v637_v14  ;;  %v642_v30 = vrot.slane %v6370_v49, 2  ;;  %v5859_v5 = vld [vmem:[#allocation9 + $0x18] sm:$0xff]  }
  0x88   : > { %v643_v31 = vrot.slane %v6372_v50, 2  ;;  %v753_v32 = vpack.c.bf16 %v6360_v45, %v6354_v41  ;;  %v851_v24 = vrot.slane %v6439_v20, 1  ;;  %v852_v29 = vrot.slane %v389_v15, 1  ;;  %v5860_v6 = vld [vmem:[#allocation9 + $0x58] sm:$0xff]  }
  0x89   : > { %v953_v33 = vrot.slane %v6439_v20, 2  ;;  %v954_v35 = vrot.slane %v389_v15, 2  ;;  %v1143_v36 = vrot.slane %v6433_v16, 1  ;;  %v1144_v37 = vrot.slane %v6435_v17, 1  ;;  %v6511_v13 = vld [vmem:[#allocation9 + $0xf8] sm:$0xff]  }
  0x8a   : > { %5410 = vmatmul.mubr.msk.bf16.gmra.mxu0 %vm327_vm0, %v6424_v8  ;;  %v654_v38 = vpack.c.bf16 %v632_v19, %v629_v18  ;;  %v655_v44 = vpack.c.bf16 %v638_v28, %v635_v23  ;;  %v754_v41 = vpack.c.bf16 %v6439_v20, %v6370_v49  ;;  %v641_v45 = vsel %vm620_vm4, %v639_v25, %v640_v26  ;;  %v6514_v14 = vld [vmem:[#allocation9 + $0xb8] sm:$0xff]  }
  0x8b   : > { %5425 = vmatprep.mubr.msk.bf16.mxu0 %vm327_vm0, %v653_v12  ;;  %v644_v46 = vsel %vm620_vm4, %v642_v30, %v643_v31  ;;  %v957_v50 = vpack.c.bf16 %v629_v18, %v626_v9  ;;  %v958_v52 = vpack.c.bf16 %v635_v23, %v632_v19  ;;  %v959_v49 = vpack.c.bf16 %v641_v45, %v638_v28  ;;  %v5863_v9 = vld [vmem:[#allocation9 + $0x8] sm:$0xff]   ;;  %v5866_v12 = vld [vmem:[#allocation9 + $0x40] sm:$0xff]  }
  0x8c   : > { %v656_v51 = vpack.c.bf16 %v644_v46, %v641_v45  ;;  %v856_v54 = vpack.c.bf16 %v6379_v53, %v6357_v43  ;;  %v857_v55 = vpack.c.bf16 %v6407_v2, %v6395_v62  ;;  %v853_v56 = vsel %vm414_vm3, %v851_v24, %v852_v29  ;;  %v5852_v62 = vld [vmem:[#allocation9 + $0x78] sm:$0xff]   ;;  %v5856_v2 = vld [vmem:[#allocation9 + $0x68] sm:$0xff]   ;;  %7467 = vst [vmem:[#allocation14_spill] sm:$0xff] %v6511_v13 }
  0x8d   : > { %v858_v43 = vpack.c.bf16 %v853_v56, %v6418_v7  ;;  %v1145_v53 = vsel %vm414_vm3, %v1143_v36, %v1144_v37  ;;  %v1234_v59 = vrot.slane %v6435_v17, 2  ;;  %v5861_v7 = vld [vmem:[#allocation9 + $0x10] sm:$0xff]   ;;  %7468 = vst [vmem:[#allocation15_spill] sm:$0xff] %v6514_v14 }
  0x8e   : > { %5436 = vmatmul.mubr.msk.bf16.vlgmr.msra.gmra.mxu1 %vm327_vm0, %v752_v21  ;;  %v1147_v57 = vpack.c.bf16 %v1145_v53, %v853_v56 }
  0x8f   : > { %5439 = vmatprep.mubr.msk.bf16.mxu1 %vm327_vm0, %v753_v32  ;;  %5454 = vmatpush3.bf16.msra.mxu1 %v6319_v22  ;;  %v855_v22 = vpack.c.bf16 %v6350_v40, %v6347_v39  ;;  %v955_v39 = vsel %vm620_vm4, %v953_v33, %v954_v35 }
  0x90   : > { %5473 = vmatprep.subr.bf16.mxu1 %v5849_v27  ;;  %v960_v40 = vpack.c.bf16 %v955_v39, %v644_v46 }
  0x92   : > { %5426 = vmatmul.mubr.msk.bf16.vlgmr.msra.gmra.mxu0 %vm327_vm0, %v654_v38 }
  0x93   : > { %5429 = vmatprep.mubr.msk.bf16.mxu0 %vm327_vm0, %v655_v44  ;;  %5444 = vmatpush3.bf16.msra.mxu0 %v6364_v47  ;;  %v5850_v47 = vld [vmem:[#allocation7 + $0x40] sm:$0xff]  }
  0x94   : > { %5463 = vmatprep.subr.bf16.mxu0 %v5848_v42 }
  0x96   : > { %5440 = vmatmul.mubr.msk.bf16.gmra.mxu1 %vm327_vm0, %v754_v41 }
  0x97   : > { %5455 = vmatprep.mubr.msk.bf16.mxu1 %vm327_vm0, %v957_v50 }
  0x9a   : > { %5430 = vmatmul.mubr.msk.bf16.gmra.mxu0 %vm327_vm0, %v656_v51 }
  0x9b   : > { %5445 = vmatprep.mubr.msk.bf16.mxu0 %vm327_vm0, %v855_v22 }
  0x9e   : > { %5456 = vmatmul.mubr.msk.bf16.vlgmr.msra.gmra.mxu1 %vm327_vm0, %v958_v52 }
  0x9f   : > { %5459 = vmatprep.mubr.msk.bf16.mxu1 %vm327_vm0, %v959_v49  ;;  %5474 = vmatpush3.bf16.msra.mxu1 %v5849_v27 }
  0xa0   : > { %5493 = vmatprep.subr.bf16.mxu1 %v5852_v62 }
  0xa2   : > { %5446 = vmatmul.mubr.msk.bf16.vlgmr.msra.gmra.mxu0 %vm327_vm0, %v856_v54 }
  0xa3   : > { %5449 = vmatprep.mubr.msk.bf16.mxu0 %vm327_vm0, %v857_v55  ;;  %5464 = vmatpush3.bf16.msra.mxu0 %v5848_v42 }
  0xa4   : > { %5483 = vmatprep.subr.bf16.mxu0 %v5850_v47 }
  0xa6   : > { %5460 = vmatmul.mubr.msk.bf16.gmra.mxu1 %vm327_vm0, %v960_v40 }
  0xa7   : > { %5475 = vmatprep.mubr.msk.bf16.mxu1 %vm327_vm0, %v6368_v48  ;;  %v1055_v48 = vpack.c.bf16 %v6433_v16, %v6439_v20 }
  0xaa   : > { %5450 = vmatmul.mubr.msk.bf16.gmra.mxu0 %vm327_vm0, %v858_v43 }
  0xab   : > { %5465 = vmatprep.mubr.msk.bf16.mxu0 %vm327_vm0, %v6339_v34  ;;  %v1233_v34 = vrot.slane %v6433_v16, 2 }
  0xae   : > { %5476 = vmatmul.mubr.msk.bf16.vlgmr.msra.gmra.mxu1 %vm327_vm0, %v6402_v1  ;;  %v5855_v1 = vld [vmem:[#allocation9 + $0x28] sm:$0xff]  }
  0xaf   : > { %5479 = vmatprep.mubr.msk.bf16.mxu1 %vm327_vm0, %v6424_v8  ;;  %5494 = vmatpush3.bf16.msra.mxu1 %v5852_v62  ;;  %v5862_v8 = vld [vmem:[#allocation9 + $0x50] sm:$0xff]  }
  0xb0   : > { %5495 = vmatprep.subr.bf16.mxu1 %v5854_v0 }
  0xb2   : > { %5466 = vmatmul.mubr.msk.bf16.vlgmr.msra.gmra.mxu0 %vm327_vm0, %v6389_v58  ;;  %v1235_v58 = vsel %vm620_vm4, %v1233_v34, %v1234_v59 }
  0xb3   : > { %5469 = vmatprep.mubr.msk.bf16.mxu0 %vm327_vm0, %v6411_v3  ;;  %5484 = vmatpush3.bf16.msra.mxu0 %v5850_v47  ;;  %v1237_v60 = vpack.c.bf16 %v1235_v58, %v955_v39  ;;  %v5857_v3 = vld [vmem:[#allocation9 + $0x20] sm:$0xff]  }
  0xb4   : > { %5517 = vmatprep.subr.bf16.mxu0 %v5851_v61  ;;  %5496 = vmatpush3.bf16.msra.mxu1 %v5854_v0 }
  0xb5   : > { %5497 = vmatprep.subr.bf16.mxu1 %v5856_v2 }
  0xb6   : > { %5480 = vmatmul.mubr.msk.bf16.gmra.mxu1 %vm327_vm0, %v1147_v57 }
  0xb8   : > { %5498 = vmatpush3.bf16.msra.mxu1 %v5856_v2 }
  0xb9   : > { %5499 = vmatprep.subr.bf16.mxu1 %v5858_v4 }
  0xba   : > { %5470 = vmatmul.mubr.msk.bf16.gmra.mxu0 %vm327_vm0, %v1055_v48 }
  0xbb   : > { %5485 = vmatprep.mubr.msk.bf16.mxu0 %vm327_vm0, %v654_v38 }
  0xbc   : > { %5500 = vmatpush3.bf16.msra.mxu1 %v5858_v4 }
  0xbd   : > { %5501 = vmatprep.subr.bf16.mxu1 %v5860_v6 }
  0xc0   : > { %5502 = vmatpush3.bf16.msra.mxu1 %v5860_v6 }
  0xc1   : > { %5503 = vmatprep.subr.bf16.mxu1 %v5862_v8 }
  0xc2   : > { %5486 = vmatmul.mubr.msk.bf16.vlgmr.msra.gmra.mxu0 %vm327_vm0, %v655_v44 }
  0xc3   : > { %5489 = vmatprep.mubr.msk.bf16.mxu0 %vm327_vm0, %v656_v51  ;;  %5518 = vmatpush3.bf16.msra.mxu0 %v5851_v61 }
  0xc4   : > { %5519 = vmatprep.subr.bf16.mxu0 %v5853_v63  ;;  %5504 = vmatpush3.bf16.msra.mxu1 %v5862_v8 }
  0xc5   : > { %5505 = vmatprep.subr.bf16.mxu1 %v5864_v10 }
  0xc7   : > { %5520 = vmatpush3.bf16.msra.mxu0 %v5853_v63 }
  0xc8   : > { %5521 = vmatprep.subr.bf16.mxu0 %v5855_v1  ;;  %5506 = vmatpush3.bf16.msra.mxu1 %v5864_v10 }
  0xc9   : > { %5507 = vmatprep.subr.bf16.mxu1 %v5866_v12 }
  0xca   : > { %5490 = vmatmul.mubr.msk.bf16.gmra.mxu0 %vm327_vm0, %v1237_v60 }
  0xcb   : > { %5522 = vmatpush3.bf16.msra.mxu0 %v5855_v1 }
  0xcc   : > { %5523 = vmatprep.subr.bf16.mxu0 %v5857_v3  ;;  %5508 = vmatpush3.bf16.msra.mxu1 %v5866_v12 }
  0xcd   : > { %5541 = vmatprep.subr.bf16.mxu1 %v6514_v14 }
  0xcf   : > { %5524 = vmatpush3.bf16.msra.mxu0 %v5857_v3 }
  0xd0   : > { %5525 = vmatprep.subr.bf16.mxu0 %v5859_v5 }
  0xd3   : > { %5526 = vmatpush3.bf16.msra.mxu0 %v5859_v5 }
  0xd4   : > { %5527 = vmatprep.subr.bf16.mxu0 %v5861_v7 }
  0xd7   : > { %5528 = vmatpush3.bf16.msra.mxu0 %v5861_v7 }
  0xd8   : > { %5529 = vmatprep.subr.bf16.mxu0 %v5863_v9 }
  0xdb   : > { %5530 = vmatpush3.bf16.msra.mxu0 %v5863_v9 }
  0xdc   : > { %5531 = vmatprep.subr.bf16.mxu0 %v5865_v11 }
  0xdf   : > { %5532 = vmatpush3.bf16.msra.mxu0 %v5865_v11 }
  0xe0   : > { %5565 = vmatprep.subr.bf16.mxu0 %v6511_v13 }
 0x13e   : > { %v5417_v15 = vpop.f32.mrf.mxu1 }
 0x140   : > { %v589_v16 = vpop.f32.mrf.mxu1 }
 0x142   : > { %v5407_v17 = vpop.f32.mrf.mxu0  ;;  %v5418_v18 = vpop.f32.mrf.mxu1 }
 0x143   : > { %v598_v62 = vadd.f32 %v5417_v15, %v5407_v17 }
 0x144   : > { %v506_v19 = vpop.f32.mrf.mxu0  ;;  %v592_v20 = vpop.f32.mrf.mxu1 }
 0x145   : > { %v590_v1 = vadd.f32 %v589_v16, %v506_v19 }
 0x146   : > { %v5408_v21 = vpop.f32.mrf.mxu0  ;;  %v5421_v23 = vpop.f32.mrf.mxu1 }
 0x147   : > { %v601_v4 = vadd.f32 %v5418_v18, %v5408_v21 }
 0x148   : > { %v509_v25 = vpop.f32.mrf.mxu0  ;;  %v605_v26 = vpop.f32.mrf.mxu1 }
 0x149   : > { %v593_v8 = vadd.f32 %v592_v20, %v509_v25 }
 0x14a   : > { %v5411_v27 = vpop.f32.mrf.mxu0  ;;  %v5422_v28 = vpop.f32.mrf.mxu1 }
 0x14b   : > { %v614_v11 = vadd.f32 %v5421_v23, %v5411_v27 }
 0x14c   : > { %v522_v30 = vpop.f32.mrf.mxu0  ;;  %v6517_v31 = vpop.f32.mrf.mxu1 }
 0x14e   : > { %v5412_v32 = vpop.f32.mrf.mxu0  ;;  %v5437_v24 = vpop.f32.mrf.mxu1 }
 0x14f   : > { %v617_v19 = vadd.f32 %v5422_v28, %v5412_v32 }
 0x150   : > { %v525_v29 = vpop.f32.mrf.mxu0  ;;  %v810_v33 = vpop.f32.mrf.mxu1 }
 0x151   : > { %v609_v25 = vadd.f32 %v6517_v31, %v525_v29 }
 0x152   : > { %v5427_v35 = vpop.f32.mrf.mxu0  ;;  %v5438_v36 = vpop.f32.mrf.mxu1 }
 0x153   : > { %v745_v2 = vadd.f32 %v5427_v35, %v598_v62 }
 0x154   : > { %v712_v37 = vpop.f32.mrf.mxu0  ;;  %v813_v38 = vpop.f32.mrf.mxu1 }
 0x155   : > { %v743_v5 = vadd.f32 %v712_v37, %v590_v1  ;;  %v843_v9 = vadd.f32 %v5437_v24, %v745_v2 }
 0x156   : > { %v5428_v42 = vpop.f32.mrf.mxu0  ;;  %v5441_v44 = vpop.f32.mrf.mxu1 }
 0x157   : > { %v746_v10 = vadd.f32 %v5428_v42, %v601_v4  ;;  %v841_v14 = vadd.f32 %v810_v33, %v743_v5 }
 0x158   : > { %v715_v41 = vpop.f32.mrf.mxu0  ;;  %v826_v45 = vpop.f32.mrf.mxu1 }
 0x159   : > { %v744_v13 = vadd.f32 %v715_v41, %v593_v8 }
 0x15a   : > { %v5431_v46 = vpop.f32.mrf.mxu0  ;;  %v6519_v50 = vpop.f32.mrf.mxu1 }
 0x15b   : > { %v749_v15 = vadd.f32 %v5431_v46, %v614_v11  ;;  %v842_v21 = vadd.f32 %v813_v38, %v744_v13 }
 0x15c   : > { %v728_v51 = vpop.f32.mrf.mxu0  ;;  %v6521_v22 = vpop.f32.mrf.mxu1 }
 0x15d   : > { %7469 = vst [vmem:[#allocation16_spill] sm:$0xff] %v6521_v22  ;;  %v844_v22 = vadd.f32 %v5438_v36, %v746_v10  ;;  %v847_v23 = vadd.f32 %v5441_v44, %v749_v15 }
 0x15e   : > { %v5432_v52 = vpop.f32.mrf.mxu0  ;;  %v5457_v49 = vpop.f32.mrf.mxu1 }
 0x15f   : > { %v750_v27 = vadd.f32 %v5432_v52, %v617_v19 }
 0x160   : > { %v731_v54 = vpop.f32.mrf.mxu0  ;;  %v1016_v47 = vpop.f32.mrf.mxu1 }
 0x161   : > { %v848_v13 = vadd.f32 %v6519_v50, %v750_v27 }
 0x162   : > { %v5447_v55 = vpop.f32.mrf.mxu0  ;;  %v5458_v39 = vpop.f32.mrf.mxu1 }
 0x164   : > { %v914_v40 = vpop.f32.mrf.mxu0  ;;  %v1019_v56 = vpop.f32.mrf.mxu1  ;;  %v7473_v29 = vld [vmem:[#allocation16_spill] sm:$0xff] }
 0x165   : > { %v945_v16 = vadd.f32 %v914_v40, %v841_v14 }
 0x166   : > { %v5448_v43 = vpop.f32.mrf.mxu0  ;;  %v5461_v53 = vpop.f32.mrf.mxu1 }
 0x167   : > { %v948_v62 = vadd.f32 %v5448_v43, %v844_v22  ;;  %v1047_v33 = vadd.f32 %v1016_v47, %v945_v16 }
 0x168   : > { %v917_v57 = vpop.f32.mrf.mxu0  ;;  %v6523_v48 = vpop.f32.mrf.mxu1 }
 0x169   : > { %7470 = vst [vmem:[#allocation17_spill] sm:$0xff] %v6523_v48  ;;  %v606_v48 = vadd.f32 %v605_v26, %v522_v30  ;;  %v946_v42 = vadd.f32 %v917_v57, %v842_v21  ;;  %v748_v30 = vadd.f32 %v731_v54, %v609_v25  ;;  %v1050_v14 = vadd.f32 %v5458_v39, %v948_v62 }
 0x16a   : > { %v5451_v34 = vpop.f32.mrf.mxu0  ;;  %v6525_v59 = vpop.f32.mrf.mxu1 }
 0x16b   : > { %7471 = vst [vmem:[#allocation18_spill] sm:$0xff] %v6525_v59  ;;  %v947_v59 = vadd.f32 %v5447_v55, %v843_v9  ;;  %v747_v35 = vadd.f32 %v728_v51, %v606_v48  ;;  %v951_v46 = vadd.f32 %v5451_v34, %v847_v23  ;;  %v1048_v22 = vadd.f32 %v1019_v56, %v946_v42  ;;  %v6541_v34 = vld [vmem:[%s7440_s2 + $0x1] ss:$0 sm:$0xff] }
 0x16c   : > { %v930_v58 = vpop.f32.mrf.mxu0  ;;  %v6527_v60 = vpop.f32.mrf.mxu1  ;;  %v846_v44 = vadd.f32 %v7473_v29, %v748_v30 }
 0x16d   : > { %7472 = vst [vmem:[#allocation19_spill] sm:$0xff] %v6527_v60  ;;  %v1049_v37 = vadd.f32 %v5457_v49, %v947_v59  ;;  %v845_v26 = vadd.f32 %v826_v45, %v747_v35  ;;  %v1053_v52 = vadd.f32 %v5461_v53, %v951_v46  ;;  %v6535_v45 = vld [vmem:[%s7440_s2] ss:$0 sm:$0xff] }
 0x16e   : > { %v5452_v61 = vpop.f32.mrf.mxu0  ;;  %v5477_v63 = vpop.f32.mrf.mxu1 }
 0x16f   : > { %v949_v38 = vadd.f32 %v930_v58, %v845_v26  ;;  %v952_v47 = vadd.f32 %v5452_v61, %v848_v13  ;;  %v6558_v13 = vld [vmem:[#allocation3 + $0x8] sm:$0x3] }
 0x170   : > { %v933_v0 = vpop.f32.mrf.mxu0  ;;  %v1194_v6 = vpop.f32.mrf.mxu1  ;;  %v7474_v50 = vld [vmem:[#allocation17_spill] sm:$0xff] }
 0x171   : > { %v1051_v57 = vadd.f32 %v7474_v50, %v949_v38  ;;  %v950_v48 = vadd.f32 %v933_v0, %v846_v44  ;;  %v1448_v44 = vrot.slane %v6558_v13, 1 }
 0x172   : > { %v5467_v3 = vpop.f32.mrf.mxu0  ;;  %v5478_v60 = vpop.f32.mrf.mxu1 }
 0x173   : > { %v1135_v41 = vadd.f32 %v5467_v3, %v1049_v37 }
 0x174   : > { %v1102_v7 = vpop.f32.mrf.mxu0  ;;  %v1197_v20 = vpop.f32.mrf.mxu1  ;;  %v7476_v8 = vld [vmem:[#allocation19_spill] sm:$0xff] }
 0x175   : > { %v1133_v28 = vadd.f32 %v1102_v7, %v1047_v33  ;;  %v1227_v49 = vadd.f32 %v5477_v63, %v1135_v41  ;;  %v7475_v63 = vld [vmem:[#allocation18_spill] sm:$0xff]  ;;  %v1052_v9 = vadd.f32 %v7476_v8, %v950_v48 }
 0x176   : > { %v5468_v12 = vpop.f32.mrf.mxu0  ;;  %v5481_v32 = vpop.f32.mrf.mxu1  ;;  %v1054_v1 = vadd.f32 %v7475_v63, %v952_v47 }
 0x177   : > { %v1136_v31 = vadd.f32 %v5468_v12, %v1050_v14  ;;  %v1225_v54 = vadd.f32 %v1194_v6, %v1133_v28 }
 0x178   : > { %v1105_v17 = vpop.f32.mrf.mxu0  ;;  %v1210_v40 = vpop.f32.mrf.mxu1 }
 0x179   : > { %v1134_v39 = vadd.f32 %v1105_v17, %v1048_v22  ;;  %v1228_v59 = vadd.f32 %v5478_v60, %v1136_v31 }
 0x17a   : > { %v5471_v18 = vpop.f32.mrf.mxu0  ;;  %v5482_v5 = vpop.f32.mrf.mxu1 }
 0x17b   : > { %v1139_v56 = vadd.f32 %v5471_v18, %v1053_v52  ;;  %v1226_v4 = vadd.f32 %v1197_v20, %v1134_v39 }
 0x17c   : > { %v1118_v24 = vpop.f32.mrf.mxu0  ;;  %v1213_v21 = vpop.f32.mrf.mxu1 }
 0x17d   : > { %v1137_v2 = vadd.f32 %v1118_v24, %v1051_v57  ;;  %v1231_v10 = vadd.f32 %v5481_v32, %v1139_v56  ;;  %v6556_v32 = vld [vmem:[#allocation3] sm:$0xff] }
 0x17e   : > { %v5472_v36 = vpop.f32.mrf.mxu0  ;;  %v1447_v29 = vrot.slane %v6556_v32, 1 }
 0x17f   : > { %v1140_v11 = vadd.f32 %v5472_v36, %v1054_v1  ;;  %v1229_v19 = vadd.f32 %v1210_v40, %v1137_v2 }
 0x180   : > { %v1121_v51 = vpop.f32.mrf.mxu0 }
 0x181   : > { %v1138_v35 = vadd.f32 %v1121_v51, %v1052_v9  ;;  %v1232_v23 = vadd.f32 %v5482_v5, %v1140_v11 }
 0x182   : > { %v5487_v55 = vpop.f32.mrf.mxu0 }
 0x183   : > { %v1317_v43 = vadd.f32 %v5487_v55, %v1227_v49  ;;  %v1230_v26 = vadd.f32 %v1213_v21, %v1138_v35 }
 0x184   : > { %v1284_v53 = vpop.f32.mrf.mxu0 }
 0x185   : > { %v1330_v58 = vmul.f32 %v6535_v45, %v1317_v43  ;;  %v1315_v61 = vadd.f32 %v1284_v53, %v1225_v54  ;;  %v1449_v53 = vsel %vm414_vm3, %v1447_v29, %v1448_v44 }
 0x186   : > { %v5488_v3 = vpop.f32.mrf.mxu0 }
 0x187   : > { %v1343_v6 = vadd.f32 %v6541_v34, %v1330_v58  ;;  %v1328_v0 = vmul.f32 %v6535_v45, %v1315_v61  ;;  %v1318_v7 = vadd.f32 %v5488_v3, %v1228_v59 }
 0x188   : > { %v1287_v12 = vpop.f32.mrf.mxu0 }
 0x189   : > { %v1351_v60 = vmax.f32 %v1343_v6, 0.0  ;;  %v1341_v15 = vadd.f32 %v6541_v34, %v1328_v0  ;;  %v1331_v17 = vmul.f32 %v6535_v45, %v1318_v7  ;;  %v1316_v16 = vadd.f32 %v1287_v12, %v1226_v4  ;;  %v5869_v7 = vld [vmem:[#allocation9 + $0xf0] sm:$0xff]  }
 0x18a   : > { %v5491_v18 = vpop.f32.mrf.mxu0 }
 0x18b   : > { %1385 = vst [vmem:[#allocation3 + $0x31] sm:$0xff] %v1351_v60  ;;  %v1349_v37 = vmax.f32 %v1341_v15, 0.0  ;;  %v1344_v62 = vadd.f32 %v6541_v34, %v1331_v17  ;;  %v1329_v20 = vmul.f32 %v6535_v45, %v1316_v16  ;;  %v1321_v25 = vadd.f32 %v5491_v18, %v1231_v10  ;;  %v5870_v10 = vld [vmem:[#allocation9 + $0xb0] sm:$0xff]   ;;  %v7477_v15 = vld [vmem:[#allocation14_spill] sm:$0xff] }
 0x18c   : > { %v1300_v27 = vpop.f32.mrf.mxu0 }
 0x18d   : > { %1383 = vst [vmem:[#allocation3 + $0x11] sm:$0xff] %v1349_v37  ;;  %v1352_v24 = vmax.f32 %v1344_v62, 0.0  ;;  %v1342_v33 = vadd.f32 %v6541_v34, %v1329_v20  ;;  %v1334_v42 = vmul.f32 %v6535_v45, %v1321_v25  ;;  %v1319_v41 = vadd.f32 %v1300_v27, %v1229_v19  ;;  %v5871_v62 = vld [vmem:[#allocation9 + $0xe8] sm:$0xff]  }
 0x18e   : > { %v5492_v30 = vpop.f32.mrf.mxu0  ;;  %v1726_v20 = vrot.slane %v6556_v32, 2  ;;  %v1727_v25 = vrot.slane %v6558_v13, 2 }
 0x18f   : > { %1386 = vst [vmem:[#allocation3 + $0x41] sm:$0xff] %v1352_v24  ;;  %v1350_v46 = vmax.f32 %v1342_v33, 0.0  ;;  %v1347_v36 = vadd.f32 %v6541_v34, %v1334_v42  ;;  %v1332_v14 = vmul.f32 %v6535_v45, %v1319_v41  ;;  %v1322_v28 = vadd.f32 %v5492_v30, %v1232_v23  ;;  %v7478_v24 = vld [vmem:[#allocation15_spill] sm:$0xff] }
 0x190   : > { %v1303_v38 = vpop.f32.mrf.mxu0 }
 0x191   : > { %1384 = vst [vmem:[#allocation3 + $0x21] sm:$0xff] %v1350_v46  ;;  %v1355_v51 = vmax.f32 %v1347_v36, 0.0  ;;  %v1345_v22 = vadd.f32 %v6541_v34, %v1332_v14  ;;  %v1335_v49 = vmul.f32 %v6535_v45, %v1322_v28  ;;  %v1320_v31 = vadd.f32 %v1303_v38, %v1230_v26  ;;  %v5872_v28 = vld [vmem:[#allocation9 + $0xa8] sm:$0xff]   ;;  %v5873_v38 = vld [vmem:[#allocation9 + $0xe0] sm:$0xff]  }
 0x192   : > { %v6566_v54 = vld [vmem:[#allocation3 + $0x30] sm:$0xff]  ;;  %v6572_v43 = vld [vmem:[#allocation3 + $0x38] sm:$0x3] }
 0x193   : > { %1389 = vst [vmem:[#allocation3 + $0x71] sm:$0xff] %v1355_v51  ;;  %v1353_v52 = vmax.f32 %v1345_v22, 0.0  ;;  %v1348_v47 = vadd.f32 %v6541_v34, %v1335_v49  ;;  %v1333_v55 = vmul.f32 %v6535_v45, %v1320_v31  ;;  %v1456_v58 = vrot.slane %v6566_v54, 1 }
 0x194   : > { %v6568_v39 = vld [vmem:[#allocation3 + $0x10] sm:$0xff]  ;;  %v6570_v40 = vld [vmem:[#allocation3 + $0x18] sm:$0x3]  ;;  %v1457_v61 = vrot.slane %v6572_v43, 1  ;;  %v1728_v22 = vsel %vm620_vm4, %v1726_v20, %v1727_v25 }
 0x195   : > { %1387 = vst [vmem:[#allocation3 + $0x51] sm:$0xff] %v1353_v52  ;;  %v1356_v50 = vmax.f32 %v1348_v47, 0.0  ;;  %v1346_v57 = vadd.f32 %v6541_v34, %v1333_v55  ;;  %v1411_v48 = vpack.c.bf16 %v6568_v39, %v6556_v32  ;;  %v1450_v56 = vrot.slane %v6568_v39, 1  ;;  %v5874_v52 = vld [vmem:[#allocation9 + $0xa0] sm:$0xff]   ;;  %v5875_v55 = vld [vmem:[#allocation9 + $0xd8] sm:$0xff]  }
 0x196   : > { %v1451_v45 = vrot.slane %v6570_v40, 1  ;;  %v6582_v63 = vld [vmem:[#allocation3 + $0x40] sm:$0xff]  ;;  %v6591_v3 = vld [vmem:[#allocation3 + $0x48] sm:$0x3]  ;;  %v6605_v9 = vsel %vm414_vm3, %v1456_v58, %v1457_v61  ;;  %v1729_v23 = vrot.slane %v6568_v39, 2  ;;  %v1730_v27 = vrot.slane %v6570_v40, 2 }
 0x197   : > { %1390 = vst [vmem:[#allocation3 + $0x81] sm:$0xff] %v1356_v50  ;;  %v1354_v59 = vmax.f32 %v1346_v57, 0.0  ;;  %5533 = vmatprep.mubr.bf16.mxu0 %v1411_v48  ;;  %v1459_v11 = vrot.slane %v6582_v63, 1  ;;  %v1460_v12 = vrot.slane %v6591_v3, 1  ;;  %v5877_v40 = vld [vmem:[#allocation9 + $0xd0] sm:$0xff]   ;;  %v5879_v57 = vld [vmem:[#allocation9 + $0xc8] sm:$0xff]  }
 0x198   : > { %v6585_v34 = vsel %vm414_vm3, %v1450_v56, %v1451_v45  ;;  %v6587_v1 = vld [vmem:[#allocation3 + $0x20] sm:$0xff]  ;;  %v6589_v2 = vld [vmem:[#allocation3 + $0x28] sm:$0x3]  ;;  %v6662_v49 = vsel %vm620_vm4, %v1729_v23, %v1730_v27  ;;  %v5878_v50 = vld [vmem:[#allocation9 + $0x90] sm:$0xff]  }
 0x199   : > { %1388 = vst [vmem:[#allocation3 + $0x61] sm:$0xff] %v1354_v59  ;;  %v1479_v4 = vpack.c.bf16 %v6585_v34, %v1449_v53  ;;  %v6596_v5 = vpack.c.bf16 %v6566_v54, %v6587_v1  ;;  %v1453_v6 = vrot.slane %v6587_v1, 1  ;;  %v1454_v0 = vrot.slane %v6589_v2, 1  ;;  %v5880_v48 = vld [vmem:[#allocation9 + $0x88] sm:$0xff]   ;;  %v5881_v56 = vld [vmem:[#allocation9 + $0xc0] sm:$0xff]   ;;  %v5883_v45 = vld [vmem:[#allocation9 + $0x178] sm:$0xff]  }
 0x19a   : > { %v6609_v60 = vld [vmem:[#allocation3 + $0x70] sm:$0xff]  ;;  %v6620_v35 = vld [vmem:[#allocation3 + $0x78] sm:$0x3]  ;;  %v6636_v33 = vsel %vm414_vm3, %v1459_v11, %v1460_v12  ;;  %v1900_v51 = vpack.c.bf16 %v6587_v1, %v6568_v39  ;;  %v1758_v47 = vpack.c.bf16 %v6662_v49, %v1728_v22  ;;  %v5876_v39 = vld [vmem:[#allocation9 + $0x98] sm:$0xff]   ;;  %v1732_v59 = vrot.slane %v6587_v1, 2 }
 0x19b   : > { %5509 = vmatprep.mubr.bf16.mxu1 %v1479_v4  ;;  %5534 = vmatmul.mubr.bf16.vlgmr.msra.gmra.mxu0 %v6596_v5  ;;  %v6602_v8 = vsel %vm414_vm3, %v1453_v6, %v1454_v0  ;;  %v1468_v41 = vrot.slane %v6609_v60, 1  ;;  %v1469_v26 = vrot.slane %v6620_v35, 1  ;;  %v5882_v53 = vld [vmem:[#allocation9 + $0x80] sm:$0xff]   ;;  %v1733_v58 = vrot.slane %v6589_v2, 2  ;;  %v5884_v11 = vld [vmem:[#allocation9 + $0x138] sm:$0xff]   ;;  %v5885_v12 = vld [vmem:[#allocation9 + $0x170] sm:$0xff]  }
 0x19c   : > { %5566 = vmatpush3.bf16.msra.mxu0 %v7477_v15  ;;  %v6614_v17 = vpack.c.bf16 %v6605_v9, %v6602_v8  ;;  %v6616_v16 = vld [vmem:[#allocation3 + $0x50] sm:$0xff]  ;;  %v6618_v19 = vld [vmem:[#allocation3 + $0x58] sm:$0x3]  ;;  %v1735_v6 = vrot.slane %v6566_v54, 2  ;;  %v1736_v0 = vrot.slane %v6572_v43, 2  ;;  %v1901_v1 = vpack.c.bf16 %v6582_v63, %v6566_v54 }
 0x19d   : > { %5567 = vmatprep.subr.bf16.mxu0 %v5869_v7  ;;  %v6624_v18 = vpack.c.bf16 %v6616_v16, %v6582_v63  ;;  %v1462_v21 = vrot.slane %v6616_v16, 1  ;;  %v1463_v37 = vrot.slane %v6618_v19, 1  ;;  %v6669_v29 = vsel %vm414_vm3, %v1468_v41, %v1469_v26  ;;  %v5888_v41 = vld [vmem:[#allocation9 + $0x128] sm:$0xff]   ;;  %v5889_v26 = vld [vmem:[#allocation9 + $0x160] sm:$0xff]  }
 0x19e   : > { %5510 = vmatmul.mubr.bf16.vlgmr.msra.gmra.mxu1 %v6614_v17  ;;  %v1741_v61 = vrot.slane %v6616_v16, 2  ;;  %v1742_v4 = vrot.slane %v6618_v19, 2  ;;  %v1734_v2 = vsel %vm620_vm4, %v1732_v59, %v1733_v58  ;;  %v6694_v43 = vsel %vm620_vm4, %v1735_v6, %v1736_v0  ;;  %v6709_v20 = vld [vmem:[#allocation3 + $0x80] sm:$0xff]  ;;  %v5895_v22 = vld [vmem:[#allocation9 + $0x148] sm:$0xff]   ;;  %v5906_v0 = vld [vmem:[#allocation9 + $0x1a0] sm:$0xff]  }
 0x19f   : > { %5542 = vmatpush3.bf16.msra.mxu1 %v7478_v24  ;;  %5537 = vmatprep.mubr.bf16.mxu0 %v6624_v18  ;;  %v6639_v42 = vsel %vm414_vm3, %v1462_v21, %v1463_v37  ;;  %v6697_v54 = vpack.c.bf16 %v6694_v43, %v1734_v2  ;;  %v5887_v21 = vld [vmem:[#allocation9 + $0x168] sm:$0xff]   ;;  %v1747_v25 = vrot.slane %v6609_v60, 2  ;;  %v1748_v23 = vrot.slane %v6620_v35, 2 }
 0x1a0   : > { %5568 = vmatpush3.bf16.msra.mxu0 %v5869_v7  ;;  %5543 = vmatprep.subr.bf16.mxu1 %v5870_v10  ;;  %v6645_v30 = vpack.c.bf16 %v6639_v42, %v6636_v33  ;;  %v6647_v46 = vld [vmem:[#allocation3 + $0x60] sm:$0xff]  ;;  %v6649_v36 = vld [vmem:[#allocation3 + $0x68] sm:$0x3]  ;;  %v1738_v7 = vrot.slane %v6582_v63, 2  ;;  %v6691_v19 = vsel %vm620_vm4, %v1741_v61, %v1742_v4  ;;  %v1903_v27 = vpack.c.bf16 %v6709_v20, %v6609_v60  ;;  %v5903_v59 = vld [vmem:[#allocation9 + $0x1e8] sm:$0xff]  }
 0x1a1   : > { %5569 = vmatprep.subr.bf16.mxu0 %v5871_v62  ;;  %v6653_v14 = vpack.c.bf16 %v6609_v60, %v6647_v46  ;;  %v1465_v32 = vrot.slane %v6647_v46, 1  ;;  %v1466_v13 = vrot.slane %v6649_v36, 1  ;;  %v1902_v15 = vpack.c.bf16 %v6647_v46, %v6616_v16 }
 0x1a2   : > { %5513 = vmatprep.mubr.bf16.mxu1 %v6645_v30  ;;  %v1744_v37 = vrot.slane %v6647_v46, 2  ;;  %v2194_v46 = vpack.c.bf16 %v1734_v2, %v6662_v49  ;;  %v2048_v60 = vpack.c.bf16 %v6602_v8, %v6585_v34  ;;  %v5896_v34 = vld [vmem:[#allocation9 + $0x108] sm:$0xff]   ;;  %v5897_v8 = vld [vmem:[#allocation9 + $0x140] sm:$0xff]   ;;  %v2044_v58 = vrot.slane %v6709_v20, 1  ;;  %v5910_v2 = vld [vmem:[#allocation9 + $0x190] sm:$0xff]  }
 0x1a3   : > { %5544 = vmatpush3.bf16.msra.mxu1 %v5870_v10  ;;  %5538 = vmatmul.mubr.bf16.gmra.mxu0 %v6653_v14  ;;  %v6666_v31 = vsel %vm414_vm3, %v1465_v32, %v1466_v13  ;;  %v1739_v10 = vrot.slane %v6591_v3, 2  ;;  %v5886_v3 = vld [vmem:[#allocation9 + $0x130] sm:$0xff]   ;;  %v5891_v32 = vld [vmem:[#allocation9 + $0x158] sm:$0xff]   ;;  %v5898_v49 = vld [vmem:[#allocation9 + $0x100] sm:$0xff]  }
 0x1a4   : > { %5570 = vmatpush3.bf16.msra.mxu0 %v5871_v62  ;;  %5581 = vmatprep.mubr.bf16.mxu0 %v1900_v51  ;;  %v6673_v44 = vpack.c.bf16 %v6669_v29, %v6666_v31  ;;  %v1745_v62 = vrot.slane %v6649_v36, 2  ;;  %v6719_v36 = vsel %vm620_vm4, %v1747_v25, %v1748_v23  ;;  %v5892_v13 = vld [vmem:[#allocation9 + $0x118] sm:$0xff]   ;;  %v5894_v51 = vld [vmem:[#allocation9 + $0x110] sm:$0xff]   ;;  %v5922_v23 = vld [vmem:[#allocation9 + $0x200] sm:$0xff]  }
 0x1a5   : > { %5545 = vmatprep.subr.bf16.mxu1 %v5872_v28  ;;  %5571 = vmatprep.subr.bf16.mxu0 %v5873_v38  ;;  %v6700_v63 = vsel %vm620_vm4, %v1738_v7, %v1739_v10  ;;  %v5907_v7 = vld [vmem:[#allocation9 + $0x1d8] sm:$0xff]  }
 0x1a6   : > { %5514 = vmatmul.mubr.bf16.gmra.mxu1 %v6673_v44  ;;  %v6704_v16 = vpack.c.bf16 %v6691_v19, %v6700_v63  ;;  %v1746_v24 = vsel %vm620_vm4, %v1744_v37, %v1745_v62  ;;  %v5908_v10 = vld [vmem:[#allocation9 + $0x198] sm:$0xff]   ;;  %v5917_v37 = vld [vmem:[#allocation9 + $0x228] sm:$0xff]  }
 0x1a7   : > { %5546 = vmatpush3.bf16.msra.mxu1 %v5872_v28  ;;  %5557 = vmatprep.mubr.bf16.mxu1 %v1758_v47  ;;  %v6722_v35 = vpack.c.bf16 %v6719_v36, %v1746_v24  ;;  %v5890_v28 = vld [vmem:[#allocation9 + $0x120] sm:$0xff]  }
 0x1a8   : > { %5572 = vmatpush3.bf16.msra.mxu0 %v5873_v38  ;;  %5547 = vmatprep.subr.bf16.mxu1 %v5874_v52  ;;  %v5893_v38 = vld [vmem:[#allocation9 + $0x150] sm:$0xff]   ;;  %v1408_v47 = vld [vmem:[#allocation3 + $0x88] sm:$0x3] }
 0x1a9   : > { %5573 = vmatprep.subr.bf16.mxu0 %v5875_v55  ;;  %v2045_v61 = vrot.slane %v1408_v47, 1 }
 0x1ab   : > { %5548 = vmatpush3.bf16.msra.mxu1 %v5874_v52  ;;  %v5899_v52 = vld [vmem:[#allocation9 + $0x1f8] sm:$0xff]  }
 0x1ac   : > { %5574 = vmatpush3.bf16.msra.mxu0 %v5875_v55  ;;  %5549 = vmatprep.subr.bf16.mxu1 %v5876_v39  ;;  %v2195_v55 = vpack.c.bf16 %v6700_v63, %v6694_v43 }
 0x1ad   : > { %5575 = vmatprep.subr.bf16.mxu0 %v5877_v40 }
 0x1af   : > { %5550 = vmatpush3.bf16.msra.mxu1 %v5876_v39  ;;  %v5900_v39 = vld [vmem:[#allocation9 + $0x1b8] sm:$0xff]  }
 0x1b0   : > { %5576 = vmatpush3.bf16.msra.mxu0 %v5877_v40  ;;  %5551 = vmatprep.subr.bf16.mxu1 %v5878_v50  ;;  %v5901_v40 = vld [vmem:[#allocation9 + $0x1f0] sm:$0xff]  }
 0x1b1   : > { %5577 = vmatprep.subr.bf16.mxu0 %v5879_v57 }
 0x1b3   : > { %5552 = vmatpush3.bf16.msra.mxu1 %v5878_v50  ;;  %v2196_v50 = vpack.c.bf16 %v1746_v24, %v6691_v19  ;;  %v5915_v19 = vld [vmem:[#allocation9 + $0x238] sm:$0xff]  }
 0x1b4   : > { %5578 = vmatpush3.bf16.msra.mxu0 %v5879_v57  ;;  %5553 = vmatprep.subr.bf16.mxu1 %v5880_v48  ;;  %v2190_v57 = vrot.slane %v6709_v20, 2 }
 0x1b5   : > { %5579 = vmatprep.subr.bf16.mxu0 %v5881_v56 }
 0x1b7   : > { %5554 = vmatpush3.bf16.msra.mxu1 %v5880_v48  ;;  %v2191_v48 = vrot.slane %v1408_v47, 2 }
 0x1b8   : > { %5580 = vmatpush3.bf16.msra.mxu0 %v5881_v56  ;;  %5555 = vmatprep.subr.bf16.mxu1 %v5882_v53  ;;  %v2049_v56 = vpack.c.bf16 %v6636_v33, %v6605_v9  ;;  %v2046_v33 = vsel %vm414_vm3, %v2044_v58, %v2045_v61 }
 0x1b9   : > { %5613 = vmatprep.subr.bf16.mxu0 %v5883_v45  ;;  %v6737_v4 = vsel %vm620_vm4, %v2190_v57, %v2191_v48  ;;  %v2051_v6 = vpack.c.bf16 %v2046_v33, %v6669_v29  ;;  %v5912_v29 = vld [vmem:[#allocation9 + $0x188] sm:$0xff]  }
 0x1ba   : > { %v2197_v9 = vpack.c.bf16 %v6737_v4, %v6719_v36 }
 0x1bb   : > { %5556 = vmatpush3.bf16.msra.mxu1 %v5882_v53  ;;  %5582 = vmatmul.mubr.bf16.vlgmr.msra.gmra.mxu0 %v1901_v1  ;;  %v5902_v53 = vld [vmem:[#allocation9 + $0x1b0] sm:$0xff]  }
 0x1bc   : > { %5585 = vmatprep.mubr.bf16.mxu0 %v1902_v15  ;;  %5614 = vmatpush3.bf16.msra.mxu0 %v5883_v45  ;;  %v2050_v45 = vpack.c.bf16 %v6666_v31, %v6639_v42  ;;  %v5904_v42 = vld [vmem:[#allocation9 + $0x1a8] sm:$0xff]   ;;  %v5905_v31 = vld [vmem:[#allocation9 + $0x1e0] sm:$0xff]   ;;  %v5909_v1 = vld [vmem:[#allocation9 + $0x1d0] sm:$0xff]  }
 0x1bd   : > { %5589 = vmatprep.subr.bf16.mxu1 %v5884_v11  ;;  %5615 = vmatprep.subr.bf16.mxu0 %v5885_v12  ;;  %v1410_v15 = vld [vmem:[#allocation3 + $0x98] sm:$0x3] }
 0x1be   : > { %5558 = vmatmul.mubr.bf16.vlgmr.msra.gmra.mxu1 %v6697_v54  ;;  %v2478_v63 = vrot.slane %v1410_v15, 1 }
 0x1bf   : > { %5561 = vmatprep.mubr.bf16.mxu1 %v6704_v16  ;;  %5590 = vmatpush3.bf16.msra.mxu1 %v5884_v11  ;;  %v5913_v11 = vld [vmem:[#allocation9 + $0x1c0] sm:$0xff]  }
 0x1c0   : > { %5616 = vmatpush3.bf16.msra.mxu0 %v5885_v12  ;;  %5591 = vmatprep.subr.bf16.mxu1 %v5886_v3  ;;  %v1409_v12 = vld [vmem:[#allocation3 + $0x90] sm:$0xff] }
 0x1c1   : > { %5617 = vmatprep.subr.bf16.mxu0 %v5887_v21  ;;  %v2477_v43 = vrot.slane %v1409_v12, 1  ;;  %v2336_v25 = vpack.c.bf16 %v1409_v12, %v6709_v20  ;;  %v2620_v20 = vrot.slane %v1409_v12, 2 }
 0x1c3   : > { %5586 = vmatmul.mubr.bf16.gmra.mxu0 %v1903_v27  ;;  %5592 = vmatpush3.bf16.msra.mxu1 %v5886_v3  ;;  %v5916_v3 = vld [vmem:[#allocation9 + $0x230] sm:$0xff]   ;;  %v2621_v27 = vrot.slane %v1410_v15, 2 }
 0x1c4   : > { %5618 = vmatpush3.bf16.msra.mxu0 %v5887_v21  ;;  %5629 = vmatprep.mubr.bf16.mxu0 %v2194_v46  ;;  %v2479_v21 = vsel %vm414_vm3, %v2477_v43, %v2478_v63 }
 0x1c5   : > { %5593 = vmatprep.subr.bf16.mxu1 %v5888_v41  ;;  %5619 = vmatprep.subr.bf16.mxu0 %v5889_v26  ;;  %v2481_v62 = vpack.c.bf16 %v2479_v21, %v2046_v33 }
 0x1c6   : > { %5562 = vmatmul.mubr.bf16.gmra.mxu1 %v6722_v35 }
 0x1c7   : > { %5594 = vmatpush3.bf16.msra.mxu1 %v5888_v41  ;;  %5605 = vmatprep.mubr.bf16.mxu1 %v2048_v60 }
 0x1c8   : > { %5620 = vmatpush3.bf16.msra.mxu0 %v5889_v26  ;;  %5595 = vmatprep.subr.bf16.mxu1 %v5890_v28 }
 0x1c9   : > { %5621 = vmatprep.subr.bf16.mxu0 %v5891_v32 }
 0x1cb   : > { %5596 = vmatpush3.bf16.msra.mxu1 %v5890_v28  ;;  %v6759_v28 = vld [vmem:[%s7444_s6] sm:$0xff]  }
 0x1cc   : > { %5622 = vmatpush3.bf16.msra.mxu0 %v5891_v32  ;;  %5597 = vmatprep.subr.bf16.mxu1 %v5892_v13  ;;  %7479 = vst [vmem:[#allocation16_spill] sm:$0xff] %v6759_v28 }
 0x1cd   : > { %5623 = vmatprep.subr.bf16.mxu0 %v5893_v38 }
 0x1cf   : > { %5598 = vmatpush3.bf16.msra.mxu1 %v5892_v13 }
 0x1d0   : > { %5624 = vmatpush3.bf16.msra.mxu0 %v5893_v38  ;;  %5599 = vmatprep.subr.bf16.mxu1 %v5894_v51 }
 0x1d1   : > { %5625 = vmatprep.subr.bf16.mxu0 %v5895_v22 }
 0x1d3   : > { %5600 = vmatpush3.bf16.msra.mxu1 %v5894_v51 }
 0x1d4   : > { %5626 = vmatpush3.bf16.msra.mxu0 %v5895_v22  ;;  %5601 = vmatprep.subr.bf16.mxu1 %v5896_v34 }
 0x1d5   : > { %5627 = vmatprep.subr.bf16.mxu0 %v5897_v8 }
 0x1d7   : > { %5602 = vmatpush3.bf16.msra.mxu1 %v5896_v34 }
 0x1d8   : > { %5628 = vmatpush3.bf16.msra.mxu0 %v5897_v8  ;;  %5603 = vmatprep.subr.bf16.mxu1 %v5898_v49 }
 0x1d9   : > { %5661 = vmatprep.subr.bf16.mxu0 %v5899_v52 }
 0x1db   : > { %5604 = vmatpush3.bf16.msra.mxu1 %v5898_v49  ;;  %5630 = vmatmul.mubr.bf16.vlgmr.msra.gmra.mxu0 %v2195_v55 }
 0x1dc   : > { %5633 = vmatprep.mubr.bf16.mxu0 %v2196_v50  ;;  %5662 = vmatpush3.bf16.msra.mxu0 %v5899_v52 }
 0x1dd   : > { %5637 = vmatprep.subr.bf16.mxu1 %v5900_v39  ;;  %5663 = vmatprep.subr.bf16.mxu0 %v5901_v40 }
 0x1de   : > { %5606 = vmatmul.mubr.bf16.vlgmr.msra.gmra.mxu1 %v2049_v56 }
 0x1df   : > { %5609 = vmatprep.mubr.bf16.mxu1 %v2050_v45  ;;  %5638 = vmatpush3.bf16.msra.mxu1 %v5900_v39 }
 0x1e0   : > { %5664 = vmatpush3.bf16.msra.mxu0 %v5901_v40  ;;  %5639 = vmatprep.subr.bf16.mxu1 %v5902_v53 }
 0x1e1   : > { %5665 = vmatprep.subr.bf16.mxu0 %v5903_v59 }
 0x1e3   : > { %5634 = vmatmul.mubr.bf16.gmra.mxu0 %v2197_v9  ;;  %5640 = vmatpush3.bf16.msra.mxu1 %v5902_v53 }
 0x1e4   : > { %5666 = vmatpush3.bf16.msra.mxu0 %v5903_v59  ;;  %5677 = vmatprep.mubr.bf16.mxu0 %v6614_v17  ;;  %v5911_v17 = vld [vmem:[#allocation9 + $0x1c8] sm:$0xff]  }
 0x1e5   : > { %5641 = vmatprep.subr.bf16.mxu1 %v5904_v42  ;;  %5667 = vmatprep.subr.bf16.mxu0 %v5905_v31 }
 0x1e6   : > { %5610 = vmatmul.mubr.bf16.gmra.mxu1 %v2051_v6 }
 0x1e7   : > { %5642 = vmatpush3.bf16.msra.mxu1 %v5904_v42  ;;  %5653 = vmatprep.mubr.bf16.mxu1 %v6596_v5  ;;  %v5914_v5 = vld [vmem:[#allocation9 + $0x180] sm:$0xff]  }
 0x1e8   : > { %5668 = vmatpush3.bf16.msra.mxu0 %v5905_v31  ;;  %5643 = vmatprep.subr.bf16.mxu1 %v5906_v0 }
 0x1e9   : > { %5669 = vmatprep.subr.bf16.mxu0 %v5907_v7 }
 0x1eb   : > { %5644 = vmatpush3.bf16.msra.mxu1 %v5906_v0 }
 0x1ec   : > { %5670 = vmatpush3.bf16.msra.mxu0 %v5907_v7  ;;  %5645 = vmatprep.subr.bf16.mxu1 %v5908_v10 }
 0x1ed   : > { %5671 = vmatprep.subr.bf16.mxu0 %v5909_v1 }
 0x1ef   : > { %5646 = vmatpush3.bf16.msra.mxu1 %v5908_v10 }
 0x1f0   : > { %5672 = vmatpush3.bf16.msra.mxu0 %v5909_v1  ;;  %5647 = vmatprep.subr.bf16.mxu1 %v5910_v2 }
 0x1f1   : > { %5673 = vmatprep.subr.bf16.mxu0 %v5911_v17 }
 0x1f3   : > { %5648 = vmatpush3.bf16.msra.mxu1 %v5910_v2 }
 0x1f4   : > { %5674 = vmatpush3.bf16.msra.mxu0 %v5911_v17  ;;  %5649 = vmatprep.subr.bf16.mxu1 %v5912_v29 }
 0x1f5   : > { %5675 = vmatprep.subr.bf16.mxu0 %v5913_v11 }
 0x1f7   : > { %5650 = vmatpush3.bf16.msra.mxu1 %v5912_v29 }
 0x1f8   : > { %5676 = vmatpush3.bf16.msra.mxu0 %v5913_v11  ;;  %5651 = vmatprep.subr.bf16.mxu1 %v5914_v5 }
 0x1fb   : > { %5652 = vmatpush3.bf16.msra.mxu1 %v5914_v5  ;;  %5678 = vmatmul.mubr.bf16.vlgmr.msra.gmra.mxu0 %v6645_v30  ;;  %v5918_v30 = vld [vmem:[#allocation9 + $0x220] sm:$0xff]  }
 0x1fc   : > { %5681 = vmatprep.mubr.bf16.mxu0 %v6673_v44  ;;  %5685 = vmatprep.subr.bf16.mxu1 %v5915_v19  ;;  %v5920_v44 = vld [vmem:[#allocation9 + $0x210] sm:$0xff]  }
 0x1fe   : > { %5654 = vmatmul.mubr.bf16.vlgmr.msra.gmra.mxu1 %v6624_v18  ;;  %v5919_v18 = vld [vmem:[#allocation9 + $0x218] sm:$0xff]  }
 0x1ff   : > { %5657 = vmatprep.mubr.bf16.mxu1 %v6653_v14  ;;  %5686 = vmatpush3.bf16.msra.mxu1 %v5915_v19  ;;  %v5921_v14 = vld [vmem:[#allocation9 + $0x208] sm:$0xff]  }
 0x200   : > { %5687 = vmatprep.subr.bf16.mxu1 %v5916_v3 }
 0x203   : > { %5682 = vmatmul.mubr.bf16.gmra.mxu0 %v2481_v62  ;;  %5688 = vmatpush3.bf16.msra.mxu1 %v5916_v3 }
 0x204   : > { %5689 = vmatprep.subr.bf16.mxu1 %v5917_v37  ;;  %5711 = vmatprep.mubr.msk.bf16.mxu0 %vm2819_vm5, %v6759_v28 }
 0x206   : > { %5658 = vmatmul.mubr.bf16.gmra.mxu1 %v2336_v25 }
 0x207   : > { %5690 = vmatpush3.bf16.msra.mxu1 %v5917_v37  ;;  %5701 = vmatprep.mubr.bf16.mxu1 %v6697_v54  ;;  %v2622_v54 = vsel %vm620_vm4, %v2620_v20, %v2621_v27 }
 0x208   : > { %5691 = vmatprep.subr.bf16.mxu1 %v5918_v30  ;;  %v2624_v24 = vpack.c.bf16 %v2622_v54, %v6737_v4 }
 0x20b   : > { %5692 = vmatpush3.bf16.msra.mxu1 %v5918_v30 }
 0x20c   : > { %5693 = vmatprep.subr.bf16.mxu1 %v5919_v18 }
 0x20f   : > { %5694 = vmatpush3.bf16.msra.mxu1 %v5919_v18 }
 0x210   : > { %5695 = vmatprep.subr.bf16.mxu1 %v5920_v44 }
 0x213   : > { %5696 = vmatpush3.bf16.msra.mxu1 %v5920_v44 }
 0x214   : > { %5697 = vmatprep.subr.bf16.mxu1 %v5921_v14 }
 0x217   : > { %5698 = vmatpush3.bf16.msra.mxu1 %v5921_v14 }
 0x218   : > { %5699 = vmatprep.subr.bf16.mxu1 %v5922_v23 }
 0x21b   : > { %5700 = vmatpush3.bf16.msra.mxu1 %v5922_v23 }
 0x21e   : > { %5702 = vmatmul.mubr.bf16.vlgmr.msra.gmra.mxu1 %v6704_v16 }
 0x21f   : > { %5705 = vmatprep.mubr.bf16.mxu1 %v6722_v35 }
 0x226   : > { %5706 = vmatmul.mubr.bf16.gmra.mxu1 %v2624_v24 }
 0x227   : > { %5729 = vmatprep.mubr.msk.bf16.mxu1 %vm2819_vm5, %v6759_v28 }
 0x25b   : > { %v5535_v60 = vpop.f32.mrf.mxu0 }
 0x25d   : > { %v1695_v35 = vpop.f32.mrf.mxu0 }
 0x25e   : > { %v5511_v41 = vpop.f32.mrf.mxu1 }
 0x25f   : > { %v5536_v13 = vpop.f32.mrf.mxu0  ;;  %v1704_v21 = vadd.f32 %v5535_v60, %v5511_v41 }
 0x260   : > { %v1582_v26 = vpop.f32.mrf.mxu1 }
 0x261   : > { %v1698_v51 = vpop.f32.mrf.mxu0  ;;  %v1696_v25 = vadd.f32 %v1695_v35, %v1582_v26 }
 0x262   : > { %v5512_v46 = vpop.f32.mrf.mxu1 }
 0x263   : > { %v6769_v34 = vpop.f32.mrf.mxu0  ;;  %v1707_v44 = vadd.f32 %v5536_v13, %v5512_v46 }
 0x264   : > { %v1585_v36 = vpop.f32.mrf.mxu1 }
 0x265   : > { %v1711_v49 = vpop.f32.mrf.mxu0  ;;  %v1699_v20 = vadd.f32 %v1698_v51, %v1585_v36 }
 0x266   : > { %v6765_v16 = vpop.f32.mrf.mxu1 }
 0x267   : > { %v5540_v47 = vpop.f32.mrf.mxu0 }
 0x268   : > { %v1598_v32 = vpop.f32.mrf.mxu1 }
 0x269   : > { %v1714_v39 = vpop.f32.mrf.mxu0 }
 0x26a   : > { %v5516_v38 = vpop.f32.mrf.mxu1 }
 0x26c   : > { %v6767_v22 = vpop.f32.mrf.mxu1 }
 0x26d   : > { %v1715_v36 = vadd.f32 %v1714_v39, %v6767_v22 }
 0x27b   : > { %v5583_v50 = vpop.f32.mrf.mxu0 }
 0x27d   : > { %v2003_v48 = vpop.f32.mrf.mxu0 }
 0x27e   : > { %v5559_v8 = vpop.f32.mrf.mxu1 }
 0x27f   : > { %v5584_v53 = vpop.f32.mrf.mxu0  ;;  %v1894_v30 = vadd.f32 %v5559_v8, %v1704_v21 }
 0x280   : > { %v1861_v52 = vpop.f32.mrf.mxu1 }
 0x281   : > { %v2006_v59 = vpop.f32.mrf.mxu0  ;;  %v1892_v14 = vadd.f32 %v1861_v52, %v1696_v25  ;;  %v2036_v54 = vadd.f32 %v5583_v50, %v1894_v30  ;;  %v6807_v25 = vld [vmem:[%s7442_s4 + $0x1] ss:$0 sm:$0xff] }
 0x282   : > { %v5560_v55 = vpop.f32.mrf.mxu1 }
 0x283   : > { %v6773_v61 = vpop.f32.mrf.mxu0  ;;  %v1895_v27 = vadd.f32 %v5560_v55, %v1707_v44 }
 0x284   : > { %v1864_v40 = vpop.f32.mrf.mxu1  ;;  %7480 = vst [vmem:[#allocation17_spill] sm:$0xff] %v6773_v61 }
 0x285   : > { %v2019_v9 = vpop.f32.mrf.mxu0  ;;  %v1893_v28 = vadd.f32 %v1864_v40, %v1699_v20  ;;  %v2037_v60 = vadd.f32 %v5584_v53, %v1895_v27 }
 0x286   : > { %v6771_v57 = vpop.f32.mrf.mxu1 }
 0x287   : > { %v5588_v42 = vpop.f32.mrf.mxu0  ;;  %v2035_v8 = vadd.f32 %v2006_v59, %v1893_v28 }
 0x288   : > { %v1877_v56 = vpop.f32.mrf.mxu1 }
 0x289   : > { %v6775_v6 = vpop.f32.mrf.mxu0 }
 0x28a   : > { %v5564_v45 = vpop.f32.mrf.mxu1  ;;  %7481 = vst [vmem:[#allocation18_spill] sm:$0xff] %v6775_v6 }
 0x28c   : > { %v1880_v58 = vpop.f32.mrf.mxu1 }
 0x29b   : > { %v5631_v7 = vpop.f32.mrf.mxu0 }
 0x29d   : > { %v2297_v1 = vpop.f32.mrf.mxu0 }
 0x29e   : > { %v5607_v4 = vpop.f32.mrf.mxu1 }
 0x29f   : > { %v5632_v17 = vpop.f32.mrf.mxu0 }
 0x2a0   : > { %v2151_v33 = vpop.f32.mrf.mxu1 }
 0x2a1   : > { %v2300_v11 = vpop.f32.mrf.mxu0 }
 0x2a2   : > { %v5608_v31 = vpop.f32.mrf.mxu1 }
 0x2a3   : > { %v6779_v12 = vpop.f32.mrf.mxu0  ;;  %v2185_v35 = vadd.f32 %v5608_v31, %v2037_v60  ;;  %v7486_v31 = vld [vmem:[#allocation18_spill] sm:$0xff] }
 0x2a4   : > { %v2154_v0 = vpop.f32.mrf.mxu1  ;;  %7483 = vst [vmem:[#allocation14_spill] sm:$0xff] %v6779_v12  ;;  %v2034_v12 = vadd.f32 %v2003_v48, %v1892_v14 }
 0x2a5   : > { %v2313_v19 = vpop.f32.mrf.mxu0  ;;  %v2183_v51 = vadd.f32 %v2154_v0, %v2035_v8 }
 0x2a6   : > { %v6777_v10 = vpop.f32.mrf.mxu1  ;;  %v2182_v41 = vadd.f32 %v2151_v33, %v2034_v12 }
 0x2a7   : > { %7482 = vst [vmem:[#allocation19_spill] sm:$0xff] %v6777_v10  ;;  %v6781_v63 = vpop.f32.mrf.mxu0  ;;  %v1712_v10 = vadd.f32 %v1711_v49, %v1598_v32  ;;  %v1897_v32 = vadd.f32 %v1880_v58, %v1715_v36 }
 0x2a8   : > { %v2167_v2 = vpop.f32.mrf.mxu1  ;;  %7484 = vst [vmem:[#allocation15_spill] sm:$0xff] %v6781_v63  ;;  %v2184_v63 = vadd.f32 %v5607_v4, %v2036_v54  ;;  %v2328_v55 = vadd.f32 %v2297_v1, %v2182_v41  ;;  %v2331_v4 = vadd.f32 %v5632_v17, %v2185_v35 }
 0x2a9   : > { %v6783_v37 = vpop.f32.mrf.mxu0  ;;  %v1896_v6 = vadd.f32 %v1877_v56, %v1712_v10 }
 0x2aa   : > { %v5612_v29 = vpop.f32.mrf.mxu1  ;;  %7485 = vst [vmem:[#allocation20_spill] sm:$0xff] %v6783_v37  ;;  %v1723_v37 = vadd.f32 %v5540_v47, %v5516_v38  ;;  %v2330_v13 = vadd.f32 %v5631_v7, %v2184_v63  ;;  %v1720_v38 = vadd.f32 %v6769_v34, %v6765_v16  ;;  %v6797_v34 = vld [vmem:[%s7442_s4] ss:$0 sm:$0xff] }
 0x2ab   : > { %v2038_v50 = vadd.f32 %v2019_v9, %v1896_v6  ;;  %v2039_v6 = vadd.f32 %v7486_v31, %v1897_v32  ;;  %v7491_v8 = vld [vmem:[#allocation14_spill] sm:$0xff] }
 0x2ac   : > { %v2170_v5 = vpop.f32.mrf.mxu1  ;;  %v1899_v46 = vadd.f32 %v5564_v45, %v1723_v37  ;;  %v2329_v45 = vadd.f32 %v2300_v11, %v2183_v51  ;;  %v1898_v59 = vadd.f32 %v6771_v57, %v1720_v38 }
 0x2ad   : > { %v2186_v47 = vadd.f32 %v2167_v2, %v2038_v50  ;;  %v2187_v16 = vadd.f32 %v2170_v5, %v2039_v6  ;;  %v7487_v2 = vld [vmem:[#allocation17_spill] sm:$0xff] }
 0x2ae   : > { %v2041_v56 = vadd.f32 %v5588_v42, %v1899_v46  ;;  %v2040_v17 = vadd.f32 %v7487_v2, %v1898_v59  ;;  %v7489_v21 = vld [vmem:[#allocation19_spill] sm:$0xff] }
 0x2af   : > { %v2332_v7 = vadd.f32 %v2313_v19, %v2186_v47  ;;  %v7488_v12 = vld [vmem:[#allocation15_spill] sm:$0xff] }
 0x2b0   : > { %v2189_v33 = vadd.f32 %v5612_v29, %v2041_v56  ;;  %v2188_v5 = vadd.f32 %v7489_v21, %v2040_v17 }
 0x2b2   : > { %v2334_v46 = vadd.f32 %v7491_v8, %v2188_v5 }
 0x2bb   : > { %v5679_v18 = vpop.f32.mrf.mxu0 }
 0x2bd   : > { %v2581_v24 = vpop.f32.mrf.mxu0 }
 0x2be   : > { %v5655_v15 = vpop.f32.mrf.mxu1 }
 0x2bf   : > { %v5680_v26 = vpop.f32.mrf.mxu0  ;;  %v2469_v40 = vadd.f32 %v5655_v15, %v2330_v13  ;;  %v2335_v15 = vadd.f32 %v7488_v12, %v2189_v33  ;;  %v5924_v33 = vld [vmem:[%s7444_s6 + $0x8] sm:$0xff]  }
 0x2c0   : > { %v2436_v43 = vpop.f32.mrf.mxu1 }
 0x2c1   : > { %v2584_v48 = vpop.f32.mrf.mxu0  ;;  %v2467_v49 = vadd.f32 %v2436_v43, %v2328_v55  ;;  %v2614_v39 = vadd.f32 %v5679_v18, %v2469_v40  ;;  %v7490_v18 = vld [vmem:[#allocation20_spill] sm:$0xff] }
 0x2c2   : > { %v5656_v3 = vpop.f32.mrf.mxu1 }
 0x2c3   : > { %v2470_v28 = vadd.f32 %v5656_v3, %v2331_v4  ;;  %v6791_v22 = vpop.f32.mrf.mxu0  ;;  %v2612_v0 = vadd.f32 %v2581_v24, %v2467_v49 }
 0x2c4   : > { %v2439_v62 = vpop.f32.mrf.mxu1 }
 0x2c5   : > { %v2468_v58 = vadd.f32 %v2439_v62, %v2329_v45  ;;  %v2615_v57 = vadd.f32 %v5680_v26, %v2470_v28  ;;  %v2597_v29 = vpop.f32.mrf.mxu0 }
 0x2c6   : > { %v6785_v23 = vpop.f32.mrf.mxu1 }
 0x2c7   : > { %v2613_v3 = vadd.f32 %v2584_v48, %v2468_v58  ;;  %v5684_v27 = vpop.f32.mrf.mxu0  ;;  %v2473_v48 = vadd.f32 %v6785_v23, %v2334_v46 }
 0x2c8   : > { %v2452_v61 = vpop.f32.mrf.mxu1 }
 0x2c9   : > { %v2471_v11 = vadd.f32 %v2452_v61, %v2332_v7  ;;  %v2333_v61 = vadd.f32 %v7490_v18, %v2187_v16  ;;  %v2600_v32 = vpop.f32.mrf.mxu0  ;;  %v2618_v31 = vadd.f32 %v6791_v22, %v2473_v48 }
 0x2ca   : > { %v5660_v52 = vpop.f32.mrf.mxu1 }
 0x2cb   : > { %v2474_v37 = vadd.f32 %v5660_v52, %v2335_v15  ;;  %v2616_v24 = vadd.f32 %v2597_v29, %v2471_v11 }
 0x2cc   : > { %v2455_v53 = vpop.f32.mrf.mxu1 }
 0x2cd   : > { %v2472_v41 = vadd.f32 %v2455_v53, %v2333_v61  ;;  %v2619_v36 = vadd.f32 %v5684_v27, %v2474_v37  ;;  %v3248_v27 = vlaneseq }
 0x2cf   : > { %v2617_v56 = vadd.f32 %v2600_v32, %v2472_v41 }
 0x2de   : > { %v5703_v9 = vpop.f32.mrf.mxu1 }
 0x2df   : > { %v2757_v10 = vadd.f32 %v5703_v9, %v2614_v39 }
 0x2e0   : > { %v2724_v1 = vpop.f32.mrf.mxu1 }
 0x2e1   : > { %v2755_v42 = vadd.f32 %v2724_v1, %v2612_v0  ;;  %v2770_v62 = vmul.f32 %v6797_v34, %v2757_v10 }
 0x2e2   : > { %v5704_v43 = vpop.f32.mrf.mxu1 }
 0x2e3   : > { %v2768_v63 = vmul.f32 %v6797_v34, %v2755_v42  ;;  %v2758_v19 = vadd.f32 %v5704_v43, %v2615_v57  ;;  %v2783_v13 = vadd.f32 %v6807_v25, %v2770_v62  ;;  %v7492_v42 = vld [vmem:[#allocation16_spill] sm:$0xff]  ;;  %v6085_v62 = vmov 0  }
 0x2e4   : > { %v2727_v30 = vpop.f32.mrf.mxu1 }
 0x2e5   : > { %v2781_v44 = vadd.f32 %v6807_v25, %v2768_v63  ;;  %v2771_v14 = vmul.f32 %v6797_v34, %v2758_v19  ;;  %v2756_v20 = vadd.f32 %v2727_v30, %v2613_v3  ;;  %v2791_v53 = vmax.f32 %v2783_v13, 0.0 }
 0x2e6   : > { %v5707_v54 = vpop.f32.mrf.mxu1 }
 0x2e7   : > { %v2789_v60 = vmax.f32 %v2781_v44, 0.0  ;;  %v2784_v26 = vadd.f32 %v6807_v25, %v2771_v14  ;;  %v2769_v35 = vmul.f32 %v6797_v34, %v2756_v20  ;;  %v2799_v10 = vpack.c.bf16 %v2791_v53, %v2791_v53 }
 0x2e8   : > { %v2740_v52 = vpop.f32.mrf.mxu1  ;;  %v2761_v1 = vadd.f32 %v5707_v54, %v2618_v31  ;;  %v6086_v14 = vmov 1983009808  }
 0x2e9   : > { %v2797_v51 = vpack.c.bf16 %v2789_v60, %v2789_v60  ;;  %v2792_v55 = vmax.f32 %v2784_v26, 0.0  ;;  %v2782_v50 = vadd.f32 %v6807_v25, %v2769_v35  ;;  %v2759_v40 = vadd.f32 %v2740_v52, %v2616_v24 }
 0x2ea   : > { %v5708_v49 = vpop.f32.mrf.mxu1  ;;  %v2774_v17 = vmul.f32 %v6797_v34, %v2761_v1  ;;  %v2932_v19 = vsel %vm2826_vm6, %v2799_v10, 0  ;;  %v3246_v20 = vunpack.c.l.s4 %v6086_v14  ;;  %v3249_v35 = vshrl.u32 %v3248_v27, 7 }
 0x2eb   : > { %v2800_v4 = vpack.c.bf16 %v2792_v55, %v2792_v55  ;;  %v2790_v38 = vmax.f32 %v2782_v50, 0.0  ;;  %v2762_v47 = vadd.f32 %v5708_v49, %v2619_v36  ;;  %5757 = vmatprep.subr.msk.bf16.mxu0 %vm2826_vm6, %v2797_v51  ;;  %v2772_v28 = vmul.f32 %v6797_v34, %v2759_v40 }
 0x2ec   : > { %v2743_v45 = vpop.f32.mrf.mxu1  ;;  %v2828_v59 = vsel %vm2826_vm6, %v2797_v51, 0  ;;  %v2787_v43 = vadd.f32 %v6807_v25, %v2774_v17  ;;  %v3247_v26 = vunpack.c.0.s8 %v3246_v20 }
 0x2ed   : > { %v2798_v23 = vpack.c.bf16 %v2790_v38, %v2790_v38  ;;  %v2775_v39 = vmul.f32 %v6797_v34, %v2762_v47  ;;  %v2760_v9 = vadd.f32 %v2743_v45, %v2617_v56  ;;  %5710 = vmatpush3.bf16.msra.mxu0 %v2828_v59  ;;  %5760 = vmatprep.subr.msk.bf16.mxu1 %vm2826_vm6, %v2800_v4  ;;  %v2984_v6 = vsel %vm2826_vm6, %v2800_v4, 0 }
 0x2ee   : > { %5728 = vmatpush3.bf16.msra.mxu1 %v2984_v6  ;;  %v2785_v16 = vadd.f32 %v6807_v25, %v2772_v28  ;;  %v2795_v3 = vmax.f32 %v2787_v43, 0.0  ;;  %v6878_v36 = vsub.s32 %v3247_v26, %v3249_v35  ;;  %v6087_v28 = vmov 1934713408  }
 0x2ef   : > { %v2788_v58 = vadd.f32 %v6807_v25, %v2775_v39  ;;  %v2773_v0 = vmul.f32 %v6797_v34, %v2760_v9  ;;  %5758 = vmatprep.subr.msk.bf16.mxu0 %vm2826_vm6, %v2798_v23  ;;  %v2880_v7 = vsel %vm2826_vm6, %v2798_v23, 0  ;;  %v3310_v45 = vunpack.c.l.s4 %v6087_v28 }
 0x2f0   : > { %5712 = vmatmul.mubr.msk.bf16.vlgmr.msra.gmra.mxu0 %vm2819_vm5, %v5924_v33  ;;  %v2793_v29 = vmax.f32 %v2785_v16, 0.0  ;;  %v2803_v21 = vpack.c.bf16 %v2795_v3, %v2795_v3 }
 0x2f1   : > { %v2786_v22 = vadd.f32 %v6807_v25, %v2773_v0  ;;  %5716 = vmatpush3.bf16.msra.mxu0 %v2880_v7  ;;  %5717 = vmatprep.mubr.msk.bf16.mxu0 %vm2819_vm5, %v7492_v42  ;;  %v2796_v57 = vmax.f32 %v2788_v58, 0.0  ;;  %v3311_v1 = vunpack.c.0.s8 %v3310_v45 }
 0x2f2   : > { %5759 = vmatprep.subr.msk.bf16.mxu0 %vm2826_vm6, %v2799_v10  ;;  %5730 = vmatmul.mubr.msk.bf16.vlgmr.msra.gmra.mxu1 %vm2819_vm5, %v5924_v33  ;;  %v2801_v63 = vpack.c.bf16 %v2793_v29, %v2793_v29  ;;  %v3140_v37 = vsel %vm2826_vm6, %v2803_v21, 0 }
 0x2f3   : > { %v2794_v2 = vmax.f32 %v2786_v22, 0.0  ;;  %5741 = vmatprep.mubr.msk.bf16.mxu1 %vm2819_vm5, %v7492_v42  ;;  %v2804_v12 = vpack.c.bf16 %v2796_v57, %v2796_v57 }
 0x2f4   : > { %v3036_v5 = vsel %vm2826_vm6, %v2801_v63, 0 }
 0x2f5   : > { %v2802_v11 = vpack.c.bf16 %v2794_v2, %v2794_v2  ;;  %v3192_v34 = vsel %vm2826_vm6, %v2804_v12, 0 }
 0x2f7   : > { %5762 = vmatprep.subr.msk.bf16.mxu1 %vm2826_vm6, %v2802_v11  ;;  %v3088_v15 = vsel %vm2826_vm6, %v2802_v11, 0 }
 0x2f8   : > { %5718 = vmatmul.mubr.msk.bf16.vlgmr.msra.gmra.mxu0 %vm2819_vm5, %v5924_v33  ;;  %5740 = vmatpush3.bf16.msra.mxu1 %v3088_v15  ;;  %v6918_v15 = vsub.s32 %v3311_v1, %v3249_v35 }
 0x2f9   : > { %5722 = vmatpush3.bf16.msra.mxu0 %v2932_v19  ;;  %5764 = vmatprep.subr.msk.bf16.mxu1 %vm2826_vm6, %v2804_v12 }
 0x2fa   : > { %5761 = vmatprep.subr.msk.bf16.mxu0 %vm2826_vm6, %v2801_v63  ;;  %5723 = vmatprep.mubr.msk.bf16.mxu0 %vm2819_vm5, %v7492_v42 }
 0x2fb   : > { %5742 = vmatmul.mubr.msk.bf16.vlgmr.msra.gmra.mxu1 %vm2819_vm5, %v5924_v33 }
 0x2fc   : > { %5752 = vmatpush3.bf16.msra.mxu1 %v3192_v34  ;;  %5753 = vmatprep.mubr.msk.bf16.mxu1 %vm2819_vm5, %v7492_v42 }
 0x300   : > { %5724 = vmatmul.mubr.msk.bf16.vlgmr.msra.gmra.mxu0 %vm2819_vm5, %v5924_v33 }
 0x301   : > { %5734 = vmatpush3.bf16.msra.mxu0 %v3036_v5  ;;  %5735 = vmatprep.mubr.msk.bf16.mxu0 %vm2819_vm5, %v7492_v42 }
 0x302   : > { %5763 = vmatprep.subr.msk.bf16.mxu0 %vm2826_vm6, %v2803_v21 }
 0x303   : > { %5754 = vmatmul.mubr.msk.bf16.vlgmr.msra.gmra.mxu1 %vm2819_vm5, %v5924_v33 }
 0x304   : > { %4020 = vmatprep.mubr.bf16.mxu1 %v6085_v62 }
 0x308   : > { %5736 = vmatmul.mubr.msk.bf16.vlgmr.msra.gmra.mxu0 %vm2819_vm5, %v5924_v33 }
 0x309   : > { %5746 = vmatpush3.bf16.msra.mxu0 %v3140_v37  ;;  %5747 = vmatprep.mubr.msk.bf16.mxu0 %vm2819_vm5, %v7492_v42 }
 0x310   : > { %5748 = vmatmul.mubr.msk.bf16.vlgmr.msra.gmra.mxu0 %vm2819_vm5, %v5924_v33 }
 0x311   : > { %3967 = vmatprep.mubr.bf16.mxu0 %v6085_v62 }
 0x3b0   : > { %v5713_v25 = vpop.f32.mrf.mxu0 }
 0x3b2   : > { %v6868_v30 = vpop.f32.mrf.mxu0  ;;  %v5731_v18 = vpop.f32.mrf.mxu1 }
 0x3b4   : > { %v5714_v61 = vpop.f32.mrf.mxu0  ;;  %v6870_v44 = vpop.f32.mrf.mxu1 }
 0x3b6   : > { %v6872_v54 = vpop.f32.mrf.mxu0  ;;  %v5732_v24 = vpop.f32.mrf.mxu1 }
 0x3b8   : > { %v5719_v41 = vpop.f32.mrf.mxu0  ;;  %v6874_v60 = vpop.f32.mrf.mxu1 }
 0x3b9   : > { %v3532_v8 = vcombine.high %v5719_v41, %v5731_v18  ;;  %v3531_v48 = vcombine.low %v5719_v41, %v5731_v18 }
 0x3ba   : > { %v2916_v46 = vpop.f32.mrf.mxu0 }
 0x3bb   : > { %v6876_v13 = vpop.f32.mrf.mxu1  ;;  %v6889_v33 = vrot.slane %v3531_v48, %v6878_v36  ;;  %v6892_v23 = vrot.slane %v3532_v8, %v6878_v36  ;;  %v3259_v12 = vcombine.low %v2916_v46, %v6870_v44  ;;  %v3260_v5 = vcombine.high %v2916_v46, %v6870_v44 }
 0x3bc   : > { %v5720_v52 = vpop.f32.mrf.mxu0 }
 0x3bd   : > { %v3667_v51 = vcombine.low %v5720_v52, %v5732_v24  ;;  %v3668_v55 = vcombine.high %v5720_v52, %v5732_v24  ;;  %v6880_v50 = vpop.f32.mrf.mxu1  ;;  %v3267_v41 = vrot.slane %v3259_v12, %v6878_v36  ;;  %v3274_v46 = vrot.slane %v3260_v5, %v6878_v36 }
 0x3be   : > { %v6882_v40 = vpop.f32.mrf.mxu0 }
 0x3bf   : > { %v3675_v32 = vrot.slane %v3667_v51, %v6878_v36  ;;  %v3682_v49 = vrot.slane %v3668_v55, %v6878_v36  ;;  %v5744_v4 = vpop.f32.mrf.mxu1  ;;  %v3395_v37 = vcombine.low %v6882_v40, %v6874_v60 }
 0x3c0   : > { %v5725_v38 = vpop.f32.mrf.mxu0 }
 0x3c1   : > { %v3515_v47 = vcombine.low %v5713_v25, %v5725_v38  ;;  %v3516_v56 = vcombine.high %v5713_v25, %v5725_v38  ;;  %v6886_v53 = vpop.f32.mrf.mxu1 }
 0x3c2   : > { %v2968_v59 = vpop.f32.mrf.mxu0 }
 0x3c3   : > { %v6895_v39 = vrot.slane %v3515_v47, %v6878_v36  ;;  %v6898_v9 = vrot.slane %v3516_v56, %v6878_v36  ;;  %v6900_v6 = vpop.f32.mrf.mxu1  ;;  %v3243_v57 = vcombine.low %v6868_v30, %v2968_v59  ;;  %v3244_v43 = vcombine.high %v6868_v30, %v2968_v59 }
 0x3c4   : > { %v5726_v31 = vpop.f32.mrf.mxu0  ;;  %v3564_v52 = vcombine.high %v6876_v13, %v6900_v6 }
 0x3c5   : > { %v3579_v58 = vcombine.low %v6895_v39, %v6889_v33  ;;  %v3580_v0 = vcombine.high %v6895_v39, %v6889_v33  ;;  %v3595_v7 = vcombine.low %v6898_v9, %v6892_v23  ;;  %v3596_v10 = vcombine.high %v6898_v9, %v6892_v23  ;;  %v3228_v17 = vpop.f32.mrf.mxu1 }
 0x3c6   : > { %v3651_v16 = vcombine.low %v5714_v61, %v5726_v31  ;;  %v3652_v22 = vcombine.high %v5714_v61, %v5726_v31  ;;  %v6910_v42 = vpop.f32.mrf.mxu0  ;;  %v3251_v25 = vrot.slane %v3243_v57, %v6878_v36  ;;  %v3258_v44 = vrot.slane %v3244_v43, %v6878_v36 }
 0x3c7   : > { %v5756_v61 = vpop.f32.mrf.mxu1  ;;  %v3379_v26 = vcombine.low %v6872_v54, %v6910_v42  ;;  %v3291_v51 = vcombine.low %v6880_v50, %v3228_v17  ;;  %v3292_v55 = vcombine.high %v6880_v50, %v3228_v17  ;;  %v3380_v50 = vcombine.high %v6872_v54, %v6910_v42 }
 0x3c8   : > { %v6913_v2 = vpop.f32.mrf.mxu0  ;;  %v3659_v29 = vrot.slane %v3651_v16, %v6878_v36  ;;  %v3666_v11 = vrot.slane %v3652_v22, %v6878_v36  ;;  %v3699_v35 = vcombine.low %v5744_v4, %v5756_v61  ;;  %v3700_v8 = vcombine.high %v5744_v4, %v5756_v61 }
 0x3c9   : > { %v3308_v4 = vcombine.high %v3251_v25, %v3267_v41  ;;  %v3323_v56 = vcombine.low %v3258_v44, %v3274_v46  ;;  %v3324_v28 = vcombine.high %v3258_v44, %v3274_v46  ;;  %v3387_v31 = vrot.slane %v3379_v26, %v6878_v36 }
 0x3ca   : > { %v3072_v63 = vpop.f32.mrf.mxu0  ;;  %v3715_v19 = vcombine.low %v3659_v29, %v3675_v32  ;;  %v3716_v34 = vcombine.high %v3659_v29, %v3675_v32  ;;  %v3731_v3 = vcombine.low %v3666_v11, %v3682_v49  ;;  %v3732_v21 = vcombine.high %v3666_v11, %v3682_v49 }
 0x3cb   : > { %v6951_v32 = vrot.slane %v3395_v37, %v6878_v36  ;;  %v3307_v49 = vcombine.low %v3251_v25, %v3267_v41  ;;  %v3707_v38 = vrot.slane %v3699_v35, %v6878_v36  ;;  %v3714_v47 = vrot.slane %v3700_v8, %v6878_v36  ;;  %v6976_v37 = vpop.f32.mrf.mxu1 }
 0x3cc   : > { %v5738_v18 = vpop.f32.mrf.mxu0  ;;  %v6926_v14 = vrot.slane %v3715_v19, %v6918_v15  ;;  %v6929_v20 = vrot.slane %v3716_v34, %v6918_v15  ;;  %v6932_v30 = vrot.slane %v3731_v3, %v6918_v15  ;;  %v6935_v27 = vrot.slane %v3732_v21, %v6918_v15 }
 0x3cd   : > { %v6961_v22 = vrot.slane %v3564_v52, %v6878_v36  ;;  %v3299_v57 = vrot.slane %v3291_v51, %v6878_v36  ;;  %v3306_v17 = vrot.slane %v3292_v55, %v6878_v36  ;;  %v3315_v3 = vrot.slane %v3307_v49, %v6918_v15 }
 0x3ce   : > { %v6938_v24 = vpop.f32.mrf.mxu0  ;;  %v3331_v35 = vrot.slane %v3323_v56, %v6918_v15  ;;  %v3443_v8 = vcombine.low %v3387_v31, %v6951_v32  ;;  %v3444_v46 = vcombine.high %v3387_v31, %v6951_v32  ;;  %v3427_v52 = vcombine.low %v6886_v53, %v6976_v37 }
 0x3d0   : > { %v6948_v48 = vpop.f32.mrf.mxu0 }
 0x3d1   : > { %v3548_v45 = vcombine.high %v6913_v2, %v6948_v48 }
 0x3d2   : > { %v3176_v59 = vpop.f32.mrf.mxu0 }
 0x3d3   : > { %v3275_v1 = vcombine.low %v3072_v63, %v3176_v59  ;;  %v3276_v16 = vcombine.high %v3072_v63, %v3176_v59  ;;  %v6966_v29 = vrot.slane %v3548_v45, %v6878_v36  ;;  %v3322_v63 = vrot.slane %v3308_v4, %v6918_v15 }
 0x3d4   : > { %v5750_v11 = vpop.f32.mrf.mxu0 }
 0x3d5   : > { %v3283_v12 = vrot.slane %v3275_v1, %v6878_v36  ;;  %v3290_v43 = vrot.slane %v3276_v16, %v6878_v36  ;;  %v3683_v19 = vcombine.low %v5738_v18, %v5750_v11  ;;  %v3684_v34 = vcombine.high %v5738_v18, %v5750_v11 }
 0x3d6   : > { %v3627_v21 = vcombine.low %v6966_v29, %v6961_v22  ;;  %v3628_v5 = vcombine.high %v6966_v29, %v6961_v22  ;;  %v3179_v26 = vpop.f32.mrf.mxu0  ;;  %v3338_v18 = vrot.slane %v3324_v28, %v6918_v15 }
 0x3d7   : > { %v3339_v25 = vcombine.low %v3283_v12, %v3299_v57  ;;  %v3340_v61 = vcombine.high %v3283_v12, %v3299_v57  ;;  %v3355_v44 = vcombine.low %v3290_v43, %v3306_v17  ;;  %v3356_v41 = vcombine.high %v3290_v43, %v3306_v17 }
 0x3d8   : > { %v3691_v45 = vrot.slane %v3683_v19, %v6878_v36  ;;  %v3698_v56 = vrot.slane %v3684_v34, %v6878_v36  ;;  %v3411_v28 = vcombine.low %v6938_v24, %v3179_v26  ;;  %v3435_v12 = vrot.slane %v3427_v52, %v6878_v36 }
 0x3d9   : > { %v3347_v51 = vrot.slane %v3339_v25, %v6918_v15  ;;  %v3354_v55 = vrot.slane %v3340_v61, %v6918_v15  ;;  %v3363_v49 = vrot.slane %v3355_v44, %v6918_v15  ;;  %v3370_v4 = vrot.slane %v3356_v41, %v6918_v15 }
 0x3da   : > { %v3747_v16 = vcombine.low %v3691_v45, %v3707_v38  ;;  %v3748_v57 = vcombine.high %v3691_v45, %v3707_v38  ;;  %v3763_v17 = vcombine.low %v3698_v56, %v3714_v47  ;;  %v3764_v11 = vcombine.high %v3698_v56, %v3714_v47 }
 0x3db   : > { %v3372_v59 = vcombine.high %v3315_v3, %v3347_v51  ;;  %v3374_v1 = vcombine.high %v3322_v63, %v3354_v55  ;;  %v3371_v32 = vcombine.low %v3315_v3, %v3347_v51  ;;  %v3373_v31 = vcombine.low %v3322_v63, %v3354_v55 }
 0x3dc   : > { %v3419_v43 = vrot.slane %v3411_v28, %v6878_v36  ;;  %v6994_v19 = vrot.slane %v3747_v16, %v6918_v15  ;;  %v6997_v34 = vrot.slane %v3748_v57, %v6918_v15  ;;  %v7000_v44 = vrot.slane %v3763_v17, %v6918_v15 }
 0x3dd   : > { %v3788_v25 = vpack.c.bf16 %v3372_v59, %v3372_v59  ;;  %v3790_v61 = vpack.c.bf16 %v3374_v1, %v3374_v1  ;;  %v7003_v3 = vrot.slane %v3764_v11, %v6918_v15  ;;  %v3451_v38 = vrot.slane %v3443_v8, %v6918_v15 }
 0x3de   : > { %v3412_v47 = vcombine.high %v6938_v24, %v3179_v26  ;;  %v3475_v63 = vcombine.low %v3419_v43, %v3435_v12  ;;  %v3476_v41 = vcombine.high %v3419_v43, %v3435_v12  ;;  %v3787_v52 = vpack.c.bf16 %v3371_v32, %v3371_v32  ;;  %v7019_v32 = vld [vmem:[%s7443_s5] sm:$0xff]  }
 0x3df   : > { %5171 = vmatprep.subr.msk.bf16.mxu0 %vm2826_vm6, %v3788_v25  ;;  %5174 = vmatprep.subr.msk.bf16.mxu1 %vm2826_vm6, %v3790_v61  ;;  %v3789_v51 = vpack.c.bf16 %v3373_v31, %v3373_v31  ;;  %v3376_v55 = vcombine.high %v3331_v35, %v3363_v49  ;;  %v3378_v45 = vcombine.high %v3338_v18, %v3370_v4 }
 0x3e0   : > { %v3458_v56 = vrot.slane %v3444_v46, %v6918_v15  ;;  %v3428_v28 = vcombine.high %v6886_v53, %v6976_v37  ;;  %v3483_v59 = vrot.slane %v3475_v63, %v6918_v15  ;;  %v3490_v8 = vrot.slane %v3476_v41, %v6918_v15 }
 0x3e1   : > { %v3840_v24 = vsel %vm2826_vm6, %v3787_v52, 0  ;;  %v3846_v26 = vsel %vm2826_vm6, %v3789_v51, 0  ;;  %v3792_v1 = vpack.c.bf16 %v3376_v55, %v3376_v55  ;;  %v3794_v16 = vpack.c.bf16 %v3378_v45, %v3378_v45 }
 0x3e2   : > { %3950 = vmatpush1.bf16.msra.mxu0 %v3840_v24  ;;  %4003 = vmatpush1.bf16.msra.mxu1 %v3846_v26  ;;  %v3375_v46 = vcombine.low %v3331_v35, %v3363_v49  ;;  %v3377_v31 = vcombine.low %v3338_v18, %v3370_v4  ;;  %v3508_v53 = vcombine.high %v3451_v38, %v3483_v59  ;;  %v7061_v4 = vld [vmem:[%s7443_s5 + $0x8] sm:$0xff]  }
 0x3e3   : > { %v3396_v37 = vcombine.high %v6882_v40, %v6874_v60  ;;  %v3426_v57 = vrot.slane %v3412_v47, %v6878_v36  ;;  %5177 = vmatprep.subr.msk.bf16.mxu0 %vm2826_vm6, %v3792_v1  ;;  %5180 = vmatprep.subr.msk.bf16.mxu1 %vm2826_vm6, %v3794_v16  ;;  %v3510_v17 = vcombine.high %v3458_v56, %v3490_v8 }
 0x3e4   : > { %v3394_v11 = vrot.slane %v3380_v50, %v6878_v36  ;;  %v3791_v12 = vpack.c.bf16 %v3375_v46, %v3375_v46  ;;  %v3793_v43 = vpack.c.bf16 %v3377_v31, %v3377_v31  ;;  %v3635_v35 = vrot.slane %v3627_v21, %v6918_v15 }
 0x3e5   : > { %v3642_v60 = vrot.slane %v3628_v5, %v6918_v15  ;;  %v3442_v40 = vrot.slane %v3428_v28, %v6878_v36  ;;  %5172 = vmatmul.mubr.msk.bf16.vlgmr.msra.gmra.mxu0 %vm2819_vm5, %v7019_v32  ;;  %5175 = vmatmul.mubr.msk.bf16.vlgmr.msra.gmra.mxu1 %vm2819_vm5, %v7019_v32  ;;  %v3796_v50 = vpack.c.bf16 %v3508_v53, %v3508_v53 }
 0x3e6   : > { %v3852_v54 = vsel %vm2826_vm6, %v3791_v12, 0  ;;  %v3858_v42 = vsel %vm2826_vm6, %v3793_v43, 0  ;;  %v3798_v18 = vpack.c.bf16 %v3510_v17, %v3510_v17  ;;  %3977 = vmatprep.mubr.bf16.mxu0 %v6085_v62  ;;  %4030 = vmatprep.mubr.bf16.mxu1 %v6085_v62  ;;  %v3410_v22 = vrot.slane %v3396_v37, %v6878_v36 }
 0x3e7   : > { %v3491_v29 = vcombine.low %v3426_v57, %v3442_v40  ;;  %4056 = vmatpush1.bf16.msra.mxu0 %v3852_v54  ;;  %4109 = vmatpush1.bf16.msra.mxu1 %v3858_v42  ;;  %v3603_v21 = vrot.slane %v3595_v7, %v6918_v15  ;;  %v3610_v5 = vrot.slane %v3596_v10, %v6918_v15 }
 0x3e8   : > { %v3492_v49 = vcombine.high %v3426_v57, %v3442_v40  ;;  %5183 = vmatprep.subr.msk.bf16.mxu0 %vm2826_vm6, %v3796_v50  ;;  %5186 = vmatprep.subr.msk.bf16.mxu1 %vm2826_vm6, %v3798_v18  ;;  %v3459_v25 = vcombine.low %v3394_v11, %v3410_v22  ;;  %v3460_v7 = vcombine.high %v3394_v11, %v3410_v22 }
 0x3e9   : > { %v7063_v61 = vcombine.high %v3603_v21, %v3635_v35  ;;  %v7065_v47 = vcombine.high %v3610_v5, %v3642_v60  ;;  %v3499_v63 = vrot.slane %v3491_v29, %v6918_v15  ;;  %v3507_v9 = vcombine.low %v3451_v38, %v3483_v59 }
 0x3ea   : > { %v3506_v23 = vrot.slane %v3492_v49, %v6918_v15  ;;  %v7069_v10 = vcombine.low %v3603_v21, %v3635_v35  ;;  %v7071_v41 = vcombine.low %v3610_v5, %v3642_v60  ;;  %v3509_v52 = vcombine.low %v3458_v56, %v3490_v8 }
 0x3eb   : > { %v7079_v51 = vcombine.high %v6926_v14, %v6994_v19  ;;  %v7083_v55 = vcombine.high %v6929_v20, %v6997_v34  ;;  %v3467_v38 = vrot.slane %v3459_v25, %v6918_v15  ;;  %v7090_v45 = vcombine.low %v6926_v14, %v6994_v19 }
 0x3ec   : > { %v3474_v56 = vrot.slane %v3460_v7, %v6918_v15  ;;  %v7095_v28 = vcombine.low %v6929_v20, %v6997_v34  ;;  %v7099_v59 = vcombine.high %v6932_v30, %v7000_v44  ;;  %v3547_v8 = vcombine.low %v6913_v2, %v6948_v48 }
 0x3ed   : > { %5173 = vmatmul.mubr.msk.bf16.gmra.mxu0 %vm2819_vm5, %v7061_v4  ;;  %5176 = vmatmul.mubr.msk.bf16.gmra.mxu1 %vm2819_vm5, %v7061_v4  ;;  %v3795_v24 = vpack.c.bf16 %v3507_v9, %v3507_v9  ;;  %v3512_v26 = vcombine.high %v3467_v38, %v3499_v63  ;;  %v7105_v1 = vcombine.high %v6935_v27, %v7003_v3 }
 0x3ee   : > { %4073 = vmatprep.mubr.bf16.mxu0 %v6085_v62  ;;  %4126 = vmatprep.mubr.bf16.mxu1 %v6085_v62  ;;  %v3797_v14 = vpack.c.bf16 %v3509_v52, %v3509_v52  ;;  %v3514_v19 = vcombine.high %v3474_v56, %v3506_v23  ;;  %v7109_v16 = vcombine.low %v6932_v30, %v7000_v44 }
 0x3ef   : > { %v7113_v20 = vcombine.low %v6935_v27, %v7003_v3  ;;  %v3563_v34 = vcombine.low %v6876_v13, %v6900_v6  ;;  %v3555_v2 = vrot.slane %v3547_v8, %v6878_v36  ;;  %v3864_v48 = vsel %vm2826_vm6, %v3795_v24, 0 }
 0x3f0   : > { %v3870_v30 = vsel %vm2826_vm6, %v3797_v14, 0  ;;  %v3800_v44 = vpack.c.bf16 %v3512_v26, %v3512_v26  ;;  %v3802_v46 = vpack.c.bf16 %v3514_v19, %v3514_v19  ;;  %v3513_v53 = vcombine.low %v3474_v56, %v3506_v23 }
 0x3f1   : > { %v3571_v27 = vrot.slane %v3563_v34, %v6878_v36  ;;  %v3511_v36 = vcombine.low %v3467_v38, %v3499_v63  ;;  %v3587_v37 = vrot.slane %v3579_v58, %v6918_v15  ;;  %v3594_v57 = vrot.slane %v3580_v0, %v6918_v15 }
 0x3f2   : > { %v3801_v11 = vpack.c.bf16 %v3513_v53, %v3513_v53  ;;  %v3808_v50 = vpack.c.bf16 %v7063_v61, %v7063_v61  ;;  %v3810_v18 = vpack.c.bf16 %v7065_v47, %v7065_v47  ;;  %v3807_v22 = vpack.c.bf16 %v7069_v10, %v7069_v10 }
 0x3f3   : > { %v3611_v13 = vcombine.low %v3555_v2, %v3571_v27  ;;  %v3612_v6 = vcombine.high %v3555_v2, %v3571_v27  ;;  %v3799_v17 = vpack.c.bf16 %v3511_v36, %v3511_v36  ;;  %v3809_v29 = vpack.c.bf16 %v7071_v41, %v7071_v41 }
 0x3f4   : > { %v3882_v60 = vsel %vm2826_vm6, %v3801_v11, 0  ;;  %v3900_v21 = vsel %vm2826_vm6, %v3807_v22, 0  ;;  %v3812_v49 = vpack.c.bf16 %v7079_v51, %v7079_v51  ;;  %v3814_v25 = vpack.c.bf16 %v7083_v55, %v7083_v55 }
 0x3f5   : > { %5178 = vmatmul.mubr.msk.bf16.vlgmr.msra.gmra.mxu0 %vm2819_vm5, %v7019_v32  ;;  %5181 = vmatmul.mubr.msk.bf16.vlgmr.msra.gmra.mxu1 %vm2819_vm5, %v7019_v32  ;;  %v3619_v3 = vrot.slane %v3611_v13, %v6918_v15  ;;  %v3626_v31 = vrot.slane %v3612_v6, %v6918_v15  ;;  %v3876_v35 = vsel %vm2826_vm6, %v3799_v17, 0  ;;  %v3906_v5 = vsel %vm2826_vm6, %v3809_v29, 0 }
 0x3f6   : > { %4162 = vmatpush1.bf16.msra.mxu0 %v3864_v48  ;;  %4215 = vmatpush1.bf16.msra.mxu1 %v3870_v30  ;;  %v3811_v61 = vpack.c.bf16 %v7090_v45, %v7090_v45  ;;  %v3813_v47 = vpack.c.bf16 %v7095_v28, %v7095_v28  ;;  %v3816_v23 = vpack.c.bf16 %v7099_v59, %v7099_v59 }
 0x3f7   : > { %5189 = vmatprep.subr.msk.bf16.mxu0 %vm2826_vm6, %v3800_v44  ;;  %5192 = vmatprep.subr.msk.bf16.mxu1 %vm2826_vm6, %v3802_v46  ;;  %v3644_v12 = vcombine.high %v3587_v37, %v3619_v3  ;;  %v3646_v43 = vcombine.high %v3594_v57, %v3626_v31  ;;  %v3643_v33 = vcombine.low %v3587_v37, %v3619_v3 }
 0x3f8   : > { %4083 = vmatprep.mubr.bf16.mxu0 %v6085_v62  ;;  %4136 = vmatprep.mubr.bf16.mxu1 %v6085_v62  ;;  %v3645_v39 = vcombine.low %v3594_v57, %v3626_v31  ;;  %v3912_v7 = vsel %vm2826_vm6, %v3811_v61, 0  ;;  %v3918_v63 = vsel %vm2826_vm6, %v3813_v47, 0  ;;  %v3818_v9 = vpack.c.bf16 %v7105_v1, %v7105_v1 }
 0x3f9   : > { %v3804_v58 = vpack.c.bf16 %v3644_v12, %v3644_v12  ;;  %v3806_v40 = vpack.c.bf16 %v3646_v43, %v3646_v43  ;;  %v3803_v0 = vpack.c.bf16 %v3643_v33, %v3643_v33  ;;  %v3815_v10 = vpack.c.bf16 %v7109_v16, %v7109_v16 }
 0x3fa   : > { %v3805_v15 = vpack.c.bf16 %v3645_v39, %v3645_v39  ;;  %v3817_v41 = vpack.c.bf16 %v7113_v20, %v7113_v20 }
 0x3fb   : > { %v3888_v54 = vsel %vm2826_vm6, %v3803_v0, 0  ;;  %v3924_v52 = vsel %vm2826_vm6, %v3815_v10, 0 }
 0x3fc   : > { %v3894_v42 = vsel %vm2826_vm6, %v3805_v15, 0  ;;  %v3930_v51 = vsel %vm2826_vm6, %v3817_v41, 0 }
 0x3fd   : > { %5179 = vmatmul.mubr.msk.bf16.gmra.mxu0 %vm2819_vm5, %v7061_v4  ;;  %5182 = vmatmul.mubr.msk.bf16.gmra.mxu1 %vm2819_vm5, %v7061_v4 }
 0x3fe   : > { %4179 = vmatprep.mubr.bf16.mxu0 %v6085_v62  ;;  %4232 = vmatprep.mubr.bf16.mxu1 %v6085_v62 }
 0x405   : > { %5184 = vmatmul.mubr.msk.bf16.vlgmr.msra.gmra.mxu0 %vm2819_vm5, %v7019_v32  ;;  %5187 = vmatmul.mubr.msk.bf16.vlgmr.msra.gmra.mxu1 %vm2819_vm5, %v7019_v32 }
 0x406   : > { %4268 = vmatpush1.bf16.msra.mxu0 %v3876_v35  ;;  %4321 = vmatpush1.bf16.msra.mxu1 %v3882_v60 }
 0x407   : > { %5195 = vmatprep.subr.msk.bf16.mxu0 %vm2826_vm6, %v3804_v58  ;;  %5198 = vmatprep.subr.msk.bf16.mxu1 %vm2826_vm6, %v3806_v40 }
 0x408   : > { %4189 = vmatprep.mubr.bf16.mxu0 %v6085_v62  ;;  %4242 = vmatprep.mubr.bf16.mxu1 %v6085_v62 }
 0x40d   : > { %5185 = vmatmul.mubr.msk.bf16.gmra.mxu0 %vm2819_vm5, %v7061_v4  ;;  %5188 = vmatmul.mubr.msk.bf16.gmra.mxu1 %vm2819_vm5, %v7061_v4 }
 0x40e   : > { %4285 = vmatprep.mubr.bf16.mxu0 %v6085_v62  ;;  %4338 = vmatprep.mubr.bf16.mxu1 %v6085_v62 }
 0x415   : > { %5190 = vmatmul.mubr.msk.bf16.vlgmr.msra.gmra.mxu0 %vm2819_vm5, %v7019_v32  ;;  %5193 = vmatmul.mubr.msk.bf16.vlgmr.msra.gmra.mxu1 %vm2819_vm5, %v7019_v32 }
 0x416   : > { %4374 = vmatpush1.bf16.msra.mxu0 %v3888_v54  ;;  %4427 = vmatpush1.bf16.msra.mxu1 %v3894_v42 }
 0x417   : > { %5201 = vmatprep.subr.msk.bf16.mxu0 %vm2826_vm6, %v3808_v50  ;;  %5204 = vmatprep.subr.msk.bf16.mxu1 %vm2826_vm6, %v3810_v18 }
 0x418   : > { %4295 = vmatprep.mubr.bf16.mxu0 %v6085_v62  ;;  %4348 = vmatprep.mubr.bf16.mxu1 %v6085_v62 }
 0x41d   : > { %5191 = vmatmul.mubr.msk.bf16.gmra.mxu0 %vm2819_vm5, %v7061_v4  ;;  %5194 = vmatmul.mubr.msk.bf16.gmra.mxu1 %vm2819_vm5, %v7061_v4 }
 0x41e   : > { %4391 = vmatprep.mubr.bf16.mxu0 %v6085_v62  ;;  %4444 = vmatprep.mubr.bf16.mxu1 %v6085_v62 }
 0x425   : > { %5196 = vmatmul.mubr.msk.bf16.vlgmr.msra.gmra.mxu0 %vm2819_vm5, %v7019_v32  ;;  %5199 = vmatmul.mubr.msk.bf16.vlgmr.msra.gmra.mxu1 %vm2819_vm5, %v7019_v32 }
 0x426   : > { %4480 = vmatpush1.bf16.msra.mxu0 %v3900_v21  ;;  %4533 = vmatpush1.bf16.msra.mxu1 %v3906_v5 }
 0x427   : > { %5207 = vmatprep.subr.msk.bf16.mxu0 %vm2826_vm6, %v3812_v49  ;;  %5210 = vmatprep.subr.msk.bf16.mxu1 %vm2826_vm6, %v3814_v25 }
 0x428   : > { %4401 = vmatprep.mubr.bf16.mxu0 %v6085_v62  ;;  %4454 = vmatprep.mubr.bf16.mxu1 %v6085_v62 }
 0x42d   : > { %5197 = vmatmul.mubr.msk.bf16.gmra.mxu0 %vm2819_vm5, %v7061_v4  ;;  %5200 = vmatmul.mubr.msk.bf16.gmra.mxu1 %vm2819_vm5, %v7061_v4 }
 0x42e   : > { %4497 = vmatprep.mubr.bf16.mxu0 %v6085_v62  ;;  %4550 = vmatprep.mubr.bf16.mxu1 %v6085_v62 }
 0x435   : > { %5202 = vmatmul.mubr.msk.bf16.vlgmr.msra.gmra.mxu0 %vm2819_vm5, %v7019_v32  ;;  %5205 = vmatmul.mubr.msk.bf16.vlgmr.msra.gmra.mxu1 %vm2819_vm5, %v7019_v32 }
 0x436   : > { %4586 = vmatpush1.bf16.msra.mxu0 %v3912_v7  ;;  %4639 = vmatpush1.bf16.msra.mxu1 %v3918_v63 }
 0x437   : > { %5213 = vmatprep.subr.msk.bf16.mxu0 %vm2826_vm6, %v3816_v23  ;;  %5216 = vmatprep.subr.msk.bf16.mxu1 %vm2826_vm6, %v3818_v9 }
 0x438   : > { %4507 = vmatprep.mubr.bf16.mxu0 %v6085_v62  ;;  %4560 = vmatprep.mubr.bf16.mxu1 %v6085_v62 }
 0x43d   : > { %5203 = vmatmul.mubr.msk.bf16.gmra.mxu0 %vm2819_vm5, %v7061_v4  ;;  %5206 = vmatmul.mubr.msk.bf16.gmra.mxu1 %vm2819_vm5, %v7061_v4 }
 0x43e   : > { %4603 = vmatprep.mubr.bf16.mxu0 %v6085_v62  ;;  %4656 = vmatprep.mubr.bf16.mxu1 %v6085_v62 }
 0x445   : > { %5208 = vmatmul.mubr.msk.bf16.vlgmr.msra.gmra.mxu0 %vm2819_vm5, %v7019_v32  ;;  %5211 = vmatmul.mubr.msk.bf16.vlgmr.msra.gmra.mxu1 %vm2819_vm5, %v7019_v32 }
 0x446   : > { %4692 = vmatpush1.bf16.msra.mxu0 %v3924_v52  ;;  %4745 = vmatpush1.bf16.msra.mxu1 %v3930_v51 }
 0x447   : > { %4613 = vmatprep.mubr.bf16.mxu0 %v6085_v62  ;;  %4666 = vmatprep.mubr.bf16.mxu1 %v6085_v62 }
 0x44d   : > { %5209 = vmatmul.mubr.msk.bf16.gmra.mxu0 %vm2819_vm5, %v7061_v4  ;;  %5212 = vmatmul.mubr.msk.bf16.gmra.mxu1 %vm2819_vm5, %v7061_v4 }
 0x44e   : > { %4709 = vmatprep.mubr.bf16.mxu0 %v6085_v62  ;;  %4762 = vmatprep.mubr.bf16.mxu1 %v6085_v62 }
 0x455   : > { %5214 = vmatmul.mubr.msk.bf16.vlgmr.msra.gmra.mxu0 %vm2819_vm5, %v7019_v32  ;;  %5217 = vmatmul.mubr.msk.bf16.vlgmr.msra.gmra.mxu1 %vm2819_vm5, %v7019_v32 }
 0x456   : > { %4719 = vmatprep.mubr.bf16.mxu0 %v6085_v62  ;;  %4772 = vmatprep.mubr.bf16.mxu1 %v6085_v62 }
 0x45d   : > { %5215 = vmatmul.mubr.msk.bf16.gmra.mxu0 %vm2819_vm5, %v7061_v4  ;;  %5218 = vmatmul.mubr.msk.bf16.gmra.mxu1 %vm2819_vm5, %v7061_v4 }
 0x4a5   : > { %v3969_v55 = vpop.f32.mrf.mxu0  ;;  %v4022_v38 = vpop.f32.mrf.mxu1 }
 0x4a6   : > { %4783 = vst [vmem:[%s7258_s20] sm:$0xff] %v3969_v55  ;;  %4785 = vst [vmem:[%s7258_s20 + $0x10] sm:$0xff] %v4022_v38 }
 0x4a7   : > { %v3971_v62 = vpop.f32.mrf.mxu0  ;;  %v4024_v32 = vpop.f32.mrf.mxu1 }
 0x4a8   : > { %4784 = vst [vmem:[%s7258_s20 + $0x8] sm:$0xff] %v3971_v62  ;;  %4786 = vst [vmem:[%s7258_s20 + $0x18] sm:$0xff] %v4024_v32 }
 0x4a9   : > { %v3973_v4 = vpop.f32.mrf.mxu0  ;;  %v4026_v45 = vpop.f32.mrf.mxu1 }
 0x4aa   : > { %4815 = vst [vmem:[%s7258_s20 + $0x100] sm:$0xff] %v3973_v4  ;;  %4817 = vst [vmem:[%s7258_s20 + $0x110] sm:$0xff] %v4026_v45 }
 0x4ab   : > { %v3975_v56 = vpop.f32.mrf.mxu0  ;;  %v4028_v28 = vpop.f32.mrf.mxu1 }
 0x4ac   : > { %4816 = vst [vmem:[%s7258_s20 + $0x108] sm:$0xff] %v3975_v56  ;;  %4818 = vst [vmem:[%s7258_s20 + $0x118] sm:$0xff] %v4028_v28 }
 0x4ad   : > { %v3979_v59 = vpop.f32.mrf.mxu0  ;;  %v4032_v8 = vpop.f32.mrf.mxu1 }
 0x4ae   : > { %4847 = vst [vmem:[%s7258_s20 + $0x200] sm:$0xff] %v3979_v59  ;;  %4849 = vst [vmem:[%s7258_s20 + $0x210] sm:$0xff] %v4032_v8 }
 0x4af   : > { %v3981_v24 = vpop.f32.mrf.mxu0  ;;  %v4034_v26 = vpop.f32.mrf.mxu1 }
 0x4b0   : > { %4848 = vst [vmem:[%s7258_s20 + $0x208] sm:$0xff] %v3981_v24  ;;  %4850 = vst [vmem:[%s7258_s20 + $0x218] sm:$0xff] %v4034_v26 }
 0x4b1   : > { %v3983_v1 = vpop.f32.mrf.mxu0  ;;  %v4036_v14 = vpop.f32.mrf.mxu1 }
 0x4b2   : > { %4879 = vst [vmem:[%s7258_s20 + $0x300] sm:$0xff] %v3983_v1  ;;  %4881 = vst [vmem:[%s7258_s20 + $0x310] sm:$0xff] %v4036_v14 }
 0x4b3   : > { %v3985_v19 = vpop.f32.mrf.mxu0  ;;  %v4038_v16 = vpop.f32.mrf.mxu1 }
 0x4b4   : > { %4880 = vst [vmem:[%s7258_s20 + $0x308] sm:$0xff] %v3985_v19  ;;  %4882 = vst [vmem:[%s7258_s20 + $0x318] sm:$0xff] %v4038_v16 }
 0x4b5   : > { %v4075_v20 = vpop.f32.mrf.mxu0  ;;  %v4128_v34 = vpop.f32.mrf.mxu1 }
 0x4b6   : > { %4787 = vst [vmem:[%s7258_s20 + $0x20] sm:$0xff] %v4075_v20  ;;  %4789 = vst [vmem:[%s7258_s20 + $0x30] sm:$0xff] %v4128_v34 }
 0x4b7   : > { %v4077_v2 = vpop.f32.mrf.mxu0  ;;  %v4130_v48 = vpop.f32.mrf.mxu1 }
 0x4b8   : > { %4788 = vst [vmem:[%s7258_s20 + $0x28] sm:$0xff] %v4077_v2  ;;  %4790 = vst [vmem:[%s7258_s20 + $0x38] sm:$0xff] %v4130_v48 }
 0x4b9   : > { %v4079_v30 = vpop.f32.mrf.mxu0  ;;  %v4132_v44 = vpop.f32.mrf.mxu1 }
 0x4ba   : > { %4819 = vst [vmem:[%s7258_s20 + $0x120] sm:$0xff] %v4079_v30  ;;  %4821 = vst [vmem:[%s7258_s20 + $0x130] sm:$0xff] %v4132_v44 }
 0x4bb   : > { %v4081_v46 = vpop.f32.mrf.mxu0  ;;  %v4134_v27 = vpop.f32.mrf.mxu1 }
 0x4bc   : > { %4820 = vst [vmem:[%s7258_s20 + $0x128] sm:$0xff] %v4081_v46  ;;  %4822 = vst [vmem:[%s7258_s20 + $0x138] sm:$0xff] %v4134_v27 }
 0x4bd   : > { %v4085_v13 = vpop.f32.mrf.mxu0  ;;  %v4138_v6 = vpop.f32.mrf.mxu1 }
 0x4be   : > { %4851 = vst [vmem:[%s7258_s20 + $0x220] sm:$0xff] %v4085_v13  ;;  %4853 = vst [vmem:[%s7258_s20 + $0x230] sm:$0xff] %v4138_v6 }
 0x4bf   : > { %v4087_v3 = vpop.f32.mrf.mxu0  ;;  %v4140_v31 = vpop.f32.mrf.mxu1 }
 0x4c0   : > { %4852 = vst [vmem:[%s7258_s20 + $0x228] sm:$0xff] %v4087_v3  ;;  %4854 = vst [vmem:[%s7258_s20 + $0x238] sm:$0xff] %v4140_v31 }
 0x4c1   : > { %v4089_v36 = vpop.f32.mrf.mxu0  ;;  %v4142_v53 = vpop.f32.mrf.mxu1 }
 0x4c2   : > { %4883 = vst [vmem:[%s7258_s20 + $0x320] sm:$0xff] %v4089_v36  ;;  %4885 = vst [vmem:[%s7258_s20 + $0x330] sm:$0xff] %v4142_v53 }
 0x4c3   : > { %v4091_v37 = vpop.f32.mrf.mxu0  ;;  %v4144_v57 = vpop.f32.mrf.mxu1 }
 0x4c4   : > { %4884 = vst [vmem:[%s7258_s20 + $0x328] sm:$0xff] %v4091_v37  ;;  %4886 = vst [vmem:[%s7258_s20 + $0x338] sm:$0xff] %v4144_v57 }
 0x4c5   : > { %v4181_v17 = vpop.f32.mrf.mxu0  ;;  %v4234_v11 = vpop.f32.mrf.mxu1 }
 0x4c6   : > { %4791 = vst [vmem:[%s7258_s20 + $0x40] sm:$0xff] %v4181_v17  ;;  %4793 = vst [vmem:[%s7258_s20 + $0x50] sm:$0xff] %v4234_v11 }
 0x4c7   : > { %v4183_v12 = vpop.f32.mrf.mxu0  ;;  %v4236_v43 = vpop.f32.mrf.mxu1 }
 0x4c8   : > { %4792 = vst [vmem:[%s7258_s20 + $0x48] sm:$0xff] %v4183_v12  ;;  %4794 = vst [vmem:[%s7258_s20 + $0x58] sm:$0xff] %v4236_v43 }
 0x4c9   : > { %v4185_v35 = vpop.f32.mrf.mxu0  ;;  %v4238_v60 = vpop.f32.mrf.mxu1 }
 0x4ca   : > { %4823 = vst [vmem:[%s7258_s20 + $0x140] sm:$0xff] %v4185_v35  ;;  %4825 = vst [vmem:[%s7258_s20 + $0x150] sm:$0xff] %v4238_v60 }
 0x4cb   : > { %v4187_v58 = vpop.f32.mrf.mxu0  ;;  %v4240_v40 = vpop.f32.mrf.mxu1 }
 0x4cc   : > { %4824 = vst [vmem:[%s7258_s20 + $0x148] sm:$0xff] %v4187_v58  ;;  %4826 = vst [vmem:[%s7258_s20 + $0x158] sm:$0xff] %v4240_v40 }
 0x4cd   : > { %v4191_v33 = vpop.f32.mrf.mxu0  ;;  %v4244_v39 = vpop.f32.mrf.mxu1 }
 0x4ce   : > { %4855 = vst [vmem:[%s7258_s20 + $0x240] sm:$0xff] %v4191_v33  ;;  %4857 = vst [vmem:[%s7258_s20 + $0x250] sm:$0xff] %v4244_v39 }
 0x4cf   : > { %v4193_v0 = vpop.f32.mrf.mxu0  ;;  %v4246_v15 = vpop.f32.mrf.mxu1 }
 0x4d0   : > { %4856 = vst [vmem:[%s7258_s20 + $0x248] sm:$0xff] %v4193_v0  ;;  %4858 = vst [vmem:[%s7258_s20 + $0x258] sm:$0xff] %v4246_v15 }
 0x4d1   : > { %v4195_v54 = vpop.f32.mrf.mxu0  ;;  %v4248_v42 = vpop.f32.mrf.mxu1 }
 0x4d2   : > { %4887 = vst [vmem:[%s7258_s20 + $0x340] sm:$0xff] %v4195_v54  ;;  %4889 = vst [vmem:[%s7258_s20 + $0x350] sm:$0xff] %v4248_v42 }
 0x4d3   : > { %v4197_v50 = vpop.f32.mrf.mxu0  ;;  %v4250_v18 = vpop.f32.mrf.mxu1 }
 0x4d4   : > { %4888 = vst [vmem:[%s7258_s20 + $0x348] sm:$0xff] %v4197_v50  ;;  %4890 = vst [vmem:[%s7258_s20 + $0x358] sm:$0xff] %v4250_v18 }
 0x4d5   : > { %v4287_v22 = vpop.f32.mrf.mxu0  ;;  %v4340_v29 = vpop.f32.mrf.mxu1 }
 0x4d6   : > { %4795 = vst [vmem:[%s7258_s20 + $0x60] sm:$0xff] %v4287_v22  ;;  %4797 = vst [vmem:[%s7258_s20 + $0x70] sm:$0xff] %v4340_v29 }
 0x4d7   : > { %v4289_v21 = vpop.f32.mrf.mxu0  ;;  %v4342_v5 = vpop.f32.mrf.mxu1 }
 0x4d8   : > { %4796 = vst [vmem:[%s7258_s20 + $0x68] sm:$0xff] %v4289_v21  ;;  %4798 = vst [vmem:[%s7258_s20 + $0x78] sm:$0xff] %v4342_v5 }
 0x4d9   : > { %v4291_v49 = vpop.f32.mrf.mxu0  ;;  %v4344_v25 = vpop.f32.mrf.mxu1 }
 0x4da   : > { %4827 = vst [vmem:[%s7258_s20 + $0x160] sm:$0xff] %v4291_v49  ;;  %4829 = vst [vmem:[%s7258_s20 + $0x170] sm:$0xff] %v4344_v25 }
 0x4db   : > { %v4293_v61 = vpop.f32.mrf.mxu0  ;;  %v4346_v47 = vpop.f32.mrf.mxu1 }
 0x4dc   : > { %4828 = vst [vmem:[%s7258_s20 + $0x168] sm:$0xff] %v4293_v61  ;;  %4830 = vst [vmem:[%s7258_s20 + $0x178] sm:$0xff] %v4346_v47 }
 0x4dd   : > { %v4297_v7 = vpop.f32.mrf.mxu0  ;;  %v4350_v63 = vpop.f32.mrf.mxu1 }
 0x4de   : > { %4859 = vst [vmem:[%s7258_s20 + $0x260] sm:$0xff] %v4297_v7  ;;  %4861 = vst [vmem:[%s7258_s20 + $0x270] sm:$0xff] %v4350_v63 }
 0x4df   : > { %v4299_v23 = vpop.f32.mrf.mxu0  ;;  %v4352_v9 = vpop.f32.mrf.mxu1 }
 0x4e0   : > { %4860 = vst [vmem:[%s7258_s20 + $0x268] sm:$0xff] %v4299_v23  ;;  %4862 = vst [vmem:[%s7258_s20 + $0x278] sm:$0xff] %v4352_v9 }
 0x4e1   : > { %v4301_v10 = vpop.f32.mrf.mxu0  ;;  %v4354_v41 = vpop.f32.mrf.mxu1 }
 0x4e2   : > { %4891 = vst [vmem:[%s7258_s20 + $0x360] sm:$0xff] %v4301_v10  ;;  %4893 = vst [vmem:[%s7258_s20 + $0x370] sm:$0xff] %v4354_v41 }
 0x4e3   : > { %v4303_v52 = vpop.f32.mrf.mxu0  ;;  %v4356_v51 = vpop.f32.mrf.mxu1 }
 0x4e4   : > { %4892 = vst [vmem:[%s7258_s20 + $0x368] sm:$0xff] %v4303_v52  ;;  %4894 = vst [vmem:[%s7258_s20 + $0x378] sm:$0xff] %v4356_v51 }
 0x4e5   : > { %v4393_v55 = vpop.f32.mrf.mxu0  ;;  %v4446_v38 = vpop.f32.mrf.mxu1 }
 0x4e6   : > { %4799 = vst [vmem:[%s7258_s20 + $0x80] sm:$0xff] %v4393_v55  ;;  %4801 = vst [vmem:[%s7258_s20 + $0x90] sm:$0xff] %v4446_v38 }
 0x4e7   : > { %v4395_v62 = vpop.f32.mrf.mxu0  ;;  %v4448_v32 = vpop.f32.mrf.mxu1 }
 0x4e8   : > { %4800 = vst [vmem:[%s7258_s20 + $0x88] sm:$0xff] %v4395_v62  ;;  %4802 = vst [vmem:[%s7258_s20 + $0x98] sm:$0xff] %v4448_v32 }
 0x4e9   : > { %v4397_v4 = vpop.f32.mrf.mxu0  ;;  %v4450_v45 = vpop.f32.mrf.mxu1 }
 0x4ea   : > { %4831 = vst [vmem:[%s7258_s20 + $0x180] sm:$0xff] %v4397_v4  ;;  %4833 = vst [vmem:[%s7258_s20 + $0x190] sm:$0xff] %v4450_v45 }
 0x4eb   : > { %v4399_v56 = vpop.f32.mrf.mxu0  ;;  %v4452_v28 = vpop.f32.mrf.mxu1 }
 0x4ec   : > { %4832 = vst [vmem:[%s7258_s20 + $0x188] sm:$0xff] %v4399_v56  ;;  %4834 = vst [vmem:[%s7258_s20 + $0x198] sm:$0xff] %v4452_v28 }
 0x4ed   : > { %v4403_v59 = vpop.f32.mrf.mxu0  ;;  %v4456_v8 = vpop.f32.mrf.mxu1 }
 0x4ee   : > { %4863 = vst [vmem:[%s7258_s20 + $0x280] sm:$0xff] %v4403_v59  ;;  %4865 = vst [vmem:[%s7258_s20 + $0x290] sm:$0xff] %v4456_v8 }
 0x4ef   : > { %v4405_v24 = vpop.f32.mrf.mxu0  ;;  %v4458_v26 = vpop.f32.mrf.mxu1 }
 0x4f0   : > { %4864 = vst [vmem:[%s7258_s20 + $0x288] sm:$0xff] %v4405_v24  ;;  %4866 = vst [vmem:[%s7258_s20 + $0x298] sm:$0xff] %v4458_v26 }
 0x4f1   : > { %v4407_v1 = vpop.f32.mrf.mxu0  ;;  %v4460_v14 = vpop.f32.mrf.mxu1 }
 0x4f2   : > { %4895 = vst [vmem:[%s7258_s20 + $0x380] sm:$0xff] %v4407_v1  ;;  %4897 = vst [vmem:[%s7258_s20 + $0x390] sm:$0xff] %v4460_v14 }
 0x4f3   : > { %v4409_v19 = vpop.f32.mrf.mxu0  ;;  %v4462_v16 = vpop.f32.mrf.mxu1 }
 0x4f4   : > { %4896 = vst [vmem:[%s7258_s20 + $0x388] sm:$0xff] %v4409_v19  ;;  %4898 = vst [vmem:[%s7258_s20 + $0x398] sm:$0xff] %v4462_v16 }
 0x4f5   : > { %v4499_v20 = vpop.f32.mrf.mxu0  ;;  %v4552_v34 = vpop.f32.mrf.mxu1 }
 0x4f6   : > { %4803 = vst [vmem:[%s7258_s20 + $0xa0] sm:$0xff] %v4499_v20  ;;  %4805 = vst [vmem:[%s7258_s20 + $0xb0] sm:$0xff] %v4552_v34 }
 0x4f7   : > { %v4501_v2 = vpop.f32.mrf.mxu0  ;;  %v4554_v48 = vpop.f32.mrf.mxu1 }
 0x4f8   : > { %4804 = vst [vmem:[%s7258_s20 + $0xa8] sm:$0xff] %v4501_v2  ;;  %4806 = vst [vmem:[%s7258_s20 + $0xb8] sm:$0xff] %v4554_v48 }
 0x4f9   : > { %v4503_v30 = vpop.f32.mrf.mxu0  ;;  %v4556_v44 = vpop.f32.mrf.mxu1 }
 0x4fa   : > { %4835 = vst [vmem:[%s7258_s20 + $0x1a0] sm:$0xff] %v4503_v30  ;;  %4837 = vst [vmem:[%s7258_s20 + $0x1b0] sm:$0xff] %v4556_v44 }
 0x4fb   : > { %v4505_v46 = vpop.f32.mrf.mxu0  ;;  %v4558_v27 = vpop.f32.mrf.mxu1 }
 0x4fc   : > { %4836 = vst [vmem:[%s7258_s20 + $0x1a8] sm:$0xff] %v4505_v46  ;;  %4838 = vst [vmem:[%s7258_s20 + $0x1b8] sm:$0xff] %v4558_v27 }
 0x4fd   : > { %v4509_v13 = vpop.f32.mrf.mxu0  ;;  %v4562_v6 = vpop.f32.mrf.mxu1 }
 0x4fe   : > { %4867 = vst [vmem:[%s7258_s20 + $0x2a0] sm:$0xff] %v4509_v13  ;;  %4869 = vst [vmem:[%s7258_s20 + $0x2b0] sm:$0xff] %v4562_v6 }
 0x4ff   : > { %v4511_v3 = vpop.f32.mrf.mxu0  ;;  %v4564_v31 = vpop.f32.mrf.mxu1 }
 0x500   : > { %4868 = vst [vmem:[%s7258_s20 + $0x2a8] sm:$0xff] %v4511_v3  ;;  %4870 = vst [vmem:[%s7258_s20 + $0x2b8] sm:$0xff] %v4564_v31 }
 0x501   : > { %v4513_v36 = vpop.f32.mrf.mxu0  ;;  %v4566_v53 = vpop.f32.mrf.mxu1 }
 0x502   : > { %4899 = vst [vmem:[%s7258_s20 + $0x3a0] sm:$0xff] %v4513_v36  ;;  %4901 = vst [vmem:[%s7258_s20 + $0x3b0] sm:$0xff] %v4566_v53 }
 0x503   : > { %v4515_v37 = vpop.f32.mrf.mxu0  ;;  %v4568_v57 = vpop.f32.mrf.mxu1 }
 0x504   : > { %4900 = vst [vmem:[%s7258_s20 + $0x3a8] sm:$0xff] %v4515_v37  ;;  %4902 = vst [vmem:[%s7258_s20 + $0x3b8] sm:$0xff] %v4568_v57 }
 0x505   : > { %v4605_v17 = vpop.f32.mrf.mxu0  ;;  %v4658_v11 = vpop.f32.mrf.mxu1 }
 0x506   : > { %4807 = vst [vmem:[%s7258_s20 + $0xc0] sm:$0xff] %v4605_v17  ;;  %4809 = vst [vmem:[%s7258_s20 + $0xd0] sm:$0xff] %v4658_v11 }
 0x507   : > { %v4607_v12 = vpop.f32.mrf.mxu0  ;;  %v4660_v43 = vpop.f32.mrf.mxu1 }
 0x508   : > { %4808 = vst [vmem:[%s7258_s20 + $0xc8] sm:$0xff] %v4607_v12  ;;  %4810 = vst [vmem:[%s7258_s20 + $0xd8] sm:$0xff] %v4660_v43 }
 0x509   : > { %v4609_v35 = vpop.f32.mrf.mxu0  ;;  %v4662_v60 = vpop.f32.mrf.mxu1 }
 0x50a   : > { %4839 = vst [vmem:[%s7258_s20 + $0x1c0] sm:$0xff] %v4609_v35  ;;  %4841 = vst [vmem:[%s7258_s20 + $0x1d0] sm:$0xff] %v4662_v60 }
 0x50b   : > { %v4611_v58 = vpop.f32.mrf.mxu0  ;;  %v4664_v40 = vpop.f32.mrf.mxu1 }
 0x50c   : > { %4840 = vst [vmem:[%s7258_s20 + $0x1c8] sm:$0xff] %v4611_v58  ;;  %4842 = vst [vmem:[%s7258_s20 + $0x1d8] sm:$0xff] %v4664_v40 }
 0x50d   : > { %v4615_v33 = vpop.f32.mrf.mxu0  ;;  %v4668_v39 = vpop.f32.mrf.mxu1 }
 0x50e   : > { %4871 = vst [vmem:[%s7258_s20 + $0x2c0] sm:$0xff] %v4615_v33  ;;  %4873 = vst [vmem:[%s7258_s20 + $0x2d0] sm:$0xff] %v4668_v39 }
 0x50f   : > { %v4617_v0 = vpop.f32.mrf.mxu0  ;;  %v4670_v15 = vpop.f32.mrf.mxu1 }
 0x510   : > { %4872 = vst [vmem:[%s7258_s20 + $0x2c8] sm:$0xff] %v4617_v0  ;;  %4874 = vst [vmem:[%s7258_s20 + $0x2d8] sm:$0xff] %v4670_v15 }
 0x511   : > { %v4619_v54 = vpop.f32.mrf.mxu0  ;;  %v4672_v42 = vpop.f32.mrf.mxu1 }
 0x512   : > { %4903 = vst [vmem:[%s7258_s20 + $0x3c0] sm:$0xff] %v4619_v54  ;;  %4905 = vst [vmem:[%s7258_s20 + $0x3d0] sm:$0xff] %v4672_v42 }
 0x513   : > { %v4621_v50 = vpop.f32.mrf.mxu0  ;;  %v4674_v18 = vpop.f32.mrf.mxu1 }
 0x514   : > { %4904 = vst [vmem:[%s7258_s20 + $0x3c8] sm:$0xff] %v4621_v50  ;;  %4906 = vst [vmem:[%s7258_s20 + $0x3d8] sm:$0xff] %v4674_v18 }
 0x515   : > { %v4711_v22 = vpop.f32.mrf.mxu0  ;;  %v4764_v29 = vpop.f32.mrf.mxu1 }
 0x516   : > { %4811 = vst [vmem:[%s7258_s20 + $0xe0] sm:$0xff] %v4711_v22  ;;  %4813 = vst [vmem:[%s7258_s20 + $0xf0] sm:$0xff] %v4764_v29 }
 0x517   : > { %v4713_v21 = vpop.f32.mrf.mxu0  ;;  %v4766_v5 = vpop.f32.mrf.mxu1 }
 0x518   : > { %4812 = vst [vmem:[%s7258_s20 + $0xe8] sm:$0xff] %v4713_v21  ;;  %4814 = vst [vmem:[%s7258_s20 + $0xf8] sm:$0xff] %v4766_v5 }
 0x519   : > { %v4715_v49 = vpop.f32.mrf.mxu0  ;;  %v4768_v25 = vpop.f32.mrf.mxu1 }
 0x51a   : > { %4843 = vst [vmem:[%s7258_s20 + $0x1e0] sm:$0xff] %v4715_v49  ;;  %4845 = vst [vmem:[%s7258_s20 + $0x1f0] sm:$0xff] %v4768_v25 }
 0x51b   : > { %v4717_v61 = vpop.f32.mrf.mxu0  ;;  %v4770_v47 = vpop.f32.mrf.mxu1 }
 0x51c   : > { %4844 = vst [vmem:[%s7258_s20 + $0x1e8] sm:$0xff] %v4717_v61  ;;  %4846 = vst [vmem:[%s7258_s20 + $0x1f8] sm:$0xff] %v4770_v47 }
 0x51d   : > { %v4721_v7 = vpop.f32.mrf.mxu0  ;;  %v4774_v63 = vpop.f32.mrf.mxu1 }
 0x51e   : > { %4875 = vst [vmem:[%s7258_s20 + $0x2e0] sm:$0xff] %v4721_v7  ;;  %4877 = vst [vmem:[%s7258_s20 + $0x2f0] sm:$0xff] %v4774_v63 }
 0x51f   : > { %v4723_v23 = vpop.f32.mrf.mxu0  ;;  %v4776_v9 = vpop.f32.mrf.mxu1 }
 0x520   : > { %4876 = vst [vmem:[%s7258_s20 + $0x2e8] sm:$0xff] %v4723_v23  ;;  %4878 = vst [vmem:[%s7258_s20 + $0x2f8] sm:$0xff] %v4776_v9 }
 0x521   : > { %v4725_v10 = vpop.f32.mrf.mxu0  ;;  %v4778_v41 = vpop.f32.mrf.mxu1 }
 0x522   : > { %4907 = vst [vmem:[%s7258_s20 + $0x3e0] sm:$0xff] %v4725_v10  ;;  %4909 = vst [vmem:[%s7258_s20 + $0x3f0] sm:$0xff] %v4778_v41 }
 0x523   : > { %v4727_v52 = vpop.f32.mrf.mxu0  ;;  %v4780_v51 = vpop.f32.mrf.mxu1 }
 0x524   : > { %4908 = vst [vmem:[%s7258_s20 + $0x3e8] sm:$0xff] %v4727_v52  ;;  %4910 = vst [vmem:[%s7258_s20 + $0x3f8] sm:$0xff] %v4780_v51 }
 0x525   : > { %6020 = shalt.err (!%p6017_p9)
}
 0x526   : > { %s6021_s17 = scalar_lea.hbm %s7389_s10, 16384  ;;  %s6025_s18 = scalar_lea.hbm %s7445_s7, 32768 }
 0x527   : > { %p6022_p13 = scmp.ne.s32.totalorder %s7389_s10, %s6021_s17  ;;  %p6026_p4 = scmp.lt.s32.totalorder %s7389_s10, %s7445_s7 }
 0x528   : > { %p6027_p8 = scmp.lt.s32.totalorder %s6025_s18, %s6021_s17 }
 0x529   : > { %p6023_p5 = pnand %p6022_p13, %p7493_p10 }
 0x52a   : > { %p6028_p3 = por %p6027_p8, %p6026_p4 }
 0x52b   : > { %p6024_p0 = pneg %p6023_p5 }
 0x52d   : > { %p6029_p11 = pnand %p6028_p3, %p6024_p0 }
 0x52f   : > { %6032 = shalt.err (!%p6029_p11)
}
 0x530   : > { %s6089_s13 = smov 4096   ;;  %s6090_s19 = smov 256  }
 0x531   : > { %5775 = dma.vmem_to_hbm [thread:$0]  (%p7493_p10), %s7391_s22, 16384, %s7389_s10, %s4912_s28, %s6089_s13, %s6089_s13, %s6090_s19  }
 0x532 PF: > { %s4940_s29 = sand.u32 1, %s6063_s24   ;;  %p7494_p1 = scmp.ne.s32.totalorder %s7456_s8, 0 }
 0x533   : > { %p7495_p2 = scmp.ge.s32.totalorder %s6075_s27, 2  ;;  %s4941_s14 = scalar_lea.sflag [#allocation6], %s4940_s29 }
 0x535   : > { %p5789_p6 = pnand %p7495_p2, %p7494_p1 }
 0x537   : > { %p5790_p12 = pneg %p5789_p6 }
 0x539   : > { %6058 = dma.done.wait (%p5790_p12), %s4941_s14, 16384  }
 0x53a   : > { %6060 = vsyncadd (%p5790_p12), %s4941_s14, 4294950912  ;;  %p21_p7 = scmp.ge.s32.totalorder %s6203_s23, 4   ;;  %s7496_s24 = smov %s6067_s25 }
 0x53b   : > { %s7497_s25 = smov %s6071_s26  ;;  %s7498_s26 = smov %s6219_s12 }
 0x53c   : > { %s7499_s27 = smov %s6203_s23  ;;  %23 = sbr.rel (!%p21_p7) target bundleno = 8 (0x8), region = 121 }
 0x541   :  { %4946 = vsyncpa [#allocation5], 1 }
 0x542   :  { %4948 = vsyncpa [#allocation5 + $0x1], 1 }
 0x543   :  { %4949 = vsyncpa [#allocation8], 1 }
 0x544   :  { %4950 = vsyncpa [#allocation6], 1 }
 0x545   :  { %4952 = vsyncpa [#allocation6 + $0x1], 1 }

</bundles_post_ra>
